<compile_context>
chip_gen: v7x
topology: tpu7x:2x2x1
jax: 0.10.0
libtpu: 0.0.40
codegen_flags: <defaults>
</compile_context>

<pallas_src>
import jax
import jax.numpy as jnp
from jax.experimental import pallas as pl
from jax.experimental.pallas import tpu as pltpu

Z_DIM = 32
NGF = 8
N_CHANNELS = 3
BN_EPS = 1e-5
TILE_M = 512


# ------------------------------ Pallas kernel -------------------------------

def _make_fused_kernel(apply_bn, compute_stats, apply_tanh):
    """Fused ConvTranspose-as-matmul kernel.

    prologue : relu(A * scale + shift)     (previous layer's BatchNorm + ReLU)
    body     : A @ B on the MXU, f32 accumulation
    epilogue : per-column sum / sum-of-squares (for this layer's BatchNorm)
               and/or tanh, then store.
    """

    def kernel(*refs):
        it = iter(refs)
        a_ref = next(it)
        b_ref = next(it)
        if apply_bn:
            sc_ref = next(it)
            sh_ref = next(it)
        y_ref = next(it)
        if compute_stats:
            s_ref = next(it)
            q_ref = next(it)

        a = a_ref[...]
        if apply_bn:
            a = jnp.maximum(a * sc_ref[...] + sh_ref[...], 0.0)
        y = jnp.dot(a, b_ref[...], preferred_element_type=jnp.float32)

        if compute_stats:
            @pl.when(pl.program_id(0) == 0)
            def _():
                s_ref[...] = jnp.zeros_like(s_ref)
                q_ref[...] = jnp.zeros_like(q_ref)

            s_ref[...] += jnp.sum(y, axis=0, keepdims=True)
            q_ref[...] += jnp.sum(y * y, axis=0, keepdims=True)

        if apply_tanh:
            y = jnp.tanh(y)
        y_ref[...] = y.astype(y_ref.dtype)

    return kernel


def fused_convt_matmul(a, b, scale=None, shift=None, *,
                       compute_stats=False, apply_tanh=False, tile_m=TILE_M):
    """(M, K) @ (K, N) with fused BN/ReLU prologue and stats / tanh epilogue."""
    m, k = a.shape
    n_out = b.shape[1]
    apply_bn = scale is not None

    # Only the (2, z_dim) latent needs row padding; its zero rows are harmless
    # (no BN prologue there, and zero rows contribute nothing to the stats).
    m_pad = ((m + 7) // 8) * 8
    if m_pad != m:
        assert not apply_bn
        a = jnp.pad(a, ((0, m_pad - m), (0, 0)))

    tile = tile_m if (m_pad % tile_m == 0 and m_pad > tile_m) else m_pad
    grid = (m_pad // tile,)

    in_specs = [pl.BlockSpec((tile, k), lambda i: (i, 0)),
                pl.BlockSpec((k, n_out), lambda i: (0, 0))]
    inputs = [a, b]
    if apply_bn:
        in_specs += [pl.BlockSpec((1, k), lambda i: (0, 0)),
                     pl.BlockSpec((1, k), lambda i: (0, 0))]
        inputs += [scale, shift]

    out_shape = [jax.ShapeDtypeStruct((m_pad, n_out), jnp.float32)]
    out_specs = [pl.BlockSpec((tile, n_out), lambda i: (i, 0))]
    if compute_stats:
        out_shape += [jax.ShapeDtypeStruct((1, n_out), jnp.float32)] * 2
        out_specs += [pl.BlockSpec((1, n_out), lambda i: (0, 0))] * 2

    sem = "arbitrary" if (compute_stats and grid[0] > 1) else "parallel"
    outs = pl.pallas_call(
        _make_fused_kernel(apply_bn, compute_stats, apply_tanh),
        out_shape=tuple(out_shape),
        grid=grid,
        in_specs=in_specs,
        out_specs=tuple(out_specs),
        compiler_params=pltpu.CompilerParams(dimension_semantics=(sem,)),
    )(*inputs)

    if compute_stats:
        y, colsum, colsumsq = outs
    else:
        y = outs[0] if isinstance(outs, (tuple, list)) else outs
        colsum = colsumsq = None

    if m_pad != m:
        y = y[:m]
    return (y, colsum, colsumsq) if compute_stats else y


# ---------------- ConvTranspose rewrite / BatchNorm glue (XLA) ---------------

def _phase_taps(r):
    # output sub-pixel phase r (row or col) -> [(offset in 3x3 window, kernel tap)]
    # derived from: oh = 2*ih - 1 + kh   (stride 2, padding 1, kernel 4)
    return [(0, 3), (1, 1)] if r == 0 else [(1, 2), (2, 0)]


def _convt_s2_weight_matrix(w):
    """PyTorch ConvTranspose2d weight (Cin, Cout, 4, 4) -> (9*Cin, 4*Cout)."""
    cin, cout = w.shape[0], w.shape[1]
    wmat = jnp.zeros((3, 3, cin, 2, 2, cout), jnp.float32)
    for r in (0, 1):
        for di, kh in _phase_taps(r):
            for c in (0, 1):
                for dj, kw in _phase_taps(c):
                    wmat = wmat.at[di, dj, :, r, c, :].set(w[:, :, kh, kw])
    return wmat.reshape(9 * cin, 4 * cout)


def _bn_scale_shift(colsum, colsumsq, gamma, beta, count):
    """Fold the kernel's per-column stats into per-channel BN scale / shift."""
    c = gamma.shape[0]
    s = colsum.reshape(-1, c).sum(axis=0)
    q = colsumsq.reshape(-1, c).sum(axis=0)
    mean = s / count
    var = q / count - mean * mean          # biased variance (training-mode BN)
    scale = gamma / jnp.sqrt(var + BN_EPS)
    shift = beta - mean * scale
    return scale.reshape(1, c), shift.reshape(1, c)


def _im2col_bn_padded(y_nhwc, scale, shift):
    """3x3-window im2col of the *raw* activation, padded with v = -shift/scale
    per channel so that the consumer kernel's fused relu(x*scale + shift)
    maps the padding to exactly 0 (zero padding in the normalized domain)."""
    n, h, w, c = y_nhwc.shape
    pad_val = (-shift / scale).reshape(1, 1, 1, c)
    xp = jnp.broadcast_to(pad_val, (n, h + 2, w + 2, c))
    xp = xp.at[:, 1:h + 1, 1:w + 1, :].set(y_nhwc)
    cols = [xp[:, di:di + h, dj:dj + w, :] for di in range(3) for dj in range(3)]
    # TODO(synk): fold this gather and the depth-to-space below into the matmul
    # kernel (in-kernel window slicing) once Mosaic-safe layouts for the tiny
    # NHWC tiles are worked out.
    return jnp.concatenate(cols, axis=-1).reshape(n * h * w, 9 * c)


def _depth_to_space(y, n, h, w, c):
    """(N*H*W, 2*2*C) per-phase matmul output -> (N, 2H, 2W, C) NHWC."""
    return (y.reshape(n, h, w, 2, 2, c)
             .transpose(0, 1, 3, 2, 4, 5)
             .reshape(n, 2 * h, 2 * w, c))


# --------------------------- parameters / forward ----------------------------

def init_params(key, z_dim=Z_DIM, ngf=NGF, n_channels=N_CHANNELS):
    chans = [z_dim, ngf * 8, ngf * 4, ngf * 2, ngf, n_channels]
    params = {}
    for li in range(5):
        key, kw_ = jax.random.split(key)
        w = 0.02 * jax.random.normal(
            kw_, (chans[li], chans[li + 1], 4, 4), jnp.float32)
        params[f"w{li}"] = w                      # raw weight (reference check)
        if li == 0:
            # columns ordered (kh, kw, cout) so the output reshapes straight to NHWC
            params["wm0"] = w.transpose(0, 2, 3, 1).reshape(
                chans[0], 16 * chans[1])
        else:
            params[f"wm{li}"] = _convt_s2_weight_matrix(w)   # precomputed once
        if li < 4:
            key, kg = jax.random.split(key)
            params[f"gamma{li}"] = 1.0 + 0.02 * jax.random.normal(
                kg, (chans[li + 1],), jnp.float32)
            params[f"beta{li}"] = jnp.zeros((chans[li + 1],), jnp.float32)
    return params


def generator_forward(x_nchw, params):
    """x_nchw: (N, z_dim, 1, 1) -> (N, n_channels, 64, 64)."""
    n = x_nchw.shape[0]
    chans = [NGF * 8, NGF * 4, NGF * 2, NGF, N_CHANNELS]
    z = x_nchw.reshape(n, x_nchw.shape[1])

    # layer 0: ConvT(k=4, s=1, p=0) on 1x1 input, fused matmul + channel stats
    y, cs, cq = fused_convt_matmul(z, params["wm0"], compute_stats=True)
    c = chans[0]
    scale, shift = _bn_scale_shift(cs, cq, params["gamma0"], params["beta0"],
                                   count=n * 16)
    y_nhwc = y.reshape(n, 4, 4, c)               # wm0 columns are (kh, kw, c)
    h = w = 4

    # layers 1..4: ConvT(k=4, s=2, p=1) with fused BN/ReLU prologue
    for li in range(1, 5):
        a = _im2col_bn_padded(y_nhwc, scale, shift)
        sa = jnp.tile(scale, (1, 9))             # per-tap copies of scale/shift
        sh = jnp.tile(shift, (1, 9))
        cout = chans[li]
        if li < 4:
            y, cs, cq = fused_convt_matmul(a, params[f"wm{li}"], sa, sh,
                                           compute_stats=True)
            scale, shift = _bn_scale_shift(
                cs, cq, params[f"gamma{li}"], params[f"beta{li}"],
                count=n * 4 * h * w)             # = N * (2H) * (2W)
        else:
            y = fused_convt_matmul(a, params["wm4"], sa, sh, apply_tanh=True)
        y_nhwc = _depth_to_space(y, n, h, w, cout)
        h, w = 2 * h, 2 * w

    return y_nhwc.transpose(0, 3, 1, 2)          # back to NCHW


# ------------------------- pure-JAX reference check --------------------------

def _convt_ref(x_nchw, w, stride, pad):
    n, cin, h, wd = x_nchw.shape
    cout, k = w.shape[1], w.shape[2]
    hf = (h - 1) * stride + k
    wf = (wd - 1) * stride + k
    t = jnp.einsum('nihw,iokl->nohwkl', x_nchw, w,
                   precision=jax.lax.Precision.HIGHEST)
    out = jnp.zeros((n, cout, hf, wf), jnp.float32)
    for kh in range(k):
        for kw in range(k):
            out = out.at[:, :, kh:kh + stride * h:stride,
                         kw:kw + stride * wd:stride].add(t[..., kh, kw])
    return out[:, :, pad:hf - pad, pad:wf - pad]


def _bn_relu_ref(x_nchw, gamma, beta):
    mean = x_nchw.mean(axis=(0, 2, 3), keepdims=True)
    var = x_nchw.var(axis=(0, 2, 3), keepdims=True)
    y = (x_nchw - mean) / jnp.sqrt(var + BN_EPS)
    y = y * gamma.reshape(1, -1, 1, 1) + beta.reshape(1, -1, 1, 1)
    return jnp.maximum(y, 0.0)


def generator_ref(x_nchw, params):
    y = _convt_ref(x_nchw, params["w0"], 1, 0)
    y = _bn_relu_ref(y, params["gamma0"], params["beta0"])
    for li in range(1, 4):
        y = _convt_ref(y, params[f"w{li}"], 2, 1)
        y = _bn_relu_ref(y, params[f"gamma{li}"], params[f"beta{li}"])
    y = _convt_ref(y, params["w4"], 2, 1)
    return jnp.tanh(y)


# ----------------------------------- main ------------------------------------

if __name__ == "__main__":
    key = jax.random.PRNGKey(0)
    kp, kx = jax.random.split(key)
    params = init_params(kp)
    x = jax.random.normal(kx, (2, Z_DIM, 1, 1), jnp.float32)

    out = jax.jit(generator_forward)(x, params)
    out = jax.block_until_ready(out)
    assert out.shape == (2, N_CHANNELS, 64, 64), out.shape

    ref = generator_ref(x, params)
    max_err = float(jnp.max(jnp.abs(out - ref)))
    assert jnp.allclose(out, ref, atol=1e-2, rtol=1e-2), max_err

    print("KERNEL_OK")
</pallas_src>

<mosaic_0001>
module attributes {stable_mosaic.version = 11 : i64} {
  func.func @kernel(%arg0: i32, %arg1: memref<8x32xf32, #tpu.memory_space<vmem>>, %arg2: memref<32x1024xf32, #tpu.memory_space<vmem>>, %arg3: memref<8x1024xf32, #tpu.memory_space<vmem>>, %arg4: memref<1x1024xf32, #tpu.memory_space<vmem>>, %arg5: memref<1x1024xf32, #tpu.memory_space<vmem>>) attributes {dimension_semantics = [#tpu.dimension_semantics<parallel>], iteration_bounds = array<i64: 1>, scalar_prefetch = 0 : i64, scratch_operands = 0 : i64, tpu.core_type = #tpu.core_type<tc>, window_params = [{transform_indices = @transform_0, window_bounds = array<i64: 8, 32>}, {pipeline_mode = #tpu.pipeline_mode<synchronous>, transform_indices = @transform_1, window_bounds = array<i64: 32, 1024>}, {transform_indices = @transform_2, window_bounds = array<i64: 8, 1024>}, {pipeline_mode = #tpu.pipeline_mode<synchronous>, transform_indices = @transform_3, window_bounds = array<i64: 1, 1024>}, {pipeline_mode = #tpu.pipeline_mode<synchronous>, transform_indices = @transform_4, window_bounds = array<i64: 1, 1024>}]} {
    %c0 = arith.constant 0 : index
    %c0_0 = arith.constant 0 : index
    %0 = vector.load %arg1[%c0, %c0_0] : memref<8x32xf32, #tpu.memory_space<vmem>>, vector<8x32xf32>
    %c0_1 = arith.constant 0 : index
    %c0_2 = arith.constant 0 : index
    %1 = vector.load %arg2[%c0_1, %c0_2] : memref<32x1024xf32, #tpu.memory_space<vmem>>, vector<32x1024xf32>
    %cst = arith.constant dense<0.000000e+00> : vector<8x1024xf32>
    %2 = tpu.matmul %0, %1, %cst {dimension_numbers = #tpu.dot_dimension_numbers<[1], [0], [0], [1], [0, 0, 1, 1], [], []>} : vector<8x32xf32>, vector<32x1024xf32>, vector<8x1024xf32> -> vector<8x1024xf32>
    %c0_i32 = arith.constant 0 : i32
    %3 = arith.cmpi eq, %arg0, %c0_i32 : i32
    %4 = arith.extui %3 : i1 to i32
    %c0_i32_3 = arith.constant 0 : i32
    %5 = arith.cmpi ne, %4, %c0_i32_3 : i32
    scf.if %5 {
      %cst_16 = arith.constant 0.000000e+00 : f32
      %18 = vector.broadcast %cst_16 : f32 to vector<1x1024xf32>
      %c0_17 = arith.constant 0 : index
      %c0_18 = arith.constant 0 : index
      %19 = vector.load %arg4[%c0_17, %c0_18] : memref<1x1024xf32, #tpu.memory_space<vmem>>, vector<1x1024xf32>
      tpu.vector_store %arg4[%c0_17, %c0_18], %18 {strides = array<i32>} : memref<1x1024xf32, #tpu.memory_space<vmem>>, vector<1x1024xf32>,
      %cst_19 = arith.constant 0.000000e+00 : f32
      %20 = vector.broadcast %cst_19 : f32 to vector<1x1024xf32>
      %c0_20 = arith.constant 0 : index
      %c0_21 = arith.constant 0 : index
      %21 = vector.load %arg5[%c0_20, %c0_21] : memref<1x1024xf32, #tpu.memory_space<vmem>>, vector<1x1024xf32>
      tpu.vector_store %arg5[%c0_20, %c0_21], %20 {strides = array<i32>} : memref<1x1024xf32, #tpu.memory_space<vmem>>, vector<1x1024xf32>,
    } else {
    }
    %c0_4 = arith.constant 0 : index
    %c0_5 = arith.constant 0 : index
    %6 = vector.load %arg4[%c0_4, %c0_5] : memref<1x1024xf32, #tpu.memory_space<vmem>>, vector<1x1024xf32>
    %cst_6 = arith.constant dense<0.000000e+00> : vector<1024xf32>
    %7 = vector.multi_reduction <add>, %2, %cst_6 [0] : vector<8x1024xf32> to vector<1024xf32>
    %8 = vector.shape_cast %7 : vector<1024xf32> to vector<1x1024xf32>
    %9 = arith.addf %6, %8 : vector<1x1024xf32>
    %c0_7 = arith.constant 0 : index
    %c0_8 = arith.constant 0 : index
    %10 = vector.load %arg4[%c0_7, %c0_8] : memref<1x1024xf32, #tpu.memory_space<vmem>>, vector<1x1024xf32>
    tpu.vector_store %arg4[%c0_7, %c0_8], %9 {strides = array<i32>} : memref<1x1024xf32, #tpu.memory_space<vmem>>, vector<1x1024xf32>,
    %c0_9 = arith.constant 0 : index
    %c0_10 = arith.constant 0 : index
    %11 = vector.load %arg5[%c0_9, %c0_10] : memref<1x1024xf32, #tpu.memory_space<vmem>>, vector<1x1024xf32>
    %12 = arith.mulf %2, %2 : vector<8x1024xf32>
    %cst_11 = arith.constant dense<0.000000e+00> : vector<1024xf32>
    %13 = vector.multi_reduction <add>, %12, %cst_11 [0] : vector<8x1024xf32> to vector<1024xf32>
    %14 = vector.shape_cast %13 : vector<1024xf32> to vector<1x1024xf32>
    %15 = arith.addf %11, %14 : vector<1x1024xf32>
    %c0_12 = arith.constant 0 : index
    %c0_13 = arith.constant 0 : index
    %16 = vector.load %arg5[%c0_12, %c0_13] : memref<1x1024xf32, #tpu.memory_space<vmem>>, vector<1x1024xf32>
    tpu.vector_store %arg5[%c0_12, %c0_13], %15 {strides = array<i32>} : memref<1x1024xf32, #tpu.memory_space<vmem>>, vector<1x1024xf32>,
    %c0_14 = arith.constant 0 : index
    %c0_15 = arith.constant 0 : index
    %17 = vector.load %arg3[%c0_14, %c0_15] : memref<8x1024xf32, #tpu.memory_space<vmem>>, vector<8x1024xf32>
    tpu.vector_store %arg3[%c0_14, %c0_15], %2 {strides = array<i32>} : memref<8x1024xf32, #tpu.memory_space<vmem>>, vector<8x1024xf32>,
    return
  }
  func.func @transform_0(%arg0: i32) -> (i32, i32) {
    %c0_i32 = arith.constant 0 : i32
    %c0_i32_0 = arith.constant 0 : i32
    return %arg0, %c0_i32 : i32, i32
  }
  func.func @transform_1(%arg0: i32) -> (i32, i32) {
    %c0_i32 = arith.constant 0 : i32
    %c0_i32_0 = arith.constant 0 : i32
    %c0_i32_1 = arith.constant 0 : i32
    return %c0_i32, %c0_i32_0 : i32, i32
  }
  func.func @transform_2(%arg0: i32) -> (i32, i32) {
    %c0_i32 = arith.constant 0 : i32
    %c0_i32_0 = arith.constant 0 : i32
    return %arg0, %c0_i32 : i32, i32
  }
  func.func @transform_3(%arg0: i32) -> (i32, i32) {
    %c0_i32 = arith.constant 0 : i32
    %c0_i32_0 = arith.constant 0 : i32
    %c0_i32_1 = arith.constant 0 : i32
    return %c0_i32, %c0_i32_0 : i32, i32
  }
  func.func @transform_4(%arg0: i32) -> (i32, i32) {
    %c0_i32 = arith.constant 0 : i32
    %c0_i32_0 = arith.constant 0 : i32
    %c0_i32_1 = arith.constant 0 : i32
    return %c0_i32, %c0_i32_0 : i32, i32
  }
}

module attributes {stable_mosaic.version = 11 : i64} {
  func.func @kernel(%arg0: i32, %arg1: memref<32x576xf32, #tpu.memory_space<vmem>>, %arg2: memref<576x128xf32, #tpu.memory_space<vmem>>, %arg3: memref<1x576xf32, #tpu.memory_space<vmem>>, %arg4: memref<1x576xf32, #tpu.memory_space<vmem>>, %arg5: memref<32x128xf32, #tpu.memory_space<vmem>>, %arg6: memref<1x128xf32, #tpu.memory_space<vmem>>, %arg7: memref<1x128xf32, #tpu.memory_space<vmem>>) attributes {dimension_semantics = [#tpu.dimension_semantics<parallel>], iteration_bounds = array<i64: 1>, scalar_prefetch = 0 : i64, scratch_operands = 0 : i64, tpu.core_type = #tpu.core_type<tc>, window_params = [{transform_indices = @transform_0, window_bounds = array<i64: 32, 576>}, {pipeline_mode = #tpu.pipeline_mode<synchronous>, transform_indices = @transform_1, window_bounds = array<i64: 576, 128>}, {pipeline_mode = #tpu.pipeline_mode<synchronous>, transform_indices = @transform_2, window_bounds = array<i64: 1, 576>}, {pipeline_mode = #tpu.pipeline_mode<synchronous>, transform_indices = @transform_3, window_bounds = array<i64: 1, 576>}, {transform_indices = @transform_4, window_bounds = array<i64: 32, 128>}, {pipeline_mode = #tpu.pipeline_mode<synchronous>, transform_indices = @transform_5, window_bounds = array<i64: 1, 128>}, {pipeline_mode = #tpu.pipeline_mode<synchronous>, transform_indices = @transform_6, window_bounds = array<i64: 1, 128>}]} {
    %c0 = arith.constant 0 : index
    %c0_0 = arith.constant 0 : index
    %0 = vector.load %arg1[%c0, %c0_0] : memref<32x576xf32, #tpu.memory_space<vmem>>, vector<32x576xf32>
    %c0_1 = arith.constant 0 : index
    %c0_2 = arith.constant 0 : index
    %1 = vector.load %arg3[%c0_1, %c0_2] : memref<1x576xf32, #tpu.memory_space<vmem>>, vector<1x576xf32>
    %2 = vector.broadcast %1 : vector<1x576xf32> to vector<32x576xf32>
    %3 = arith.mulf %0, %2 : vector<32x576xf32>
    %c0_3 = arith.constant 0 : index
    %c0_4 = arith.constant 0 : index
    %4 = vector.load %arg4[%c0_3, %c0_4] : memref<1x576xf32, #tpu.memory_space<vmem>>, vector<1x576xf32>
    %5 = vector.broadcast %4 : vector<1x576xf32> to vector<32x576xf32>
    %6 = arith.addf %3, %5 : vector<32x576xf32>
    %cst = arith.constant 0.000000e+00 : f32
    %7 = vector.broadcast %cst : f32 to vector<32x576xf32>
    %8 = arith.maximumf %6, %7 : vector<32x576xf32>
    %c0_5 = arith.constant 0 : index
    %c0_6 = arith.constant 0 : index
    %9 = vector.load %arg2[%c0_5, %c0_6] : memref<576x128xf32, #tpu.memory_space<vmem>>, vector<576x128xf32>
    %cst_7 = arith.constant dense<0.000000e+00> : vector<32x128xf32>
    %10 = tpu.matmul %8, %9, %cst_7 {dimension_numbers = #tpu.dot_dimension_numbers<[1], [0], [0], [1], [0, 0, 1, 1], [], []>} : vector<32x576xf32>, vector<576x128xf32>, vector<32x128xf32> -> vector<32x128xf32>
    %c0_i32 = arith.constant 0 : i32
    %11 = arith.cmpi eq, %arg0, %c0_i32 : i32
    %12 = arith.extui %11 : i1 to i32
    %c0_i32_8 = arith.constant 0 : i32
    %13 = arith.cmpi ne, %12, %c0_i32_8 : i32
    scf.if %13 {
      %cst_21 = arith.constant 0.000000e+00 : f32
      %26 = vector.broadcast %cst_21 : f32 to vector<1x128xf32>
      %c0_22 = arith.constant 0 : index
      %c0_23 = arith.constant 0 : index
      %27 = vector.load %arg6[%c0_22, %c0_23] : memref<1x128xf32, #tpu.memory_space<vmem>>, vector<1x128xf32>
      tpu.vector_store %arg6[%c0_22, %c0_23], %26 {strides = array<i32>} : memref<1x128xf32, #tpu.memory_space<vmem>>, vector<1x128xf32>,
      %cst_24 = arith.constant 0.000000e+00 : f32
      %28 = vector.broadcast %cst_24 : f32 to vector<1x128xf32>
      %c0_25 = arith.constant 0 : index
      %c0_26 = arith.constant 0 : index
      %29 = vector.load %arg7[%c0_25, %c0_26] : memref<1x128xf32, #tpu.memory_space<vmem>>, vector<1x128xf32>
      tpu.vector_store %arg7[%c0_25, %c0_26], %28 {strides = array<i32>} : memref<1x128xf32, #tpu.memory_space<vmem>>, vector<1x128xf32>,
    } else {
    }
    %c0_9 = arith.constant 0 : index
    %c0_10 = arith.constant 0 : index
    %14 = vector.load %arg6[%c0_9, %c0_10] : memref<1x128xf32, #tpu.memory_space<vmem>>, vector<1x128xf32>
    %cst_11 = arith.constant dense<0.000000e+00> : vector<128xf32>
    %15 = vector.multi_reduction <add>, %10, %cst_11 [0] : vector<32x128xf32> to vector<128xf32>
    %16 = vector.shape_cast %15 : vector<128xf32> to vector<1x128xf32>
    %17 = arith.addf %14, %16 : vector<1x128xf32>
    %c0_12 = arith.constant 0 : index
    %c0_13 = arith.constant 0 : index
    %18 = vector.load %arg6[%c0_12, %c0_13] : memref<1x128xf32, #tpu.memory_space<vmem>>, vector<1x128xf32>
    tpu.vector_store %arg6[%c0_12, %c0_13], %17 {strides = array<i32>} : memref<1x128xf32, #tpu.memory_space<vmem>>, vector<1x128xf32>,
    %c0_14 = arith.constant 0 : index
    %c0_15 = arith.constant 0 : index
    %19 = vector.load %arg7[%c0_14, %c0_15] : memref<1x128xf32, #tpu.memory_space<vmem>>, vector<1x128xf32>
    %20 = arith.mulf %10, %10 : vector<32x128xf32>
    %cst_16 = arith.constant dense<0.000000e+00> : vector<128xf32>
    %21 = vector.multi_reduction <add>, %20, %cst_16 [0] : vector<32x128xf32> to vector<128xf32>
    %22 = vector.shape_cast %21 : vector<128xf32> to vector<1x128xf32>
    %23 = arith.addf %19, %22 : vector<1x128xf32>
    %c0_17 = arith.constant 0 : index
    %c0_18 = arith.constant 0 : index
    %24 = vector.load %arg7[%c0_17, %c0_18] : memref<1x128xf32, #tpu.memory_space<vmem>>, vector<1x128xf32>
    tpu.vector_store %arg7[%c0_17, %c0_18], %23 {strides = array<i32>} : memref<1x128xf32, #tpu.memory_space<vmem>>, vector<1x128xf32>,
    %c0_19 = arith.constant 0 : index
    %c0_20 = arith.constant 0 : index
    %25 = vector.load %arg5[%c0_19, %c0_20] : memref<32x128xf32, #tpu.memory_space<vmem>>, vector<32x128xf32>
    tpu.vector_store %arg5[%c0_19, %c0_20], %10 {strides = array<i32>} : memref<32x128xf32, #tpu.memory_space<vmem>>, vector<32x128xf32>,
    return
  }
  func.func @transform_0(%arg0: i32) -> (i32, i32) {
    %c0_i32 = arith.constant 0 : i32
    %c0_i32_0 = arith.constant 0 : i32
    return %arg0, %c0_i32 : i32, i32
  }
  func.func @transform_1(%arg0: i32) -> (i32, i32) {
    %c0_i32 = arith.constant 0 : i32
    %c0_i32_0 = arith.constant 0 : i32
    %c0_i32_1 = arith.constant 0 : i32
    return %c0_i32, %c0_i32_0 : i32, i32
  }
  func.func @transform_2(%arg0: i32) -> (i32, i32) {
    %c0_i32 = arith.constant 0 : i32
    %c0_i32_0 = arith.constant 0 : i32
    %c0_i32_1 = arith.constant 0 : i32
    return %c0_i32, %c0_i32_0 : i32, i32
  }
  func.func @transform_3(%arg0: i32) -> (i32, i32) {
    %c0_i32 = arith.constant 0 : i32
    %c0_i32_0 = arith.constant 0 : i32
    %c0_i32_1 = arith.constant 0 : i32
    return %c0_i32, %c0_i32_0 : i32, i32
  }
  func.func @transform_4(%arg0: i32) -> (i32, i32) {
    %c0_i32 = arith.constant 0 : i32
    %c0_i32_0 = arith.constant 0 : i32
    return %arg0, %c0_i32 : i32, i32
  }
  func.func @transform_5(%arg0: i32) -> (i32, i32) {
    %c0_i32 = arith.constant 0 : i32
    %c0_i32_0 = arith.constant 0 : i32
    %c0_i32_1 = arith.constant 0 : i32
    return %c0_i32, %c0_i32_0 : i32, i32
  }
  func.func @transform_6(%arg0: i32) -> (i32, i32) {
    %c0_i32 = arith.constant 0 : i32
    %c0_i32_0 = arith.constant 0 : i32
    %c0_i32_1 = arith.constant 0 : i32
    return %c0_i32, %c0_i32_0 : i32, i32
  }
}

module attributes {stable_mosaic.version = 11 : i64} {
  func.func @kernel(%arg0: i32, %arg1: memref<128x288xf32, #tpu.memory_space<vmem>>, %arg2: memref<288x64xf32, #tpu.memory_space<vmem>>, %arg3: memref<1x288xf32, #tpu.memory_space<vmem>>, %arg4: memref<1x288xf32, #tpu.memory_space<vmem>>, %arg5: memref<128x64xf32, #tpu.memory_space<vmem>>, %arg6: memref<1x64xf32, #tpu.memory_space<vmem>>, %arg7: memref<1x64xf32, #tpu.memory_space<vmem>>) attributes {dimension_semantics = [#tpu.dimension_semantics<parallel>], iteration_bounds = array<i64: 1>, scalar_prefetch = 0 : i64, scratch_operands = 0 : i64, tpu.core_type = #tpu.core_type<tc>, window_params = [{transform_indices = @transform_0, window_bounds = array<i64: 128, 288>}, {pipeline_mode = #tpu.pipeline_mode<synchronous>, transform_indices = @transform_1, window_bounds = array<i64: 288, 64>}, {pipeline_mode = #tpu.pipeline_mode<synchronous>, transform_indices = @transform_2, window_bounds = array<i64: 1, 288>}, {pipeline_mode = #tpu.pipeline_mode<synchronous>, transform_indices = @transform_3, window_bounds = array<i64: 1, 288>}, {transform_indices = @transform_4, window_bounds = array<i64: 128, 64>}, {pipeline_mode = #tpu.pipeline_mode<synchronous>, transform_indices = @transform_5, window_bounds = array<i64: 1, 64>}, {pipeline_mode = #tpu.pipeline_mode<synchronous>, transform_indices = @transform_6, window_bounds = array<i64: 1, 64>}]} {
    %c0 = arith.constant 0 : index
    %c0_0 = arith.constant 0 : index
    %0 = vector.load %arg1[%c0, %c0_0] : memref<128x288xf32, #tpu.memory_space<vmem>>, vector<128x288xf32>
    %c0_1 = arith.constant 0 : index
    %c0_2 = arith.constant 0 : index
    %1 = vector.load %arg3[%c0_1, %c0_2] : memref<1x288xf32, #tpu.memory_space<vmem>>, vector<1x288xf32>
    %2 = vector.broadcast %1 : vector<1x288xf32> to vector<128x288xf32>
    %3 = arith.mulf %0, %2 : vector<128x288xf32>
    %c0_3 = arith.constant 0 : index
    %c0_4 = arith.constant 0 : index
    %4 = vector.load %arg4[%c0_3, %c0_4] : memref<1x288xf32, #tpu.memory_space<vmem>>, vector<1x288xf32>
    %5 = vector.broadcast %4 : vector<1x288xf32> to vector<128x288xf32>
    %6 = arith.addf %3, %5 : vector<128x288xf32>
    %cst = arith.constant 0.000000e+00 : f32
    %7 = vector.broadcast %cst : f32 to vector<128x288xf32>
    %8 = arith.maximumf %6, %7 : vector<128x288xf32>
    %c0_5 = arith.constant 0 : index
    %c0_6 = arith.constant 0 : index
    %9 = vector.load %arg2[%c0_5, %c0_6] : memref<288x64xf32, #tpu.memory_space<vmem>>, vector<288x64xf32>
    %cst_7 = arith.constant dense<0.000000e+00> : vector<128x64xf32>
    %10 = tpu.matmul %8, %9, %cst_7 {dimension_numbers = #tpu.dot_dimension_numbers<[1], [0], [0], [1], [0, 0, 1, 1], [], []>} : vector<128x288xf32>, vector<288x64xf32>, vector<128x64xf32> -> vector<128x64xf32>
    %c0_i32 = arith.constant 0 : i32
    %11 = arith.cmpi eq, %arg0, %c0_i32 : i32
    %12 = arith.extui %11 : i1 to i32
    %c0_i32_8 = arith.constant 0 : i32
    %13 = arith.cmpi ne, %12, %c0_i32_8 : i32
    scf.if %13 {
      %cst_21 = arith.constant 0.000000e+00 : f32
      %26 = vector.broadcast %cst_21 : f32 to vector<1x64xf32>
      %c0_22 = arith.constant 0 : index
      %c0_23 = arith.constant 0 : index
      %27 = vector.load %arg6[%c0_22, %c0_23] : memref<1x64xf32, #tpu.memory_space<vmem>>, vector<1x64xf32>
      tpu.vector_store %arg6[%c0_22, %c0_23], %26 {strides = array<i32>} : memref<1x64xf32, #tpu.memory_space<vmem>>, vector<1x64xf32>,
      %cst_24 = arith.constant 0.000000e+00 : f32
      %28 = vector.broadcast %cst_24 : f32 to vector<1x64xf32>
      %c0_25 = arith.constant 0 : index
      %c0_26 = arith.constant 0 : index
      %29 = vector.load %arg7[%c0_25, %c0_26] : memref<1x64xf32, #tpu.memory_space<vmem>>, vector<1x64xf32>
      tpu.vector_store %arg7[%c0_25, %c0_26], %28 {strides = array<i32>} : memref<1x64xf32, #tpu.memory_space<vmem>>, vector<1x64xf32>,
    } else {
    }
    %c0_9 = arith.constant 0 : index
    %c0_10 = arith.constant 0 : index
    %14 = vector.load %arg6[%c0_9, %c0_10] : memref<1x64xf32, #tpu.memory_space<vmem>>, vector<1x64xf32>
    %cst_11 = arith.constant dense<0.000000e+00> : vector<64xf32>
    %15 = vector.multi_reduction <add>, %10, %cst_11 [0] : vector<128x64xf32> to vector<64xf32>
    %16 = vector.shape_cast %15 : vector<64xf32> to vector<1x64xf32>
    %17 = arith.addf %14, %16 : vector<1x64xf32>
    %c0_12 = arith.constant 0 : index
    %c0_13 = arith.constant 0 : index
    %18 = vector.load %arg6[%c0_12, %c0_13] : memref<1x64xf32, #tpu.memory_space<vmem>>, vector<1x64xf32>
    tpu.vector_store %arg6[%c0_12, %c0_13], %17 {strides = array<i32>} : memref<1x64xf32, #tpu.memory_space<vmem>>, vector<1x64xf32>,
    %c0_14 = arith.constant 0 : index
    %c0_15 = arith.constant 0 : index
    %19 = vector.load %arg7[%c0_14, %c0_15] : memref<1x64xf32, #tpu.memory_space<vmem>>, vector<1x64xf32>
    %20 = arith.mulf %10, %10 : vector<128x64xf32>
    %cst_16 = arith.constant dense<0.000000e+00> : vector<64xf32>
    %21 = vector.multi_reduction <add>, %20, %cst_16 [0] : vector<128x64xf32> to vector<64xf32>
    %22 = vector.shape_cast %21 : vector<64xf32> to vector<1x64xf32>
    %23 = arith.addf %19, %22 : vector<1x64xf32>
    %c0_17 = arith.constant 0 : index
    %c0_18 = arith.constant 0 : index
    %24 = vector.load %arg7[%c0_17, %c0_18] : memref<1x64xf32, #tpu.memory_space<vmem>>, vector<1x64xf32>
    tpu.vector_store %arg7[%c0_17, %c0_18], %23 {strides = array<i32>} : memref<1x64xf32, #tpu.memory_space<vmem>>, vector<1x64xf32>,
    %c0_19 = arith.constant 0 : index
    %c0_20 = arith.constant 0 : index
    %25 = vector.load %arg5[%c0_19, %c0_20] : memref<128x64xf32, #tpu.memory_space<vmem>>, vector<128x64xf32>
    tpu.vector_store %arg5[%c0_19, %c0_20], %10 {strides = array<i32>} : memref<128x64xf32, #tpu.memory_space<vmem>>, vector<128x64xf32>,
    return
  }
  func.func @transform_0(%arg0: i32) -> (i32, i32) {
    %c0_i32 = arith.constant 0 : i32
    %c0_i32_0 = arith.constant 0 : i32
    return %arg0, %c0_i32 : i32, i32
  }
  func.func @transform_1(%arg0: i32) -> (i32, i32) {
    %c0_i32 = arith.constant 0 : i32
    %c0_i32_0 = arith.constant 0 : i32
    %c0_i32_1 = arith.constant 0 : i32
    return %c0_i32, %c0_i32_0 : i32, i32
  }
  func.func @transform_2(%arg0: i32) -> (i32, i32) {
    %c0_i32 = arith.constant 0 : i32
    %c0_i32_0 = arith.constant 0 : i32
    %c0_i32_1 = arith.constant 0 : i32
    return %c0_i32, %c0_i32_0 : i32, i32
  }
  func.func @transform_3(%arg0: i32) -> (i32, i32) {
    %c0_i32 = arith.constant 0 : i32
    %c0_i32_0 = arith.constant 0 : i32
    %c0_i32_1 = arith.constant 0 : i32
    return %c0_i32, %c0_i32_0 : i32, i32
  }
  func.func @transform_4(%arg0: i32) -> (i32, i32) {
    %c0_i32 = arith.constant 0 : i32
    %c0_i32_0 = arith.constant 0 : i32
    return %arg0, %c0_i32 : i32, i32
  }
  func.func @transform_5(%arg0: i32) -> (i32, i32) {
    %c0_i32 = arith.constant 0 : i32
    %c0_i32_0 = arith.constant 0 : i32
    %c0_i32_1 = arith.constant 0 : i32
    return %c0_i32, %c0_i32_0 : i32, i32
  }
  func.func @transform_6(%arg0: i32) -> (i32, i32) {
    %c0_i32 = arith.constant 0 : i32
    %c0_i32_0 = arith.constant 0 : i32
    %c0_i32_1 = arith.constant 0 : i32
    return %c0_i32, %c0_i32_0 : i32, i32
  }
}

module attributes {stable_mosaic.version = 11 : i64} {
  func.func @kernel(%arg0: i32, %arg1: memref<512x144xf32, #tpu.memory_space<vmem>>, %arg2: memref<144x32xf32, #tpu.memory_space<vmem>>, %arg3: memref<1x144xf32, #tpu.memory_space<vmem>>, %arg4: memref<1x144xf32, #tpu.memory_space<vmem>>, %arg5: memref<512x32xf32, #tpu.memory_space<vmem>>, %arg6: memref<1x32xf32, #tpu.memory_space<vmem>>, %arg7: memref<1x32xf32, #tpu.memory_space<vmem>>) attributes {dimension_semantics = [#tpu.dimension_semantics<parallel>], iteration_bounds = array<i64: 1>, scalar_prefetch = 0 : i64, scratch_operands = 0 : i64, tpu.core_type = #tpu.core_type<tc>, window_params = [{transform_indices = @transform_0, window_bounds = array<i64: 512, 144>}, {pipeline_mode = #tpu.pipeline_mode<synchronous>, transform_indices = @transform_1, window_bounds = array<i64: 144, 32>}, {pipeline_mode = #tpu.pipeline_mode<synchronous>, transform_indices = @transform_2, window_bounds = array<i64: 1, 144>}, {pipeline_mode = #tpu.pipeline_mode<synchronous>, transform_indices = @transform_3, window_bounds = array<i64: 1, 144>}, {transform_indices = @transform_4, window_bounds = array<i64: 512, 32>}, {pipeline_mode = #tpu.pipeline_mode<synchronous>, transform_indices = @transform_5, window_bounds = array<i64: 1, 32>}, {pipeline_mode = #tpu.pipeline_mode<synchronous>, transform_indices = @transform_6, window_bounds = array<i64: 1, 32>}]} {
    %c0 = arith.constant 0 : index
    %c0_0 = arith.constant 0 : index
    %0 = vector.load %arg1[%c0, %c0_0] : memref<512x144xf32, #tpu.memory_space<vmem>>, vector<512x144xf32>
    %c0_1 = arith.constant 0 : index
    %c0_2 = arith.constant 0 : index
    %1 = vector.load %arg3[%c0_1, %c0_2] : memref<1x144xf32, #tpu.memory_space<vmem>>, vector<1x144xf32>
    %2 = vector.broadcast %1 : vector<1x144xf32> to vector<512x144xf32>
    %3 = arith.mulf %0, %2 : vector<512x144xf32>
    %c0_3 = arith.constant 0 : index
    %c0_4 = arith.constant 0 : index
    %4 = vector.load %arg4[%c0_3, %c0_4] : memref<1x144xf32, #tpu.memory_space<vmem>>, vector<1x144xf32>
    %5 = vector.broadcast %4 : vector<1x144xf32> to vector<512x144xf32>
    %6 = arith.addf %3, %5 : vector<512x144xf32>
    %cst = arith.constant 0.000000e+00 : f32
    %7 = vector.broadcast %cst : f32 to vector<512x144xf32>
    %8 = arith.maximumf %6, %7 : vector<512x144xf32>
    %c0_5 = arith.constant 0 : index
    %c0_6 = arith.constant 0 : index
    %9 = vector.load %arg2[%c0_5, %c0_6] : memref<144x32xf32, #tpu.memory_space<vmem>>, vector<144x32xf32>
    %cst_7 = arith.constant dense<0.000000e+00> : vector<512x32xf32>
    %10 = tpu.matmul %8, %9, %cst_7 {dimension_numbers = #tpu.dot_dimension_numbers<[1], [0], [0], [1], [0, 0, 1, 1], [], []>} : vector<512x144xf32>, vector<144x32xf32>, vector<512x32xf32> -> vector<512x32xf32>
    %c0_i32 = arith.constant 0 : i32
    %11 = arith.cmpi eq, %arg0, %c0_i32 : i32
    %12 = arith.extui %11 : i1 to i32
    %c0_i32_8 = arith.constant 0 : i32
    %13 = arith.cmpi ne, %12, %c0_i32_8 : i32
    scf.if %13 {
      %cst_21 = arith.constant 0.000000e+00 : f32
      %26 = vector.broadcast %cst_21 : f32 to vector<1x32xf32>
      %c0_22 = arith.constant 0 : index
      %c0_23 = arith.constant 0 : index
      %27 = vector.load %arg6[%c0_22, %c0_23] : memref<1x32xf32, #tpu.memory_space<vmem>>, vector<1x32xf32>
      tpu.vector_store %arg6[%c0_22, %c0_23], %26 {strides = array<i32>} : memref<1x32xf32, #tpu.memory_space<vmem>>, vector<1x32xf32>,
      %cst_24 = arith.constant 0.000000e+00 : f32
      %28 = vector.broadcast %cst_24 : f32 to vector<1x32xf32>
      %c0_25 = arith.constant 0 : index
      %c0_26 = arith.constant 0 : index
      %29 = vector.load %arg7[%c0_25, %c0_26] : memref<1x32xf32, #tpu.memory_space<vmem>>, vector<1x32xf32>
      tpu.vector_store %arg7[%c0_25, %c0_26], %28 {strides = array<i32>} : memref<1x32xf32, #tpu.memory_space<vmem>>, vector<1x32xf32>,
    } else {
    }
    %c0_9 = arith.constant 0 : index
    %c0_10 = arith.constant 0 : index
    %14 = vector.load %arg6[%c0_9, %c0_10] : memref<1x32xf32, #tpu.memory_space<vmem>>, vector<1x32xf32>
    %cst_11 = arith.constant dense<0.000000e+00> : vector<32xf32>
    %15 = vector.multi_reduction <add>, %10, %cst_11 [0] : vector<512x32xf32> to vector<32xf32>
    %16 = vector.shape_cast %15 : vector<32xf32> to vector<1x32xf32>
    %17 = arith.addf %14, %16 : vector<1x32xf32>
    %c0_12 = arith.constant 0 : index
    %c0_13 = arith.constant 0 : index
    %18 = vector.load %arg6[%c0_12, %c0_13] : memref<1x32xf32, #tpu.memory_space<vmem>>, vector<1x32xf32>
    tpu.vector_store %arg6[%c0_12, %c0_13], %17 {strides = array<i32>} : memref<1x32xf32, #tpu.memory_space<vmem>>, vector<1x32xf32>,
    %c0_14 = arith.constant 0 : index
    %c0_15 = arith.constant 0 : index
    %19 = vector.load %arg7[%c0_14, %c0_15] : memref<1x32xf32, #tpu.memory_space<vmem>>, vector<1x32xf32>
    %20 = arith.mulf %10, %10 : vector<512x32xf32>
    %cst_16 = arith.constant dense<0.000000e+00> : vector<32xf32>
    %21 = vector.multi_reduction <add>, %20, %cst_16 [0] : vector<512x32xf32> to vector<32xf32>
    %22 = vector.shape_cast %21 : vector<32xf32> to vector<1x32xf32>
    %23 = arith.addf %19, %22 : vector<1x32xf32>
    %c0_17 = arith.constant 0 : index
    %c0_18 = arith.constant 0 : index
    %24 = vector.load %arg7[%c0_17, %c0_18] : memref<1x32xf32, #tpu.memory_space<vmem>>, vector<1x32xf32>
    tpu.vector_store %arg7[%c0_17, %c0_18], %23 {strides = array<i32>} : memref<1x32xf32, #tpu.memory_space<vmem>>, vector<1x32xf32>,
    %c0_19 = arith.constant 0 : index
    %c0_20 = arith.constant 0 : index
    %25 = vector.load %arg5[%c0_19, %c0_20] : memref<512x32xf32, #tpu.memory_space<vmem>>, vector<512x32xf32>
    tpu.vector_store %arg5[%c0_19, %c0_20], %10 {strides = array<i32>} : memref<512x32xf32, #tpu.memory_space<vmem>>, vector<512x32xf32>,
    return
  }
  func.func @transform_0(%arg0: i32) -> (i32, i32) {
    %c0_i32 = arith.constant 0 : i32
    %c0_i32_0 = arith.constant 0 : i32
    return %arg0, %c0_i32 : i32, i32
  }
  func.func @transform_1(%arg0: i32) -> (i32, i32) {
    %c0_i32 = arith.constant 0 : i32
    %c0_i32_0 = arith.constant 0 : i32
    %c0_i32_1 = arith.constant 0 : i32
    return %c0_i32, %c0_i32_0 : i32, i32
  }
  func.func @transform_2(%arg0: i32) -> (i32, i32) {
    %c0_i32 = arith.constant 0 : i32
    %c0_i32_0 = arith.constant 0 : i32
    %c0_i32_1 = arith.constant 0 : i32
    return %c0_i32, %c0_i32_0 : i32, i32
  }
  func.func @transform_3(%arg0: i32) -> (i32, i32) {
    %c0_i32 = arith.constant 0 : i32
    %c0_i32_0 = arith.constant 0 : i32
    %c0_i32_1 = arith.constant 0 : i32
    return %c0_i32, %c0_i32_0 : i32, i32
  }
  func.func @transform_4(%arg0: i32) -> (i32, i32) {
    %c0_i32 = arith.constant 0 : i32
    %c0_i32_0 = arith.constant 0 : i32
    return %arg0, %c0_i32 : i32, i32
  }
  func.func @transform_5(%arg0: i32) -> (i32, i32) {
    %c0_i32 = arith.constant 0 : i32
    %c0_i32_0 = arith.constant 0 : i32
    %c0_i32_1 = arith.constant 0 : i32
    return %c0_i32, %c0_i32_0 : i32, i32
  }
  func.func @transform_6(%arg0: i32) -> (i32, i32) {
    %c0_i32 = arith.constant 0 : i32
    %c0_i32_0 = arith.constant 0 : i32
    %c0_i32_1 = arith.constant 0 : i32
    return %c0_i32, %c0_i32_0 : i32, i32
  }
}

module attributes {stable_mosaic.version = 11 : i64} {
  func.func @kernel(%arg0: i32, %arg1: memref<512x72xf32, #tpu.memory_space<vmem>>, %arg2: memref<72x12xf32, #tpu.memory_space<vmem>>, %arg3: memref<1x72xf32, #tpu.memory_space<vmem>>, %arg4: memref<1x72xf32, #tpu.memory_space<vmem>>, %arg5: memref<512x12xf32, #tpu.memory_space<vmem>>) attributes {dimension_semantics = [#tpu.dimension_semantics<parallel>], iteration_bounds = array<i64: 4>, scalar_prefetch = 0 : i64, scratch_operands = 0 : i64, tpu.core_type = #tpu.core_type<tc>, window_params = [{transform_indices = @transform_0, window_bounds = array<i64: 512, 72>}, {pipeline_mode = #tpu.pipeline_mode<synchronous>, transform_indices = @transform_1, window_bounds = array<i64: 72, 12>}, {pipeline_mode = #tpu.pipeline_mode<synchronous>, transform_indices = @transform_2, window_bounds = array<i64: 1, 72>}, {pipeline_mode = #tpu.pipeline_mode<synchronous>, transform_indices = @transform_3, window_bounds = array<i64: 1, 72>}, {transform_indices = @transform_4, window_bounds = array<i64: 512, 12>}]} {
    %c0 = arith.constant 0 : index
    %c0_0 = arith.constant 0 : index
    %0 = vector.load %arg1[%c0, %c0_0] : memref<512x72xf32, #tpu.memory_space<vmem>>, vector<512x72xf32>
    %c0_1 = arith.constant 0 : index
    %c0_2 = arith.constant 0 : index
    %1 = vector.load %arg3[%c0_1, %c0_2] : memref<1x72xf32, #tpu.memory_space<vmem>>, vector<1x72xf32>
    %2 = vector.broadcast %1 : vector<1x72xf32> to vector<512x72xf32>
    %3 = arith.mulf %0, %2 : vector<512x72xf32>
    %c0_3 = arith.constant 0 : index
    %c0_4 = arith.constant 0 : index
    %4 = vector.load %arg4[%c0_3, %c0_4] : memref<1x72xf32, #tpu.memory_space<vmem>>, vector<1x72xf32>
    %5 = vector.broadcast %4 : vector<1x72xf32> to vector<512x72xf32>
    %6 = arith.addf %3, %5 : vector<512x72xf32>
    %cst = arith.constant 0.000000e+00 : f32
    %7 = vector.broadcast %cst : f32 to vector<512x72xf32>
    %8 = arith.maximumf %6, %7 : vector<512x72xf32>
    %c0_5 = arith.constant 0 : index
    %c0_6 = arith.constant 0 : index
    %9 = vector.load %arg2[%c0_5, %c0_6] : memref<72x12xf32, #tpu.memory_space<vmem>>, vector<72x12xf32>
    %cst_7 = arith.constant dense<0.000000e+00> : vector<512x12xf32>
    %10 = tpu.matmul %8, %9, %cst_7 {dimension_numbers = #tpu.dot_dimension_numbers<[1], [0], [0], [1], [0, 0, 1, 1], [], []>} : vector<512x72xf32>, vector<72x12xf32>, vector<512x12xf32> -> vector<512x12xf32>
    %11 = math.tanh %10 : vector<512x12xf32>
    %c0_8 = arith.constant 0 : index
    %c0_9 = arith.constant 0 : index
    %12 = vector.load %arg5[%c0_8, %c0_9] : memref<512x12xf32, #tpu.memory_space<vmem>>, vector<512x12xf32>
    tpu.vector_store %arg5[%c0_8, %c0_9], %11 {strides = array<i32>} : memref<512x12xf32, #tpu.memory_space<vmem>>, vector<512x12xf32>,
    return
  }
  func.func @transform_0(%arg0: i32) -> (i32, i32) {
    %c0_i32 = arith.constant 0 : i32
    %c0_i32_0 = arith.constant 0 : i32
    return %arg0, %c0_i32 : i32, i32
  }
  func.func @transform_1(%arg0: i32) -> (i32, i32) {
    %c0_i32 = arith.constant 0 : i32
    %c0_i32_0 = arith.constant 0 : i32
    %c0_i32_1 = arith.constant 0 : i32
    return %c0_i32, %c0_i32_0 : i32, i32
  }
  func.func @transform_2(%arg0: i32) -> (i32, i32) {
    %c0_i32 = arith.constant 0 : i32
    %c0_i32_0 = arith.constant 0 : i32
    %c0_i32_1 = arith.constant 0 : i32
    return %c0_i32, %c0_i32_0 : i32, i32
  }
  func.func @transform_3(%arg0: i32) -> (i32, i32) {
    %c0_i32 = arith.constant 0 : i32
    %c0_i32_0 = arith.constant 0 : i32
    %c0_i32_1 = arith.constant 0 : i32
    return %c0_i32, %c0_i32_0 : i32, i32
  }
  func.func @transform_4(%arg0: i32) -> (i32, i32) {
    %c0_i32 = arith.constant 0 : i32
    %c0_i32_0 = arith.constant 0 : i32
    return %arg0, %c0_i32 : i32, i32
  }
}

</mosaic_0001>

<bundles_post_ra>
// kernel: generator_forward.5
= control target key start
LH: loop header
LB: loop body
LE: loop exit
PB: predicated region body
PF: predicated region fallthrough
CT: control target
= control target key end

     0   :  { %10 = vsyncpa [#allocation3], 0  ;;  %s667_s15 = smov [#allocation2]   ;;  %s767_s0 = inlined_call_operand.vmem [shape: f32[8,32], index: 0, kind: input, shape index: {}]   ;;  %s768_s1 = inlined_call_operand.hbm [shape: f32[32,1024], index: 1, kind: input, shape index: {}]   ;;  %s769_s2 = inlined_call_operand.vmem [shape: f32[8,1024], index: 2, kind: output, shape index: {0}]   ;;  %s770_s3 = inlined_call_operand.vmem [shape: f32[1,1024], index: 3, kind: output, shape index: {1}]   ;;  %s771_s4 = inlined_call_operand.vmem [shape: f32[1,1024], index: 4, kind: output, shape index: {2}]  }
   0x1   :  { %s18_s16 = sshll.u32 %s667_s15, 4  ;;  %s643_s19 = scalar_lea.hbm %s768_s1, 4096  ;;  %s19_s16 = int_to_ptr.vmem [resolvable:$true] %s18_s16 }
   0x2   :  { %p644_p0 = scmp.ne.s32.totalorder %s768_s1, %s643_s19  ;;  %p647_p1 = scmp.lt.u32.totalorder %s643_s19, %s768_s1 }
   0x4   :  { %p649_p2 = pnand %p647_p1, %p644_p0 }
   0x6   :  { %652 = shalt.err (!%p649_p2)
}
   0x7   :  { %s653_s24 = scalar_lea.vmem %s19_s16, 4096  ;;  %p658_p4 = scmp.lt.s32.totalorder %s19_s16, %s19_s16 }
   0x8   :  { %p654_p3 = scmp.ne.s32.totalorder %s19_s16, %s653_s24  ;;  %p659_p5 = scmp.lt.s32.totalorder %s653_s24, %s653_s24 }
   0xa   :  { %p660_p6 = por %p659_p5, %p658_p4 }
   0xc   :  { %p661_p7 = pnand %p660_p6, %p654_p3 }
   0xe   :  { %664 = shalt.err (!%p661_p7)
}
   0xf   :  { %s668_s25 = smov 1024   ;;  %s669_s26 = smov 64  }
  0x10   :  { %24 = dma.hbm_to_vmem [thread:$0]  %s768_s1, 4096, %s19_s16, [#allocation3], %s668_s25, %s668_s25, %s669_s26  }
  0x11   :  { %665 = dma.done.wait [#allocation3], 4096  }
  0x12   :  { %666 = vsyncadd [#allocation3], 4294963200  ;;  %v670_v0 = vmov 0.0   ;;  %v30_v1 = vld [vmem:[#allocation2 + $0x8] sm:$0xff]  ;;  %v32_v3 = vld [vmem:[#allocation2 + $0x18] sm:$0xff]  ;;  %vm61_vm0 = vcmask 261120   ;;  %v419_v52 = vlaneseq }
  0x13   :  { %129 = vmatprep.mubr.f32.mxu0 %v670_v0  ;;  %200 = vmatprep.mubr.f32.mxu1 %v670_v0  ;;  %v38_v2 = vld [vmem:[#allocation2 + $0x48] sm:$0xff]  ;;  %v40_v5 = vld [vmem:[#allocation2 + $0x58] sm:$0xff]  ;;  %v29_v6 = vld [vmem:[#allocation2] sm:$0xff]  ;;  %v671_v50 = vmov 1966171168  }
  0x14   :  { %v606_v4 = vpack.c.bf16 %v38_v2, %v30_v1  ;;  %v37_v7 = vld [vmem:[#allocation2 + $0x40] sm:$0xff]  ;;  %v614_v8 = vpack.c.bf16 %v40_v5, %v32_v3  ;;  %v31_v10 = vld [vmem:[#allocation2 + $0x10] sm:$0xff]  ;;  %v46_v12 = vld [vmem:[#allocation2 + $0x88] sm:$0xff]  ;;  %v417_v51 = vunpack.c.l.s4 %v671_v50  ;;  %v420_v54 = vshrl.u32 %v419_v52, 7 }
  0x15   :  { %v608_v9 = vpack.c.bf16 %v37_v7, %v29_v6  ;;  %v39_v11 = vld [vmem:[#allocation2 + $0x50] sm:$0xff]  ;;  %v54_v14 = vld [vmem:[#allocation2 + $0xc8] sm:$0xff]  ;;  %v48_v15 = vld [vmem:[#allocation2 + $0x98] sm:$0xff] }
  0x16   :  { %607 = vmatprep.subr.bf16.mxu0 %v606_v4  ;;  %v616_v13 = vpack.c.bf16 %v39_v11, %v31_v10  ;;  %v56_v16 = vld [vmem:[#allocation2 + $0xd8] sm:$0xff]  ;;  %615 = vmatprep.subr.bf16.mxu1 %v614_v8  ;;  %v610_v17 = vpack.c.bf16 %v54_v14, %v46_v12  ;;  %v45_v19 = vld [vmem:[#allocation2 + $0x80] sm:$0xff]  ;;  %v47_v21 = vld [vmem:[#allocation2 + $0x90] sm:$0xff]  ;;  %v418_v53 = vunpack.c.0.s8 %v417_v51 }
  0x17   :  { %609 = vmatpush1.bf16.msra.mxu0 %v608_v9  ;;  %v618_v18 = vpack.c.bf16 %v56_v16, %v48_v15  ;;  %v53_v20 = vld [vmem:[#allocation2 + $0xc0] sm:$0xff]  ;;  %v55_v23 = vld [vmem:[#allocation2 + $0xd0] sm:$0xff]  ;;  %v34_v24 = vld [vmem:[#allocation2 + $0x28] sm:$0xff] }
  0x18   :  { %617 = vmatpush1.bf16.msra.mxu1 %v616_v13  ;;  %v612_v22 = vpack.c.bf16 %v53_v20, %v45_v19  ;;  %611 = vmatprep.subr.bf16.mxu0 %v610_v17  ;;  %v620_v25 = vpack.c.bf16 %v55_v23, %v47_v21  ;;  %v28_v26 = vld [vmem:[%s767_s0] sm:$0xff]  ;;  %v42_v27 = vld [vmem:[#allocation2 + $0x68] sm:$0xff]  ;;  %v36_v28 = vld [vmem:[#allocation2 + $0x38] sm:$0xff]  ;;  %v723_v60 = vsub.s32 %v418_v53, %v420_v54 }
  0x19   :  { %619 = vmatprep.subr.bf16.mxu1 %v618_v18  ;;  %v44_v29 = vld [vmem:[#allocation2 + $0x78] sm:$0xff]  ;;  %v622_v30 = vpack.c.bf16 %v42_v27, %v34_v24  ;;  %v33_v32 = vld [vmem:[#allocation2 + $0x20] sm:$0xff]  ;;  %v35_v34 = vld [vmem:[#allocation2 + $0x30] sm:$0xff] }
  0x1a   :  { %v630_v31 = vpack.c.bf16 %v44_v29, %v36_v28  ;;  %v41_v33 = vld [vmem:[#allocation2 + $0x60] sm:$0xff]  ;;  %v43_v36 = vld [vmem:[#allocation2 + $0x70] sm:$0xff]  ;;  %v50_v37 = vld [vmem:[#allocation2 + $0xa8] sm:$0xff] }
  0x1b   :  { %613 = vmatpush1.bf16.msra.mxu0 %v612_v22  ;;  %v624_v35 = vpack.c.bf16 %v41_v33, %v33_v32  ;;  %v58_v38 = vld [vmem:[#allocation2 + $0xe8] sm:$0xff]  ;;  %v632_v39 = vpack.c.bf16 %v43_v36, %v35_v34  ;;  %v52_v41 = vld [vmem:[#allocation2 + $0xb8] sm:$0xff]  ;;  %v49_v43 = vld [vmem:[#allocation2 + $0xa0] sm:$0xff] }
  0x1c   :  { %621 = vmatpush1.bf16.msra.mxu1 %v620_v25  ;;  %623 = vmatprep.subr.bf16.mxu0 %v622_v30  ;;  %v626_v40 = vpack.c.bf16 %v58_v38, %v50_v37  ;;  %v60_v42 = vld [vmem:[#allocation2 + $0xf8] sm:$0xff]  ;;  %v57_v45 = vld [vmem:[#allocation2 + $0xe0] sm:$0xff]  ;;  %v51_v46 = vld [vmem:[#allocation2 + $0xb0] sm:$0xff] }
  0x1d   :  { %631 = vmatprep.subr.bf16.mxu1 %v630_v31  ;;  %v634_v44 = vpack.c.bf16 %v60_v42, %v52_v41  ;;  %v59_v47 = vld [vmem:[#allocation2 + $0xf0] sm:$0xff]  ;;  %v628_v48 = vpack.c.bf16 %v57_v45, %v49_v43 }
  0x1e   :  { %602 = vmatmul.mubr.msk.f32.vlgmr.msra.gmra.mrb[0].mxu0 %vm61_vm0, %v28_v26  ;;  %v636_v49 = vpack.c.bf16 %v59_v47, %v51_v46 }
  0x1f   :  { %603 = vmatmul.mubr.msk.f32.vlgmr.msra.gmra.mrb[0].mxu1 %vm61_vm0, %v28_v26  ;;  %625 = vmatpush1.bf16.msra.mxu0 %v624_v35 }
  0x20   :  { %633 = vmatpush1.bf16.msra.mxu1 %v632_v39  ;;  %627 = vmatprep.subr.bf16.mxu0 %v626_v40 }
  0x21   :  { %635 = vmatprep.subr.bf16.mxu1 %v634_v44  ;;  %271 = vmatprep.mubr.f32.mxu0 %v670_v0 }
  0x22   :  { %342 = vmatprep.mubr.f32.mxu1 %v670_v0 }
  0x23   :  { %629 = vmatpush1.bf16.msra.mxu0 %v628_v48 }
  0x24   :  { %637 = vmatpush1.bf16.msra.mxu1 %v636_v49 }
  0x26   :  { %604 = vmatmul.mubr.msk.f32.vlgmr.msra.gmra.mrb[2].mxu0 %vm61_vm0, %v28_v26 }
  0x27   :  { %605 = vmatmul.mubr.msk.f32.vlgmr.msra.gmra.mrb[2].mxu1 %vm61_vm0, %v28_v26 }
  0xf1   :  { %v131_v55 = vpop.f32.mrb[0].mxu0 }
  0xf2   :  { %v356_v56 = vrot.slane %v131_v55, 4  ;;  %v465_v57 = vmul.f32 %v131_v55, %v131_v55  ;;  %581 = vst [vmem:[%s769_s2] sm:$0xff] %v131_v55  ;;  %v202_v58 = vpop.f32.mrb[0].mxu1  ;;  %v133_v59 = vpop.f32.mrb[1].mxu0 }
  0xf3   :  { %v368_v61 = vrot.slane %v202_v58, 4  ;;  %v467_v62 = vmul.f32 %v202_v58, %v202_v58  ;;  %583 = vst [vmem:[%s769_s2 + $0x10] sm:$0xff] %v202_v58  ;;  %v362_v63 = vrot.slane %v133_v59, 4  ;;  %v466_v0 = vmul.f32 %v133_v59, %v133_v59  ;;  %582 = vst [vmem:[%s769_s2 + $0x8] sm:$0xff] %v133_v59  ;;  %v204_v1 = vpop.f32.mrb[1].mxu1 }
  0xf4   :  { %v357_v2 = vadd.f32 %v356_v56, %v131_v55  ;;  %v473_v3 = vrot.slane %v465_v57, 4  ;;  %v374_v4 = vrot.slane %v204_v1, 4  ;;  %v468_v5 = vmul.f32 %v204_v1, %v204_v1  ;;  %584 = vst [vmem:[%s769_s2 + $0x18] sm:$0xff] %v204_v1 }
  0xf5   :  { %v369_v6 = vadd.f32 %v368_v61, %v202_v58  ;;  %v485_v7 = vrot.slane %v467_v62, 4  ;;  %v363_v8 = vadd.f32 %v362_v63, %v133_v59  ;;  %v479_v9 = vrot.slane %v466_v0, 4 }
  0xf6   :  { %v358_v10 = vrot.slane %v357_v2, 2  ;;  %v474_v11 = vadd.f32 %v473_v3, %v465_v57  ;;  %v375_v12 = vadd.f32 %v374_v4, %v204_v1  ;;  %v491_v13 = vrot.slane %v468_v5, 4 }
  0xf7   :  { %v370_v14 = vrot.slane %v369_v6, 2  ;;  %v486_v15 = vadd.f32 %v485_v7, %v467_v62  ;;  %v364_v16 = vrot.slane %v363_v8, 2  ;;  %v480_v17 = vadd.f32 %v479_v9, %v466_v0 }
  0xf8   :  { %v359_v18 = vadd.f32 %v358_v10, %v357_v2  ;;  %v475_v19 = vrot.slane %v474_v11, 2  ;;  %v376_v20 = vrot.slane %v375_v12, 2  ;;  %v492_v21 = vadd.f32 %v491_v13, %v468_v5 }
  0xf9   :  { %v371_v22 = vadd.f32 %v370_v14, %v369_v6  ;;  %v487_v23 = vrot.slane %v486_v15, 2  ;;  %v365_v24 = vadd.f32 %v364_v16, %v363_v8  ;;  %v481_v25 = vrot.slane %v480_v17, 2  ;;  %v273_v26 = vpop.f32.mrb[2].mxu0 }
  0xfa   :  { %v360_v27 = vrot.slane %v359_v18, 1  ;;  %v476_v28 = vadd.f32 %v475_v19, %v474_v11  ;;  %v377_v29 = vadd.f32 %v376_v20, %v375_v12  ;;  %v493_v30 = vrot.slane %v492_v21, 2  ;;  %585 = vst [vmem:[%s769_s2 + $0x20] sm:$0xff] %v273_v26  ;;  %v344_v31 = vpop.f32.mrb[2].mxu1  ;;  %v275_v32 = vpop.f32.mrb[3].mxu0 }
  0xfb   :  { %v372_v33 = vrot.slane %v371_v22, 1  ;;  %v488_v34 = vadd.f32 %v487_v23, %v486_v15  ;;  %v366_v35 = vrot.slane %v365_v24, 1  ;;  %v482_v36 = vadd.f32 %v481_v25, %v480_v17  ;;  %587 = vst [vmem:[%s769_s2 + $0x30] sm:$0xff] %v344_v31  ;;  %586 = vst [vmem:[%s769_s2 + $0x28] sm:$0xff] %v275_v32  ;;  %v346_v37 = vpop.f32.mrb[3].mxu1 }
  0xfc   :  { %v361_v38 = vadd.f32 %v360_v27, %v359_v18  ;;  %v477_v39 = vrot.slane %v476_v28, 1  ;;  %v378_v40 = vrot.slane %v377_v29, 1  ;;  %v494_v41 = vadd.f32 %v493_v30, %v492_v21  ;;  %588 = vst [vmem:[%s769_s2 + $0x38] sm:$0xff] %v346_v37 }
  0xfd   :  { %v373_v42 = vadd.f32 %v372_v33, %v371_v22  ;;  %v489_v43 = vrot.slane %v488_v34, 1  ;;  %v367_v44 = vadd.f32 %v366_v35, %v365_v24  ;;  %v483_v45 = vrot.slane %v482_v36, 1 }
  0xfe   :  { %v478_v46 = vadd.f32 %v477_v39, %v476_v28  ;;  %v379_v47 = vadd.f32 %v378_v40, %v377_v29  ;;  %v495_v48 = vrot.slane %v494_v41, 1  ;;  %v380_v49 = vrot.slane %v273_v26, 4 }
  0xff   :  { %v490_v50 = vadd.f32 %v489_v43, %v488_v34  ;;  %v412_v51 = vcombine.low %v361_v38, %v367_v44  ;;  %v484_v52 = vadd.f32 %v483_v45, %v482_v36  ;;  %v469_v53 = vmul.f32 %v273_v26, %v273_v26 }
 0x100   :  { %v413_v54 = vcombine.low %v373_v42, %v379_v47  ;;  %v496_v55 = vadd.f32 %v495_v48, %v494_v41  ;;  %v381_v56 = vadd.f32 %v380_v49, %v273_v26  ;;  %v392_v57 = vrot.slane %v344_v31, 4 }
 0x101   :  { %v747_v58 = vrot.slane %v412_v51, %v723_v60  ;;  %v529_v59 = vcombine.low %v478_v46, %v484_v52  ;;  %v497_v61 = vrot.slane %v469_v53, 4  ;;  %v471_v62 = vmul.f32 %v344_v31, %v344_v31 }
 0x102   :  { %v429_v63 = vrot.slane %v413_v54, %v723_v60  ;;  %v530_v0 = vcombine.low %v490_v50, %v496_v55  ;;  %v382_v1 = vrot.slane %v381_v56, 2  ;;  %v393_v2 = vadd.f32 %v392_v57, %v344_v31 }
 0x103   :  { %v539_v3 = vrot.slane %v529_v59, %v723_v60  ;;  %v498_v4 = vadd.f32 %v497_v61, %v469_v53  ;;  %v509_v5 = vrot.slane %v471_v62, 4  ;;  %v386_v6 = vrot.slane %v275_v32, 4 }
 0x104   :  { %v444_v7 = vcombine.low %v747_v58, %v429_v63  ;;  %v546_v8 = vrot.slane %v530_v0, %v723_v60  ;;  %v383_v9 = vadd.f32 %v382_v1, %v381_v56  ;;  %v394_v10 = vrot.slane %v393_v2, 2 }
 0x105   :  { %v499_v11 = vrot.slane %v498_v4, 2  ;;  %v510_v12 = vadd.f32 %v509_v5, %v471_v62  ;;  %v387_v13 = vadd.f32 %v386_v6, %v275_v32  ;;  %v470_v14 = vmul.f32 %v275_v32, %v275_v32 }
 0x106   :  { %v561_v15 = vcombine.low %v539_v3, %v546_v8  ;;  %v384_v16 = vrot.slane %v383_v9, 1  ;;  %v395_v20 = vadd.f32 %v394_v10, %v393_v2  ;;  %v398_v22 = vrot.slane %v346_v37, 4 }
 0x107   :  { %v500_v17 = vadd.f32 %v499_v11, %v498_v4  ;;  %v388_v18 = vrot.slane %v387_v13, 2  ;;  %v503_v19 = vrot.slane %v470_v14, 4  ;;  %v511_v21 = vrot.slane %v510_v12, 2 }
 0x108   :  { %v399_v25 = vadd.f32 %v398_v22, %v346_v37  ;;  %v472_v26 = vmul.f32 %v346_v37, %v346_v37  ;;  %v385_v27 = vadd.f32 %v384_v16, %v383_v9  ;;  %v396_v31 = vrot.slane %v395_v20, 1 }
 0x109   :  { %v389_v23 = vadd.f32 %v388_v18, %v387_v13  ;;  %v504_v24 = vadd.f32 %v503_v19, %v470_v14  ;;  %v501_v28 = vrot.slane %v500_v17, 1  ;;  %v512_v33 = vadd.f32 %v511_v21, %v510_v12 }
 0x10a   :  { %v400_v34 = vrot.slane %v399_v25, 2  ;;  %v515_v32 = vrot.slane %v472_v26, 4  ;;  %v397_v43 = vadd.f32 %v396_v31, %v395_v20  ;;  %v452_v59 = vrot.slane %v444_v7, %v723_v60 }
 0x10b   :  { %v390_v29 = vrot.slane %v389_v23, 1  ;;  %v505_v30 = vrot.slane %v504_v24, 2  ;;  %v502_v40 = vadd.f32 %v501_v28, %v500_v17  ;;  %v513_v44 = vrot.slane %v512_v33, 1 }
 0x10c   :  { %v401_v38 = vadd.f32 %v400_v34, %v399_v25  ;;  %v516_v39 = vadd.f32 %v515_v32, %v472_v26  ;;  %v569_v1 = vrot.slane %v561_v15, %v723_v60 }
 0x10d   :  { %v391_v35 = vadd.f32 %v390_v29, %v389_v23  ;;  %v506_v36 = vadd.f32 %v505_v30, %v504_v24  ;;  %v514_v50 = vadd.f32 %v513_v44, %v512_v33 }
 0x10e   :  { %v402_v45 = vrot.slane %v401_v38, 1  ;;  %v517_v46 = vrot.slane %v516_v39, 2 }
 0x10f   :  { %v414_v41 = vcombine.low %v385_v27, %v391_v35  ;;  %v507_v42 = vrot.slane %v506_v36, 1 }
 0x110   :  { %v403_v47 = vadd.f32 %v402_v45, %v401_v38  ;;  %v518_v48 = vadd.f32 %v517_v46, %v516_v39 }
 0x111   :  { %v508_v37 = vadd.f32 %v507_v42, %v506_v36  ;;  %v436_v51 = vrot.slane %v414_v41, %v723_v60 }
 0x112   :  { %v415_v52 = vcombine.low %v397_v43, %v403_v47  ;;  %v519_v53 = vrot.slane %v518_v48, 1 }
 0x113   :  { %v531_v49 = vcombine.low %v502_v40, %v508_v37 }
 0x114   :  { %v443_v54 = vrot.slane %v415_v52, %v723_v60  ;;  %v520_v55 = vadd.f32 %v519_v53, %v518_v48 }
 0x115   :  { %v553_v56 = vrot.slane %v531_v49, %v723_v60 }
 0x116   :  { %v445_v57 = vcombine.low %v436_v51, %v443_v54  ;;  %v532_v58 = vcombine.low %v514_v50, %v520_v55 }
 0x118   :  { %v459_v61 = vrot.slane %v445_v57, %v723_v60  ;;  %v560_v62 = vrot.slane %v532_v58, %v723_v60 }
 0x11a   :  { %v460_v63 = vcombine.low %v452_v59, %v459_v61  ;;  %v562_v0 = vcombine.low %v553_v56, %v560_v62 }
 0x11c   :  { %v576_v2 = vrot.slane %v562_v0, %v723_v60  ;;  %463 = vst [vmem:[%s770_s3] sm:$0xff] %v460_v63 }
 0x11e   :  { %v577_v3 = vcombine.low %v569_v1, %v576_v2 }
 0x120   :  { %580 = vst [vmem:[%s771_s4] sm:$0xff] %v577_v3 }
 0x121   :  { %601 = vsyncpa [#allocation3], 1 }

// kernel: generator_forward.6
= control target key start
LH: loop header
LB: loop body
LE: loop exit
PB: predicated region body
PF: predicated region fallthrough
CT: control target
= control target key end

     0   :  { %12 = vsyncpa [#allocation3], 0  ;;  %s801_s21 = smov [#allocation2]   ;;  %s1029_s0 = inlined_call_operand.vmem [shape: f32[32,576], index: 0, kind: input, shape index: {}]   ;;  %s1030_s1 = inlined_call_operand.hbm [shape: f32[576,128], index: 1, kind: input, shape index: {}]   ;;  %s1031_s2 = inlined_call_operand.vmem [shape: f32[1,576], index: 2, kind: input, shape index: {}]   ;;  %s1032_s3 = inlined_call_operand.vmem [shape: f32[1,576], index: 3, kind: input, shape index: {}]   ;;  %s1033_s4 = inlined_call_operand.vmem [shape: f32[32,128], index: 4, kind: output, shape index: {0}]   ;;  %s1034_s5 = inlined_call_operand.vmem [shape: f32[1,128], index: 5, kind: output, shape index: {1}]   ;;  %s1035_s6 = inlined_call_operand.vmem [shape: f32[1,128], index: 6, kind: output, shape index: {2}]  }
   0x1   :  { %s20_s22 = sshll.u32 %s801_s21, 4  ;;  %s777_s25 = scalar_lea.hbm %s1030_s1, 9216  ;;  %s21_s22 = int_to_ptr.vmem [resolvable:$true] %s20_s22 }
   0x2   :  { %p778_p0 = scmp.ne.s32.totalorder %s1030_s1, %s777_s25  ;;  %p781_p1 = scmp.lt.u32.totalorder %s777_s25, %s1030_s1 }
   0x4   :  { %p783_p2 = pnand %p781_p1, %p778_p0 }
   0x6   :  { %786 = shalt.err (!%p783_p2)
}
   0x7   :  { %s787_s30 = scalar_lea.vmem %s21_s22, 9216  ;;  %p792_p4 = scmp.lt.s32.totalorder %s21_s22, %s21_s22 }
   0x8   :  { %p788_p3 = scmp.ne.s32.totalorder %s21_s22, %s787_s30  ;;  %p793_p5 = scmp.lt.s32.totalorder %s787_s30, %s787_s30 }
   0xa   :  { %p794_p6 = por %p793_p5, %p792_p4 }
   0xc   :  { %p795_p7 = pnand %p794_p6, %p788_p3 }
   0xe   :  { %798 = shalt.err (!%p795_p7)
}
   0xf   :  { %s802_s7 = smov 128   ;;  %s803_s8 = smov 8  }
  0x10   :  { %26 = dma.hbm_to_vmem [thread:$0]  %s1030_s1, 9216, %s21_s22, [#allocation3], %s802_s7, %s802_s7, %s803_s8  }
  0x11   :  { %799 = dma.done.wait [#allocation3], 9216  }
  0x12   :  { %800 = vsyncadd [#allocation3], 4294958080  ;;  %v184_v0 = vld [vmem:[#allocation2 + $0x80] sm:$0xff]  ;;  %v185_v1 = vld [vmem:[#allocation2 + $0x88] sm:$0xff]  ;;  %v56_v47 = vlaneseq  ;;  %vm240_vm0 = vcmask 523264  }
  0x13   :  { %v216_v2 = vld [vmem:[#allocation2 + $0x180] sm:$0xff]  ;;  %v685_v3 = vpack.c.bf16 %v185_v1, %v184_v0  ;;  %v217_v4 = vld [vmem:[#allocation2 + $0x188] sm:$0xff]  ;;  %v186_v11 = vld [vmem:[#allocation2 + $0x90] sm:$0xff] }
  0x14   :  { %v168_v5 = vld [vmem:[#allocation2] sm:$0xff]  ;;  %v169_v6 = vld [vmem:[#allocation2 + $0x8] sm:$0xff]  ;;  %v717_v7 = vpack.c.bf16 %v217_v4, %v216_v2  ;;  %v187_v13 = vld [vmem:[#allocation2 + $0x98] sm:$0xff]  ;;  %v852_v61 = vshrl.u32 %v56_v47, 7 }
  0x15   :  { %v687_v8 = vpack.c.bf16 %v169_v6, %v168_v5  ;;  %v200_v9 = vld [vmem:[#allocation2 + $0x100] sm:$0xff]  ;;  %v201_v10 = vld [vmem:[#allocation2 + $0x108] sm:$0xff]  ;;  %686 = vmatprep.subr.bf16.mxu0 %v685_v3  ;;  %v218_v14 = vld [vmem:[#allocation2 + $0x190] sm:$0xff]  ;;  %v689_v16 = vpack.c.bf16 %v187_v13, %v186_v11 }
  0x16   :  { %v719_v12 = vpack.c.bf16 %v201_v10, %v200_v9  ;;  %v219_v15 = vld [vmem:[#allocation2 + $0x198] sm:$0xff]  ;;  %718 = vmatprep.subr.bf16.mxu1 %v717_v7  ;;  %v170_v18 = vld [vmem:[#allocation2 + $0x10] sm:$0xff]  ;;  %v188_v23 = vld [vmem:[#allocation2 + $0xa0] sm:$0xff] }
  0x17   :  { %688 = vmatpush3.bf16.msra.mxu0 %v687_v8  ;;  %v721_v17 = vpack.c.bf16 %v219_v15, %v218_v14  ;;  %v171_v19 = vld [vmem:[#allocation2 + $0x18] sm:$0xff]  ;;  %v202_v20 = vld [vmem:[#allocation2 + $0x110] sm:$0xff]  ;;  %v189_v24 = vld [vmem:[#allocation2 + $0xa8] sm:$0xff]  ;;  %v62_v14 = vsub.s32 1, %v852_v61  ;;  %v70_v15 = vsub.s32 3, %v852_v61 }
  0x18   :  { %720 = vmatpush3.bf16.msra.mxu1 %v719_v12  ;;  %v691_v21 = vpack.c.bf16 %v171_v19, %v170_v18  ;;  %v203_v22 = vld [vmem:[#allocation2 + $0x118] sm:$0xff]  ;;  %690 = vmatprep.subr.bf16.mxu0 %v689_v16  ;;  %v693_v26 = vpack.c.bf16 %v189_v24, %v188_v23  ;;  %v220_v27 = vld [vmem:[#allocation2 + $0x1a0] sm:$0xff]  ;;  %v221_v28 = vld [vmem:[#allocation2 + $0x1a8] sm:$0xff]  ;;  %v58_v16 = vsub.s32 0, %v852_v61  ;;  %v66_v19 = vsub.s32 2, %v852_v61 }
  0x19   :  { %722 = vmatprep.subr.bf16.mxu1 %v721_v17  ;;  %v723_v25 = vpack.c.bf16 %v203_v22, %v202_v20  ;;  %v172_v29 = vld [vmem:[#allocation2 + $0x20] sm:$0xff]  ;;  %v725_v30 = vpack.c.bf16 %v221_v28, %v220_v27  ;;  %v173_v31 = vld [vmem:[#allocation2 + $0x28] sm:$0xff]  ;;  %v190_v35 = vld [vmem:[#allocation2 + $0xb0] sm:$0xff] }
  0x1a   :  { %v204_v32 = vld [vmem:[#allocation2 + $0x120] sm:$0xff]  ;;  %v205_v33 = vld [vmem:[#allocation2 + $0x128] sm:$0xff]  ;;  %v695_v34 = vpack.c.bf16 %v173_v31, %v172_v29  ;;  %v191_v36 = vld [vmem:[#allocation2 + $0xb8] sm:$0xff] }
  0x1b   :  { %692 = vmatpush3.bf16.msra.mxu0 %v691_v21  ;;  %v222_v37 = vld [vmem:[#allocation2 + $0x1b0] sm:$0xff]  ;;  %v727_v38 = vpack.c.bf16 %v205_v33, %v204_v32  ;;  %v697_v39 = vpack.c.bf16 %v191_v36, %v190_v35  ;;  %v223_v40 = vld [vmem:[#allocation2 + $0x1b8] sm:$0xff]  ;;  %v192_v46 = vld [vmem:[#allocation2 + $0xc0] sm:$0xff] }
  0x1c   :  { %724 = vmatpush3.bf16.msra.mxu1 %v723_v25  ;;  %694 = vmatprep.subr.bf16.mxu0 %v693_v26  ;;  %v174_v41 = vld [vmem:[#allocation2 + $0x30] sm:$0xff]  ;;  %v175_v42 = vld [vmem:[#allocation2 + $0x38] sm:$0xff]  ;;  %v729_v43 = vpack.c.bf16 %v223_v40, %v222_v37  ;;  %v193_v48 = vld [vmem:[#allocation2 + $0xc8] sm:$0xff] }
  0x1d   :  { %726 = vmatprep.subr.bf16.mxu1 %v725_v30  ;;  %v206_v44 = vld [vmem:[#allocation2 + $0x130] sm:$0xff]  ;;  %v207_v45 = vld [vmem:[#allocation2 + $0x138] sm:$0xff]  ;;  %v224_v49 = vld [vmem:[#allocation2 + $0x1c0] sm:$0xff]  ;;  %v699_v51 = vpack.c.bf16 %v175_v42, %v174_v41  ;;  %v701_v53 = vpack.c.bf16 %v193_v48, %v192_v46 }
  0x1e   :  { %v225_v50 = vld [vmem:[#allocation2 + $0x1c8] sm:$0xff]  ;;  %v731_v52 = vpack.c.bf16 %v207_v45, %v206_v44  ;;  %v176_v54 = vld [vmem:[#allocation2 + $0x40] sm:$0xff]  ;;  %v194_v59 = vld [vmem:[#allocation2 + $0xd0] sm:$0xff] }
  0x1f   :  { %696 = vmatpush3.bf16.msra.mxu0 %v695_v34  ;;  %v177_v55 = vld [vmem:[#allocation2 + $0x48] sm:$0xff]  ;;  %v208_v56 = vld [vmem:[#allocation2 + $0x140] sm:$0xff]  ;;  %v733_v57 = vpack.c.bf16 %v225_v50, %v224_v49  ;;  %v195_v60 = vld [vmem:[#allocation2 + $0xd8] sm:$0xff] }
  0x20   :  { %728 = vmatpush3.bf16.msra.mxu1 %v727_v38  ;;  %698 = vmatprep.subr.bf16.mxu0 %v697_v39  ;;  %v209_v58 = vld [vmem:[#allocation2 + $0x148] sm:$0xff]  ;;  %v226_v62 = vld [vmem:[#allocation2 + $0x1d0] sm:$0xff]  ;;  %v227_v63 = vld [vmem:[#allocation2 + $0x1d8] sm:$0xff]  ;;  %v703_v1 = vpack.c.bf16 %v177_v55, %v176_v54  ;;  %v705_v6 = vpack.c.bf16 %v195_v60, %v194_v59 }
  0x21   :  { %730 = vmatprep.subr.bf16.mxu1 %v729_v43  ;;  %v178_v0 = vld [vmem:[#allocation2 + $0x50] sm:$0xff]  ;;  %v179_v2 = vld [vmem:[#allocation2 + $0x58] sm:$0xff]  ;;  %v735_v5 = vpack.c.bf16 %v209_v58, %v208_v56  ;;  %v196_v7 = vld [vmem:[#allocation2 + $0xe0] sm:$0xff]  ;;  %v737_v10 = vpack.c.bf16 %v227_v63, %v226_v62 }
  0x22   :  { %v210_v3 = vld [vmem:[#allocation2 + $0x150] sm:$0xff]  ;;  %v211_v4 = vld [vmem:[#allocation2 + $0x158] sm:$0xff]  ;;  %v197_v8 = vld [vmem:[#allocation2 + $0xe8] sm:$0xff]  ;;  %v707_v20 = vpack.c.bf16 %v179_v2, %v178_v0 }
  0x23   :  { %700 = vmatpush3.bf16.msra.mxu0 %v699_v51  ;;  %v228_v9 = vld [vmem:[#allocation2 + $0x1e0] sm:$0xff]  ;;  %v229_v11 = vld [vmem:[#allocation2 + $0x1e8] sm:$0xff]  ;;  %v739_v21 = vpack.c.bf16 %v211_v4, %v210_v3  ;;  %v198_v22 = vld [vmem:[#allocation2 + $0xf0] sm:$0xff]  ;;  %v709_v24 = vpack.c.bf16 %v197_v8, %v196_v7 }
  0x24   :  { %732 = vmatpush3.bf16.msra.mxu1 %v731_v52  ;;  %702 = vmatprep.subr.bf16.mxu0 %v701_v53  ;;  %v854_v12 = vld [vmem:[#allocation2 + $0x60] sm:$0xff]  ;;  %v856_v13 = vld [vmem:[#allocation2 + $0x68] sm:$0xff]  ;;  %v199_v23 = vld [vmem:[#allocation2 + $0xf8] sm:$0xff]  ;;  %v741_v25 = vpack.c.bf16 %v229_v11, %v228_v9 }
  0x25   :  { %734 = vmatprep.subr.bf16.mxu1 %v733_v57  ;;  %v861_v17 = vld [vmem:[#allocation2 + $0x160] sm:$0xff]  ;;  %v863_v18 = vld [vmem:[#allocation2 + $0x168] sm:$0xff]  ;;  %v711_v26 = vpack.c.bf16 %v856_v13, %v854_v12  ;;  %v230_v27 = vld [vmem:[#allocation2 + $0x1f0] sm:$0xff]  ;;  %v713_v52 = vpack.c.bf16 %v199_v23, %v198_v22 }
  0x26   :  { %v231_v28 = vld [vmem:[#allocation2 + $0x1f8] sm:$0xff]  ;;  %v35_v29 = vld [vmem:[%s1029_s0 + $0x8] sm:$0xff]  ;;  %v874_v30 = vld [vmem:[%s1031_s2] sm:$0x1f]  ;;  %v743_v31 = vpack.c.bf16 %v863_v18, %v861_v17 }
  0x27   :  { %704 = vmatpush3.bf16.msra.mxu0 %v703_v1  ;;  %v879_v32 = vrot.slane %v874_v30, %v62_v14  ;;  %v884_v33 = vld [vmem:[%s1032_s3] sm:$0x1f]  ;;  %v37_v34 = vld [vmem:[%s1029_s0 + $0x18] sm:$0xff]  ;;  %v890_v35 = vrot.slane %v874_v30, %v70_v15  ;;  %v896_v37 = vrot.slane %v874_v30, %v58_v16  ;;  %v182_v38 = vld [vmem:[#allocation2 + $0x70] sm:$0xff]  ;;  %v911_v44 = vrot.slane %v874_v30, %v66_v19 }
  0x28   :  { %736 = vmatpush3.bf16.msra.mxu1 %v735_v5  ;;  %706 = vmatprep.subr.bf16.mxu0 %v705_v6  ;;  %v34_v36 = vld [vmem:[%s1029_s0] sm:$0xff]  ;;  %v183_v39 = vld [vmem:[#allocation2 + $0x78] sm:$0xff]  ;;  %v899_v40 = vrot.slane %v884_v33, %v62_v14  ;;  %v902_v41 = vrot.slane %v884_v33, %v70_v15  ;;  %v905_v42 = vrot.slane %v884_v33, %v58_v16  ;;  %v36_v43 = vld [vmem:[%s1029_s0 + $0x10] sm:$0xff] }
  0x29   :  { %738 = vmatprep.subr.bf16.mxu1 %v737_v10  ;;  %v82_v45 = vmul.f32 %v879_v32, %v35_v29  ;;  %v84_v46 = vmul.f32 %v890_v35, %v37_v34  ;;  %v81_v47 = vmul.f32 %v896_v37, %v34_v36  ;;  %v917_v48 = vrot.slane %v884_v33, %v66_v19  ;;  %v40_v49 = vld [vmem:[%s1029_s0 + $0x30] sm:$0xff]  ;;  %v42_v50 = vld [vmem:[%s1029_s0 + $0x40] sm:$0xff]  ;;  %v39_v51 = vld [vmem:[%s1029_s0 + $0x28] sm:$0xff] }
  0x2a   :  { %v214_v53 = vld [vmem:[#allocation2 + $0x170] sm:$0xff]  ;;  %v83_v54 = vmul.f32 %v911_v44, %v36_v43  ;;  %v87_v55 = vmul.f32 %v879_v32, %v40_v49  ;;  %v41_v56 = vld [vmem:[%s1029_s0 + $0x38] sm:$0xff]  ;;  %v745_v57 = vpack.c.bf16 %v231_v28, %v230_v27  ;;  %v232_v62 = vld [vmem:[#allocation2 + $0x200] sm:$0xff]  ;;  %v89_v0 = vmul.f32 %v890_v35, %v42_v50 }
  0x2b   :  { %708 = vmatpush3.bf16.msra.mxu0 %v707_v20  ;;  %v215_v58 = vld [vmem:[#allocation2 + $0x178] sm:$0xff]  ;;  %v129_v59 = vadd.f32 %v899_v40, %v82_v45  ;;  %v131_v60 = vadd.f32 %v902_v41, %v84_v46  ;;  %v233_v63 = vld [vmem:[#allocation2 + $0x208] sm:$0xff]  ;;  %v715_v1 = vpack.c.bf16 %v183_v39, %v182_v38  ;;  %v128_v2 = vadd.f32 %v905_v42, %v81_v47  ;;  %v44_v10 = vld [vmem:[%s1029_s0 + $0x50] sm:$0xff] }
  0x2c   :  { %740 = vmatpush3.bf16.msra.mxu1 %v739_v21  ;;  %710 = vmatprep.subr.bf16.mxu0 %v709_v24  ;;  %v86_v3 = vmul.f32 %v896_v37, %v39_v51  ;;  %v45_v4 = vld [vmem:[%s1029_s0 + $0x58] sm:$0xff]  ;;  %v47_v5 = vld [vmem:[%s1029_s0 + $0x68] sm:$0xff]  ;;  %v130_v8 = vadd.f32 %v917_v48, %v83_v54  ;;  %v88_v9 = vmul.f32 %v911_v44, %v41_v56  ;;  %v46_v14 = vld [vmem:[%s1029_s0 + $0x60] sm:$0xff]  ;;  %v74_v29 = vsub.s32 4, %v852_v61 }
  0x2d   :  { %742 = vmatprep.subr.bf16.mxu1 %v741_v25  ;;  %v149_v6 = vmax.f32 %v129_v59, 0.0  ;;  %v151_v7 = vmax.f32 %v131_v60, 0.0  ;;  %v747_v11 = vpack.c.bf16 %v215_v58, %v214_v53  ;;  %v749_v12 = vpack.c.bf16 %v233_v63, %v232_v62  ;;  %v50_v18 = vld [vmem:[%s1029_s0 + $0x80] sm:$0xff]  ;;  %v234_v21 = vld [vmem:[#allocation2 + $0x210] sm:$0xff]  ;;  %v235_v22 = vld [vmem:[#allocation2 + $0x218] sm:$0xff] }
  0x2e   :  { %v134_v13 = vadd.f32 %v899_v40, %v87_v55  ;;  %v136_v15 = vadd.f32 %v902_v41, %v89_v0  ;;  %v92_v16 = vmul.f32 %v879_v32, %v45_v4  ;;  %v94_v17 = vmul.f32 %v890_v35, %v47_v5  ;;  %v52_v24 = vld [vmem:[%s1029_s0 + $0x90] sm:$0xff]  ;;  %v49_v28 = vld [vmem:[%s1029_s0 + $0x78] sm:$0xff]  ;;  %v51_v38 = vld [vmem:[%s1029_s0 + $0x88] sm:$0xff] }
  0x2f   :  { %712 = vmatpush3.bf16.msra.mxu0 %v711_v26  ;;  %317 = vmatprep.mubr.f32.mxu0 %v149_v6  ;;  %v148_v19 = vmax.f32 %v128_v2, 0.0  ;;  %v133_v20 = vadd.f32 %v905_v42, %v86_v3  ;;  %v91_v23 = vmul.f32 %v896_v37, %v44_v10  ;;  %v150_v25 = vmax.f32 %v130_v8, 0.0  ;;  %v236_v46 = vld [vmem:[#allocation2 + $0x220] sm:$0xff]  ;;  %v237_v47 = vld [vmem:[#allocation2 + $0x228] sm:$0xff]  ;;  %v53_v60 = vld [vmem:[%s1029_s0 + $0x98] sm:$0xff] }
  0x30   :  { %744 = vmatpush3.bf16.msra.mxu1 %v743_v31  ;;  %714 = vmatprep.subr.bf16.mxu0 %v713_v52  ;;  %v135_v26 = vadd.f32 %v917_v48, %v88_v9  ;;  %v93_v27 = vmul.f32 %v911_v44, %v46_v14  ;;  %v154_v31 = vmax.f32 %v134_v13, 0.0  ;;  %v139_v34 = vadd.f32 %v899_v40, %v92_v16  ;;  %v48_v52 = vld [vmem:[%s1029_s0 + $0x70] sm:$0xff] }
  0x31   :  { %746 = vmatprep.subr.bf16.mxu1 %v745_v57  ;;  %402 = vmatprep.mubr.f32.mxu1 %v151_v7  ;;  %v97_v36 = vmul.f32 %v879_v32, %v50_v18  ;;  %v156_v39 = vmax.f32 %v136_v15, 0.0  ;;  %v753_v43 = vpack.c.bf16 %v235_v22, %v234_v21  ;;  %v141_v45 = vadd.f32 %v902_v41, %v94_v17  ;;  %v38_v32 = vld [vmem:[%s1029_s0 + $0x20] sm:$0xff]  ;;  %v238_v2 = vld [vmem:[#allocation2 + $0x230] sm:$0xff] }
  0x32   :  { %v99_v61 = vmul.f32 %v890_v35, %v52_v24  ;;  %v153_v49 = vmax.f32 %v133_v20, 0.0  ;;  %v138_v50 = vadd.f32 %v905_v42, %v91_v23  ;;  %v96_v51 = vmul.f32 %v896_v37, %v49_v28  ;;  %v43_v37 = vld [vmem:[%s1029_s0 + $0x48] sm:$0xff] }
  0x33   :  { %716 = vmatpush3.bf16.msra.mxu0 %v715_v1  ;;  %v155_v53 = vmax.f32 %v135_v26, 0.0  ;;  %v140_v54 = vadd.f32 %v917_v48, %v93_v27  ;;  %v98_v35 = vmul.f32 %v911_v44, %v51_v38  ;;  %v75_v55 = vrot.slane %v874_v30, %v74_v29 }
  0x34   :  { %748 = vmatpush3.bf16.msra.mxu1 %v747_v11  ;;  %750 = vmatprep.subr.bf16.mxu0 %v749_v12  ;;  %v159_v56 = vmax.f32 %v139_v34, 0.0  ;;  %v757_v57 = vpack.c.bf16 %v237_v47, %v236_v46  ;;  %v144_v58 = vadd.f32 %v899_v40, %v97_v36  ;;  %v122_v59 = vrot.slane %v884_v33, %v74_v29  ;;  %v239_v40 = vld [vmem:[#allocation2 + $0x238] sm:$0xff] }
  0x35   :  { %765 = vmatprep.subr.bf16.mxu1 %v749_v12  ;;  %v161_v44 = vmax.f32 %v141_v45, 0.0  ;;  %v146_v30 = vadd.f32 %v902_v41, %v99_v61  ;;  %v85_v62 = vmul.f32 %v75_v55, %v38_v32  ;;  %v95_v63 = vmul.f32 %v75_v55, %v48_v52 }
  0x36   :  { %318 = vmatmul.mubr.f32.vlgmr.msra.gmra.mrb[0].mxu0 %v148_v19  ;;  %v158_v0 = vmax.f32 %v138_v50, 0.0  ;;  %v143_v1 = vadd.f32 %v905_v42, %v96_v51  ;;  %v90_v3 = vmul.f32 %v75_v55, %v43_v37  ;;  %v160_v33 = vmax.f32 %v140_v54, 0.0 }
  0x37   :  { %403 = vmatmul.mubr.f32.vlgmr.msra.gmra.mrb[0].mxu1 %v150_v25  ;;  %752 = vmatpush3.bf16.msra.mxu0 %v749_v12  ;;  %v145_v4 = vadd.f32 %v917_v48, %v98_v35  ;;  %v100_v5 = vmul.f32 %v75_v55, %v53_v60  ;;  %v164_v6 = vmax.f32 %v144_v58, 0.0  ;;  %v132_v41 = vadd.f32 %v122_v59, %v85_v62 }
  0x38   :  { %769 = vmatpush3.bf16.msra.mxu1 %v749_v12  ;;  %322 = vmatprep.mubr.f32.mxu0 %v154_v31  ;;  %v166_v7 = vmax.f32 %v146_v30, 0.0  ;;  %v761_v8 = vpack.c.bf16 %v239_v40, %v238_v2  ;;  %v142_v9 = vadd.f32 %v122_v59, %v95_v63  ;;  %v163_v42 = vmax.f32 %v143_v1, 0.0 }
  0x39   :  { %407 = vmatprep.mubr.f32.mxu1 %v156_v39  ;;  %754 = vmatprep.subr.bf16.mxu0 %v753_v43  ;;  %v137_v10 = vadd.f32 %v122_v59, %v90_v3  ;;  %v165_v11 = vmax.f32 %v145_v4, 0.0  ;;  %v147_v12 = vadd.f32 %v122_v59, %v100_v5  ;;  %v152_v48 = vmax.f32 %v132_v41, 0.0 }
  0x3a   :  { %323 = vmatmul.mubr.f32.gmra.mrb[2].mxu0 %v153_v49  ;;  %766 = vmatprep.subr.bf16.mxu1 %v753_v43  ;;  %v162_v13 = vmax.f32 %v142_v9, 0.0  ;;  %v804_v16 = vmov 0.0  }
  0x3b   :  { %408 = vmatmul.mubr.f32.gmra.mrb[2].mxu1 %v155_v53  ;;  %756 = vmatpush3.bf16.msra.mxu0 %v753_v43  ;;  %v157_v14 = vmax.f32 %v137_v10, 0.0  ;;  %v167_v15 = vmax.f32 %v147_v12, 0.0  ;;  %512 = vst [vmem:[%s1034_s5] sm:$0x1] %v804_v16  ;;  %513 = vst [vmem:[%s1035_s6] sm:$0x1] %v804_v16 }
  0x3c   :  { %770 = vmatpush3.bf16.msra.mxu1 %v753_v43  ;;  %327 = vmatprep.mubr.f32.mxu0 %v159_v56 }
  0x3d   :  { %412 = vmatprep.mubr.f32.mxu1 %v161_v44  ;;  %758 = vmatprep.subr.bf16.mxu0 %v757_v57 }
  0x3e   :  { %328 = vmatmul.mubr.f32.gmra.mrb[4].mxu0 %v158_v0  ;;  %767 = vmatprep.subr.bf16.mxu1 %v757_v57 }
  0x3f   :  { %413 = vmatmul.mubr.f32.gmra.mrb[4].mxu1 %v160_v33  ;;  %760 = vmatpush3.bf16.msra.mxu0 %v757_v57 }
  0x40   :  { %771 = vmatpush3.bf16.msra.mxu1 %v757_v57  ;;  %332 = vmatprep.mubr.f32.mxu0 %v164_v6 }
  0x41   :  { %417 = vmatprep.mubr.f32.mxu1 %v166_v7  ;;  %762 = vmatprep.subr.bf16.mxu0 %v761_v8 }
  0x42   :  { %333 = vmatmul.mubr.f32.gmra.mrb[6].mxu0 %v163_v42  ;;  %768 = vmatprep.subr.bf16.mxu1 %v761_v8  ;;  %v514_v42 = vld [vmem:[%s1034_s5] sm:$0x1] }
  0x43   :  { %418 = vmatmul.mubr.f32.gmra.mrb[6].mxu1 %v165_v11  ;;  %764 = vmatpush3.bf16.msra.mxu0 %v761_v8  ;;  %v526_v12 = vld [vmem:[%s1035_s6] sm:$0x1] }
  0x44   :  { %772 = vmatpush3.bf16.msra.mxu1 %v761_v8  ;;  %679 = vmatprep.mubr.msk.f32.mxu0 %vm240_vm0, %v152_v48 }
  0x45   :  { %682 = vmatprep.mubr.msk.f32.mxu1 %vm240_vm0, %v162_v13 }
  0x46   :  { %680 = vmatmul.mubr.msk.f32.vlgmr.msra.gmra.mrb[8].mxu0 %vm240_vm0, %v157_v14 }
  0x47   :  { %683 = vmatmul.mubr.msk.f32.vlgmr.msra.gmra.mrb[8].mxu1 %vm240_vm0, %v167_v15 }
 0x109   :  { %v595_v17 = vpop.f32.mrb[0].mxu0 }
 0x10a   :  { %v639_v18 = vpop.f32.mrb[0].mxu1  ;;  %v596_v19 = vpop.f32.mrb[1].mxu0 }
 0x10b   :  { %v597_v20 = vadd.f32 %v596_v19, %v595_v17  ;;  %v640_v21 = vpop.f32.mrb[1].mxu1 }
 0x10c   :  { %v641_v22 = vadd.f32 %v640_v21, %v639_v18 }
 0x10d   :  { %v598_v23 = vpop.f32.mrb[2].mxu0 }
 0x10e   :  { %v642_v24 = vpop.f32.mrb[2].mxu1  ;;  %v599_v25 = vpop.f32.mrb[3].mxu0  ;;  %v405_v26 = vadd.f32 %v641_v22, %v597_v20 }
 0x10f   :  { %v600_v27 = vadd.f32 %v599_v25, %v598_v23  ;;  %v643_v28 = vpop.f32.mrb[3].mxu1 }
 0x110   :  { %v644_v29 = vadd.f32 %v643_v28, %v642_v24 }
 0x111   :  { %v601_v31 = vpop.f32.mrb[4].mxu0 }
 0x112   :  { %v645_v34 = vpop.f32.mrb[4].mxu1  ;;  %v602_v36 = vpop.f32.mrb[5].mxu0  ;;  %v410_v38 = vadd.f32 %v644_v29, %v600_v27 }
 0x113   :  { %v603_v39 = vadd.f32 %v602_v36, %v601_v31  ;;  %v646_v43 = vpop.f32.mrb[5].mxu1 }
 0x114   :  { %v647_v45 = vadd.f32 %v646_v43, %v645_v34 }
 0x115   :  { %v604_v46 = vpop.f32.mrb[6].mxu0 }
 0x116   :  { %v648_v47 = vpop.f32.mrb[6].mxu1  ;;  %v605_v61 = vpop.f32.mrb[7].mxu0  ;;  %v415_v49 = vadd.f32 %v647_v45, %v603_v39 }
 0x117   :  { %v606_v50 = vadd.f32 %v605_v61, %v604_v46  ;;  %v649_v51 = vpop.f32.mrb[7].mxu1 }
 0x118   :  { %v650_v32 = vadd.f32 %v649_v51, %v648_v47 }
 0x119   :  { %v681_v52 = vpop.f32.mrb[8].mxu0 }
 0x11a   :  { %v495_v53 = vadd.f32 %v681_v52, %v410_v38  ;;  %v420_v54 = vadd.f32 %v650_v32, %v606_v50  ;;  %v684_v35 = vpop.f32.mrb[8].mxu1  ;;  %v489_v55 = vpop.f32.mrb[9].mxu0 }
 0x11b   :  { %v490_v37 = vadd.f32 %v489_v55, %v405_v26  ;;  %v499_v56 = vpop.f32.mrb[9].mxu1 }
 0x11c   :  { %v528_v57 = vmul.f32 %v495_v53, %v495_v53  ;;  %543 = vst [vmem:[%s1033_s4 + $0x8] sm:$0xff] %v495_v53  ;;  %v505_v58 = vadd.f32 %v684_v35, %v420_v54  ;;  %v500_v59 = vadd.f32 %v499_v56, %v415_v49 }
 0x11d   :  { %v515_v60 = vadd.f32 %v495_v53, %v490_v37  ;;  %v527_v44 = vmul.f32 %v490_v37, %v490_v37  ;;  %542 = vst [vmem:[%s1033_s4] sm:$0xff] %v490_v37 }
 0x11e   :  { %545 = vst [vmem:[%s1033_s4 + $0x18] sm:$0xff] %v505_v58  ;;  %544 = vst [vmem:[%s1033_s4 + $0x10] sm:$0xff] %v500_v59  ;;  %v529_v63 = vmul.f32 %v500_v59, %v500_v59  ;;  %v530_v0 = vmul.f32 %v505_v58, %v505_v58 }
 0x11f   :  { %v531_v30 = vadd.f32 %v528_v57, %v527_v44  ;;  %v516_v62 = vadd.f32 %v515_v60, %v500_v59 }
 0x121   :  { %v517_v1 = vadd.f32 %v516_v62, %v505_v58  ;;  %v532_v2 = vadd.f32 %v531_v30, %v529_v63 }
 0x123   :  { %v518_v40 = vrot.slane %v517_v1, 4  ;;  %v533_v3 = vadd.f32 %v532_v2, %v530_v0 }
 0x125   :  { %v519_v33 = vadd.f32 %v518_v40, %v517_v1  ;;  %v534_v4 = vrot.slane %v533_v3, 4 }
 0x127   :  { %v520_v5 = vrot.slane %v519_v33, 2  ;;  %v535_v6 = vadd.f32 %v534_v4, %v533_v3 }
 0x129   :  { %v521_v41 = vadd.f32 %v520_v5, %v519_v33  ;;  %v536_v7 = vrot.slane %v535_v6, 2 }
 0x12b   :  { %v522_v8 = vrot.slane %v521_v41, 1  ;;  %v537_v9 = vadd.f32 %v536_v7, %v535_v6 }
 0x12d   :  { %v523_v10 = vadd.f32 %v522_v8, %v521_v41  ;;  %v538_v11 = vrot.slane %v537_v9, 1 }
 0x12f   :  { %v524_v48 = vadd.f32 %v523_v10, %v514_v42  ;;  %v539_v13 = vadd.f32 %v538_v11, %v537_v9 }
 0x131   :  { %525 = vst [vmem:[%s1034_s5] sm:$0x1] %v524_v48  ;;  %v540_v14 = vadd.f32 %v539_v13, %v526_v12 }
 0x133   :  { %541 = vst [vmem:[%s1035_s6] sm:$0x1] %v540_v14 }
 0x134   :  { %558 = vsyncpa [#allocation3], 1 }

// kernel: generator_forward.7
= control target key start
LH: loop header
LB: loop body
LE: loop exit
PB: predicated region body
PF: predicated region fallthrough
CT: control target
= control target key end

     0   :  { %v70_v3 = vlaneseq  ;;  %vm282_vm0 = vcmask 261120   ;;  %vm625_vm1 = vcmask 516096   ;;  %vm629_vm2 = vcmask 523264   ;;  %s1522_s1 = inlined_call_operand.vmem [shape: f32[288,64], index: 1, kind: input, shape index: {}]   ;;  %s1523_s0 = inlined_call_operand.vmem [shape: f32[128,288], index: 0, kind: input, shape index: {}]   ;;  %s1524_s2 = inlined_call_operand.vmem [shape: f32[1,288], index: 2, kind: input, shape index: {}]   ;;  %s1525_s3 = inlined_call_operand.vmem [shape: f32[1,288], index: 3, kind: input, shape index: {}]   ;;  %s1526_s5 = inlined_call_operand.vmem [shape: f32[1,64], index: 5, kind: output, shape index: {1}]   ;;  %s1527_s6 = inlined_call_operand.vmem [shape: f32[1,64], index: 6, kind: output, shape index: {2}]   ;;  %s1528_s4 = inlined_call_operand.vmem [shape: f32[128,64], index: 4, kind: output, shape index: {0}]  }
   0x1   :  { %v262_v0 = vld [vmem:[%s1522_s1 + $0x80] sm:$0xff]  ;;  %v263_v1 = vld [vmem:[%s1522_s1 + $0x88] sm:$0xff]  ;;  %v264_v6 = vld [vmem:[%s1522_s1 + $0x90] sm:$0xff] }
   0x2   :  { %v246_v2 = vld [vmem:[%s1522_s1] sm:$0xff]  ;;  %v902_v4 = vpack.c.bf16 %v263_v1, %v262_v0  ;;  %v247_v5 = vld [vmem:[%s1522_s1 + $0x8] sm:$0xff]  ;;  %v265_v7 = vld [vmem:[%s1522_s1 + $0x98] sm:$0xff]  ;;  %v1025_v15 = vshrl.u32 %v70_v3, 7 }
   0x3   :  { %v904_v8 = vpack.c.bf16 %v247_v5, %v246_v2  ;;  %v906_v9 = vpack.c.bf16 %v265_v7, %v264_v6  ;;  %v248_v10 = vld [vmem:[%s1522_s1 + $0x10] sm:$0xff]  ;;  %v249_v11 = vld [vmem:[%s1522_s1 + $0x18] sm:$0xff]  ;;  %v266_v12 = vld [vmem:[%s1522_s1 + $0xa0] sm:$0xff] }
   0x4   :  { %903 = vmatprep.subr.bf16.mxu0 %v902_v4  ;;  %942 = vmatprep.subr.bf16.mxu1 %v902_v4  ;;  %v267_v13 = vld [vmem:[%s1522_s1 + $0xa8] sm:$0xff]  ;;  %v908_v14 = vpack.c.bf16 %v249_v11, %v248_v10  ;;  %v250_v17 = vld [vmem:[%s1522_s1 + $0x20] sm:$0xff]  ;;  %v268_v19 = vld [vmem:[%s1522_s1 + $0xb0] sm:$0xff]  ;;  %v76_v22 = vsub.s32 1, %v1025_v15  ;;  %v72_v42 = vsub.s32 0, %v1025_v15 }
   0x5   :  { %905 = vmatpush3.bf16.msra.mxu0 %v904_v8  ;;  %950 = vmatpush3.bf16.msra.mxu1 %v904_v8  ;;  %v910_v16 = vpack.c.bf16 %v267_v13, %v266_v12  ;;  %v251_v18 = vld [vmem:[%s1522_s1 + $0x28] sm:$0xff]  ;;  %v269_v20 = vld [vmem:[%s1522_s1 + $0xb8] sm:$0xff]  ;;  %v252_v24 = vld [vmem:[%s1522_s1 + $0x30] sm:$0xff] }
   0x6   :  { %907 = vmatprep.subr.bf16.mxu0 %v906_v9  ;;  %943 = vmatprep.subr.bf16.mxu1 %v906_v9  ;;  %v912_v21 = vpack.c.bf16 %v251_v18, %v250_v17  ;;  %v914_v23 = vpack.c.bf16 %v269_v20, %v268_v19  ;;  %v253_v25 = vld [vmem:[%s1522_s1 + $0x38] sm:$0xff]  ;;  %v270_v26 = vld [vmem:[%s1522_s1 + $0xc0] sm:$0xff]  ;;  %v271_v27 = vld [vmem:[%s1522_s1 + $0xc8] sm:$0xff] }
   0x7   :  { %v21_v28 = vld [vmem:[%s1523_s0 + $0x8] sm:$0xff]  ;;  %v1058_v29 = vld [vmem:[%s1524_s2] sm:$0x7]  ;;  %v916_v32 = vpack.c.bf16 %v253_v25, %v252_v24  ;;  %v918_v35 = vpack.c.bf16 %v271_v27, %v270_v26  ;;  %v272_v38 = vld [vmem:[%s1522_s1 + $0xd0] sm:$0xff] }
   0x8   :  { %v1063_v30 = vld [vmem:[%s1525_s3] sm:$0x7]  ;;  %v57_v31 = vld [vmem:[%s1523_s0 + $0x128] sm:$0xff]  ;;  %v1069_v33 = vrot.slane %v1058_v29, %v76_v22  ;;  %v273_v39 = vld [vmem:[%s1522_s1 + $0xd8] sm:$0xff]  ;;  %v1104_v53 = vrot.slane %v1058_v29, %v72_v42 }
   0x9   :  { %909 = vmatpush3.bf16.msra.mxu0 %v908_v14  ;;  %951 = vmatpush3.bf16.msra.mxu1 %v908_v14  ;;  %v1072_v34 = vrot.slane %v1063_v30, %v76_v22  ;;  %v254_v36 = vld [vmem:[%s1522_s1 + $0x40] sm:$0xff]  ;;  %v255_v37 = vld [vmem:[%s1522_s1 + $0x48] sm:$0xff]  ;;  %v922_v46 = vpack.c.bf16 %v273_v39, %v272_v38  ;;  %v256_v47 = vld [vmem:[%s1522_s1 + $0x50] sm:$0xff]  ;;  %v1136_v3 = vrot.slane %v1063_v30, %v72_v42  ;;  %v80_v14 = vsub.s32 2, %v1025_v15 }
   0xa   :  { %911 = vmatprep.subr.bf16.mxu0 %v910_v16  ;;  %944 = vmatprep.subr.bf16.mxu1 %v910_v16  ;;  %v86_v40 = vmul.f32 %v1069_v33, %v21_v28  ;;  %v122_v41 = vmul.f32 %v1069_v33, %v57_v31  ;;  %v920_v43 = vpack.c.bf16 %v255_v37, %v254_v36  ;;  %v257_v48 = vld [vmem:[%s1522_s1 + $0x58] sm:$0xff]  ;;  %v274_v49 = vld [vmem:[%s1522_s1 + $0xe0] sm:$0xff]  ;;  %v275_v50 = vld [vmem:[%s1522_s1 + $0xe8] sm:$0xff] }
   0xb   :  { %v24_v54 = vld [vmem:[%s1523_s0 + $0x20] sm:$0xff]  ;;  %v924_v55 = vpack.c.bf16 %v257_v48, %v256_v47  ;;  %v926_v58 = vpack.c.bf16 %v275_v50, %v274_v49  ;;  %v259_v60 = vld [vmem:[%s1522_s1 + $0x68] sm:$0xff]  ;;  %v276_v62 = vld [vmem:[%s1522_s1 + $0xf0] sm:$0xff] }
   0xc   :  { %v151_v44 = vadd.f32 %v1072_v34, %v86_v40  ;;  %v187_v45 = vadd.f32 %v1072_v34, %v122_v41  ;;  %v20_v56 = vld [vmem:[%s1523_s0] sm:$0xff]  ;;  %v277_v63 = vld [vmem:[%s1522_s1 + $0xf8] sm:$0xff]  ;;  %v89_v0 = vmul.f32 %v1069_v33, %v24_v54  ;;  %v260_v6 = vld [vmem:[%s1522_s1 + $0x70] sm:$0xff] }
   0xd   :  { %913 = vmatpush3.bf16.msra.mxu0 %v912_v21  ;;  %952 = vmatpush3.bf16.msra.mxu1 %v912_v21  ;;  %v56_v57 = vld [vmem:[%s1523_s0 + $0x120] sm:$0xff]  ;;  %v23_v1 = vld [vmem:[%s1523_s0 + $0x18] sm:$0xff]  ;;  %v85_v2 = vmul.f32 %v1104_v53, %v20_v56  ;;  %v930_v10 = vpack.c.bf16 %v277_v63, %v276_v62  ;;  %v279_v18 = vld [vmem:[%s1522_s1 + $0x108] sm:$0xff] }
   0xe   :  { %915 = vmatprep.subr.bf16.mxu0 %v914_v23  ;;  %945 = vmatprep.subr.bf16.mxu1 %v914_v23  ;;  %v199_v51 = vmax.f32 %v151_v44, 0.0  ;;  %v235_v52 = vmax.f32 %v187_v45, 0.0  ;;  %v258_v59 = vld [vmem:[%s1522_s1 + $0x60] sm:$0xff]  ;;  %v121_v4 = vmul.f32 %v1104_v53, %v56_v57  ;;  %v261_v7 = vld [vmem:[%s1522_s1 + $0x78] sm:$0xff]  ;;  %v88_v11 = vmul.f32 %v1104_v53, %v23_v1  ;;  %v26_v15 = vld [vmem:[%s1523_s0 + $0x30] sm:$0xff] }
   0xf   :  { %v60_v61 = vld [vmem:[%s1523_s0 + $0x140] sm:$0xff]  ;;  %v928_v5 = vpack.c.bf16 %v259_v60, %v258_v59  ;;  %v59_v9 = vld [vmem:[%s1523_s0 + $0x138] sm:$0xff]  ;;  %v154_v16 = vadd.f32 %v1072_v34, %v89_v0  ;;  %v932_v19 = vpack.c.bf16 %v261_v7, %v260_v6  ;;  %v150_v20 = vadd.f32 %v1136_v3, %v85_v2  ;;  %v62_v23 = vld [vmem:[%s1523_s0 + $0x150] sm:$0xff] }
  0x10   :  { %395 = vmatprep.mubr.f32.mxu0 %v199_v51  ;;  %455 = vmatprep.mubr.f32.mxu1 %v235_v52  ;;  %v125_v8 = vmul.f32 %v1069_v33, %v60_v61  ;;  %v27_v12 = vld [vmem:[%s1523_s0 + $0x38] sm:$0xff]  ;;  %v278_v17 = vld [vmem:[%s1522_s1 + $0x100] sm:$0xff]  ;;  %v186_v21 = vadd.f32 %v1136_v3, %v121_v4  ;;  %v124_v22 = vmul.f32 %v1104_v53, %v59_v9  ;;  %v30_v27 = vld [vmem:[%s1523_s0 + $0x50] sm:$0xff] }
  0x11   :  { %917 = vmatpush3.bf16.msra.mxu0 %v916_v32  ;;  %953 = vmatpush3.bf16.msra.mxu1 %v916_v32  ;;  %v63_v13 = vld [vmem:[%s1523_s0 + $0x158] sm:$0xff]  ;;  %v92_v25 = vmul.f32 %v1069_v33, %v27_v12  ;;  %v153_v28 = vadd.f32 %v1136_v3, %v88_v11  ;;  %v934_v31 = vpack.c.bf16 %v279_v18, %v278_v17  ;;  %v66_v32 = vld [vmem:[%s1523_s0 + $0x170] sm:$0xff]  ;;  %v202_v36 = vmax.f32 %v154_v16, 0.0  ;;  %v65_v49 = vld [vmem:[%s1523_s0 + $0x168] sm:$0xff] }
  0x12   :  { %919 = vmatprep.subr.bf16.mxu0 %v918_v35  ;;  %946 = vmatprep.subr.bf16.mxu1 %v918_v35  ;;  %v190_v24 = vadd.f32 %v1072_v34, %v125_v8  ;;  %v128_v26 = vmul.f32 %v1069_v33, %v63_v13  ;;  %v1184_v35 = vrot.slane %v1058_v29, %v80_v14  ;;  %v198_v39 = vmax.f32 %v150_v20, 0.0  ;;  %v280_v29 = vld [vmem:[%s1522_s1 + $0x110] sm:$0xff]  ;;  %v281_v44 = vld [vmem:[%s1522_s1 + $0x118] sm:$0xff]  ;;  %v33_v50 = vld [vmem:[%s1523_s0 + $0x68] sm:$0xff] }
  0x13   :  { %v91_v37 = vmul.f32 %v1104_v53, %v26_v15  ;;  %v127_v38 = vmul.f32 %v1104_v53, %v62_v23  ;;  %v234_v40 = vmax.f32 %v186_v21, 0.0  ;;  %v189_v41 = vadd.f32 %v1136_v3, %v124_v22  ;;  %v22_v54 = vld [vmem:[%s1523_s0 + $0x10] sm:$0xff]  ;;  %v32_v62 = vld [vmem:[%s1523_s0 + $0x60] sm:$0xff]  ;;  %v25_v4 = vld [vmem:[%s1523_s0 + $0x28] sm:$0xff] }
  0x14   :  { %v95_v42 = vmul.f32 %v1069_v33, %v30_v27  ;;  %v238_v45 = vmax.f32 %v190_v24, 0.0  ;;  %v193_v47 = vadd.f32 %v1072_v34, %v128_v26  ;;  %v131_v48 = vmul.f32 %v1069_v33, %v66_v32  ;;  %v28_v6 = vld [vmem:[%s1523_s0 + $0x40] sm:$0xff]  ;;  %v35_v16 = vld [vmem:[%s1523_s0 + $0x78] sm:$0xff]  ;;  %v34_v15 = vld [vmem:[%s1523_s0 + $0x70] sm:$0xff] }
  0x15   :  { %921 = vmatpush3.bf16.msra.mxu0 %v920_v43  ;;  %954 = vmatpush3.bf16.msra.mxu1 %v920_v43  ;;  %v29_v43 = vld [vmem:[%s1523_s0 + $0x48] sm:$0xff]  ;;  %v1209_v51 = vrot.slane %v1063_v30, %v80_v14  ;;  %v201_v52 = vmax.f32 %v153_v28, 0.0  ;;  %v192_v56 = vadd.f32 %v1136_v3, %v127_v38  ;;  %v237_v59 = vmax.f32 %v189_v41, 0.0  ;;  %v31_v17 = vld [vmem:[%s1523_s0 + $0x58] sm:$0xff] }
  0x16   :  { %923 = vmatprep.subr.bf16.mxu0 %v922_v46  ;;  %947 = vmatprep.subr.bf16.mxu1 %v922_v46  ;;  %v157_v46 = vadd.f32 %v1072_v34, %v92_v25  ;;  %v94_v57 = vmul.f32 %v1104_v53, %v29_v43  ;;  %v160_v60 = vadd.f32 %v1072_v34, %v95_v42  ;;  %v241_v0 = vmax.f32 %v193_v47, 0.0  ;;  %v39_v22 = vld [vmem:[%s1523_s0 + $0x98] sm:$0xff]  ;;  %v37_v41 = vld [vmem:[%s1523_s0 + $0x88] sm:$0xff]  ;;  %v42_v42 = vld [vmem:[%s1523_s0 + $0xb0] sm:$0xff] }
  0x17   :  { %v130_v30 = vmul.f32 %v1104_v53, %v65_v49  ;;  %v98_v61 = vmul.f32 %v1069_v33, %v33_v50  ;;  %v196_v1 = vadd.f32 %v1072_v34, %v131_v48  ;;  %v87_v2 = vmul.f32 %v1184_v35, %v22_v54  ;;  %v40_v43 = vld [vmem:[%s1523_s0 + $0xa0] sm:$0xff] }
  0x18   :  { %v205_v63 = vmax.f32 %v157_v46, 0.0  ;;  %v240_v8 = vmax.f32 %v192_v56, 0.0  ;;  %v159_v9 = vadd.f32 %v1136_v3, %v94_v57  ;;  %v208_v11 = vmax.f32 %v160_v60, 0.0  ;;  %v46_v60 = vld [vmem:[%s1523_s0 + $0xd0] sm:$0xff] }
  0x19   :  { %925 = vmatpush3.bf16.msra.mxu0 %v924_v55  ;;  %955 = vmatpush3.bf16.msra.mxu1 %v924_v55  ;;  %v156_v55 = vadd.f32 %v1136_v3, %v91_v37  ;;  %v195_v12 = vadd.f32 %v1136_v3, %v130_v30  ;;  %v163_v13 = vadd.f32 %v1072_v34, %v98_v61  ;;  %v244_v18 = vmax.f32 %v196_v1, 0.0 }
  0x1a   :  { %927 = vmatprep.subr.bf16.mxu0 %v926_v58  ;;  %948 = vmatprep.subr.bf16.mxu1 %v926_v58  ;;  %v938_v58 = vpack.c.bf16 %v281_v44, %v280_v29  ;;  %v90_v14 = vmul.f32 %v1184_v35, %v25_v4  ;;  %v93_v21 = vmul.f32 %v1184_v35, %v28_v6  ;;  %v207_v23 = vmax.f32 %v159_v9, 0.0  ;;  %v49_v6 = vld [vmem:[%s1523_s0 + $0xe8] sm:$0xff] }
  0x1b   :  { %v204_v7 = vmax.f32 %v156_v55, 0.0  ;;  %v100_v25 = vmul.f32 %v1104_v53, %v35_v16  ;;  %v96_v26 = vmul.f32 %v1184_v35, %v31_v17  ;;  %v243_v27 = vmax.f32 %v195_v12, 0.0  ;;  %v52_v12 = vld [vmem:[%s1523_s0 + $0x100] sm:$0xff] }
  0x1c   :  { %v211_v28 = vmax.f32 %v163_v13, 0.0  ;;  %v104_v32 = vmul.f32 %v1069_v33, %v39_v22  ;;  %v102_v49 = vmul.f32 %v1184_v35, %v37_v41  ;;  %v107_v50 = vmul.f32 %v1069_v33, %v42_v42  ;;  %v47_v22 = vld [vmem:[%s1523_s0 + $0xd8] sm:$0xff]  ;;  %v50_v42 = vld [vmem:[%s1523_s0 + $0xf0] sm:$0xff] }
  0x1d   :  { %929 = vmatpush3.bf16.msra.mxu0 %v928_v5  ;;  %956 = vmatpush3.bf16.msra.mxu1 %v928_v5  ;;  %v36_v5 = vld [vmem:[%s1523_s0 + $0x80] sm:$0xff]  ;;  %v165_v44 = vadd.f32 %v1136_v3, %v100_v25  ;;  %v105_v57 = vmul.f32 %v1184_v35, %v40_v43  ;;  %v114_v17 = vmul.f32 %v1184_v35, %v49_v6 }
  0x1e   :  { %931 = vmatprep.subr.bf16.mxu0 %v930_v10  ;;  %949 = vmatprep.subr.bf16.mxu1 %v930_v10  ;;  %v97_v10 = vmul.f32 %v1104_v53, %v32_v62  ;;  %v101_v20 = vmul.f32 %v1069_v33, %v36_v5  ;;  %v169_v48 = vadd.f32 %v1072_v34, %v104_v32  ;;  %v44_v5 = vld [vmem:[%s1523_s0 + $0xc0] sm:$0xff] }
  0x1f   :  { %v213_v30 = vmax.f32 %v165_v44, 0.0  ;;  %v167_v1 = vadd.f32 %v1209_v51, %v102_v49  ;;  %v109_v16 = vmul.f32 %v1104_v53, %v44_v5  ;;  %v117_v25 = vmul.f32 %v1184_v35, %v52_v12 }
  0x20   :  { %v162_v24 = vadd.f32 %v1136_v3, %v97_v10  ;;  %v166_v38 = vadd.f32 %v1072_v34, %v101_v20  ;;  %v111_v10 = vmul.f32 %v1184_v35, %v46_v60 }
  0x21   :  { %933 = vmatpush3.bf16.msra.mxu0 %v932_v19  ;;  %957 = vmatpush3.bf16.msra.mxu1 %v932_v19  ;;  %v152_v19 = vadd.f32 %v1209_v51, %v87_v2  ;;  %v172_v2 = vadd.f32 %v1072_v34, %v107_v50  ;;  %v174_v32 = vadd.f32 %v1136_v3, %v109_v16 }
  0x22   :  { %935 = vmatprep.subr.bf16.mxu1 %v934_v31  ;;  %v210_v29 = vmax.f32 %v162_v24, 0.0  ;;  %v214_v54 = vmax.f32 %v166_v38, 0.0  ;;  %v176_v24 = vadd.f32 %v1209_v51, %v111_v10  ;;  %v182_v44 = vadd.f32 %v1209_v51, %v117_v25 }
  0x23   :  { %v200_v37 = vmax.f32 %v152_v19, 0.0  ;;  %v220_v19 = vmax.f32 %v172_v2, 0.0  ;;  %v222_v49 = vmax.f32 %v174_v32, 0.0 }
  0x24   :  { %396 = vmatmul.mubr.f32.vlgmr.msra.gmra.mrb[0].mxu0 %v198_v39  ;;  %456 = vmatmul.mubr.f32.vlgmr.msra.gmra.mrb[0].mxu1 %v234_v40  ;;  %v158_v39 = vadd.f32 %v1209_v51, %v93_v21  ;;  %v99_v40 = vmul.f32 %v1184_v35, %v34_v15 }
  0x25   :  { %400 = vmatprep.mubr.f32.mxu0 %v202_v36  ;;  %460 = vmatprep.mubr.f32.mxu1 %v238_v45  ;;  %v38_v36 = vld [vmem:[%s1523_s0 + $0x90] sm:$0xff]  ;;  %v161_v45 = vadd.f32 %v1209_v51, %v96_v26  ;;  %v55_v26 = vld [vmem:[%s1523_s0 + $0x118] sm:$0xff] }
  0x26   :  { %937 = vmatpush3.bf16.msra.mxu1 %v934_v31  ;;  %v155_v31 = vadd.f32 %v1209_v51, %v90_v14  ;;  %v103_v46 = vmul.f32 %v1104_v53, %v38_v36  ;;  %v206_v55 = vmax.f32 %v158_v39, 0.0  ;;  %v164_v56 = vadd.f32 %v1209_v51, %v99_v40 }
  0x27   :  { %939 = vmatprep.subr.bf16.mxu1 %v938_v58  ;;  %v209_v61 = vmax.f32 %v161_v45, 0.0  ;;  %v179_v36 = vadd.f32 %v1209_v51, %v114_v17  ;;  %v120_v40 = vmul.f32 %v1184_v35, %v55_v26 }
  0x28   :  { %401 = vmatmul.mubr.f32.gmra.mrb[2].mxu0 %v201_v52  ;;  %461 = vmatmul.mubr.f32.gmra.mrb[2].mxu1 %v237_v59  ;;  %v203_v47 = vmax.f32 %v155_v31, 0.0  ;;  %v41_v52 = vld [vmem:[%s1523_s0 + $0xa8] sm:$0xff]  ;;  %v168_v62 = vadd.f32 %v1136_v3, %v103_v46 }
  0x29   :  { %405 = vmatprep.mubr.f32.mxu0 %v205_v63  ;;  %465 = vmatprep.mubr.f32.mxu1 %v241_v0  ;;  %v45_v59 = vld [vmem:[%s1523_s0 + $0xc8] sm:$0xff]  ;;  %v106_v63 = vmul.f32 %v1104_v53, %v41_v52  ;;  %v217_v0 = vmax.f32 %v169_v48, 0.0  ;;  %v64_v48 = vld [vmem:[%s1523_s0 + $0x160] sm:$0xff]  ;;  %v227_v50 = vmax.f32 %v179_v36, 0.0 }
  0x2a   :  { %941 = vmatpush3.bf16.msra.mxu1 %v938_v58  ;;  %v43_v58 = vld [vmem:[%s1523_s0 + $0xb8] sm:$0xff]  ;;  %v110_v9 = vmul.f32 %v1069_v33, %v45_v59  ;;  %v216_v13 = vmax.f32 %v168_v62, 0.0  ;;  %v61_v46 = vld [vmem:[%s1523_s0 + $0x148] sm:$0xff]  ;;  %v230_v59 = vmax.f32 %v182_v44, 0.0 }
  0x2b   :  { %v108_v4 = vmul.f32 %v1184_v35, %v43_v58  ;;  %v171_v14 = vadd.f32 %v1136_v3, %v106_v63  ;;  %v126_v58 = vmul.f32 %v1184_v35, %v61_v46  ;;  %v53_v62 = vld [vmem:[%s1523_s0 + $0x108] sm:$0xff]  ;;  %v67_v63 = vld [vmem:[%s1523_s0 + $0x178] sm:$0xff] }
  0x2c   :  { %406 = vmatmul.mubr.f32.gmra.mrb[4].mxu0 %v204_v7  ;;  %466 = vmatmul.mubr.f32.gmra.mrb[4].mxu1 %v240_v8  ;;  %v212_v7 = vmax.f32 %v164_v56, 0.0  ;;  %v170_v8 = vadd.f32 %v1209_v51, %v105_v57  ;;  %v185_v56 = vadd.f32 %v1209_v51, %v120_v40  ;;  %v132_v5 = vmul.f32 %v1184_v35, %v67_v63 }
  0x2d   :  { %410 = vmatprep.mubr.f32.mxu0 %v208_v11  ;;  %470 = vmatprep.mubr.f32.mxu1 %v244_v18  ;;  %v48_v11 = vld [vmem:[%s1523_s0 + $0xe0] sm:$0xff]  ;;  %v215_v18 = vmax.f32 %v167_v1, 0.0  ;;  %v173_v20 = vadd.f32 %v1209_v51, %v108_v4  ;;  %v219_v31 = vmax.f32 %v171_v14, 0.0  ;;  %v191_v4 = vadd.f32 %v1209_v51, %v126_v58 }
  0x2e   :  { %v113_v21 = vmul.f32 %v1069_v33, %v48_v11  ;;  %v218_v15 = vmax.f32 %v170_v8, 0.0  ;;  %v233_v2 = vmax.f32 %v185_v56, 0.0 }
  0x2f   :  { %v221_v38 = vmax.f32 %v173_v20, 0.0  ;;  %v239_v11 = vmax.f32 %v191_v4, 0.0 }
  0x30   :  { %411 = vmatmul.mubr.f32.gmra.mrb[6].mxu0 %v207_v23  ;;  %471 = vmatmul.mubr.f32.gmra.mrb[6].mxu1 %v243_v27  ;;  %v175_v23 = vadd.f32 %v1072_v34, %v110_v9  ;;  %v51_v27 = vld [vmem:[%s1523_s0 + $0xf8] sm:$0xff]  ;;  %v178_v39 = vadd.f32 %v1072_v34, %v113_v21 }
  0x31   :  { %415 = vmatprep.mubr.f32.mxu0 %v211_v28  ;;  %878 = vmatprep.mubr.msk.f32.mxu1 %vm282_vm0, %v200_v37  ;;  %v58_v28 = vld [vmem:[%s1523_s0 + $0x130] sm:$0xff]  ;;  %v112_v37 = vmul.f32 %v1104_v53, %v47_v22  ;;  %v116_v41 = vmul.f32 %v1069_v33, %v51_v27 }
  0x32   :  { %v223_v43 = vmax.f32 %v175_v23, 0.0  ;;  %v123_v45 = vmul.f32 %v1184_v35, %v58_v28 }
  0x33   :  { %v177_v52 = vadd.f32 %v1136_v3, %v112_v37  ;;  %v181_v57 = vadd.f32 %v1072_v34, %v116_v41 }
  0x34   :  { %416 = vmatmul.mubr.f32.gmra.mrb[8].mxu0 %v210_v29  ;;  %879 = vmatmul.mubr.msk.f32.vlgmr.msra.gmra.mrb[8].mxu1 %vm282_vm0, %v203_v47  ;;  %v224_v29 = vmax.f32 %v176_v24, 0.0  ;;  %v54_v47 = vld [vmem:[%s1523_s0 + $0x110] sm:$0xff]  ;;  %v188_v60 = vadd.f32 %v1209_v51, %v123_v45 }
  0x35   :  { %420 = vmatprep.mubr.f32.mxu0 %v214_v54  ;;  %881 = vmatprep.mubr.msk.f32.mxu1 %vm282_vm0, %v206_v55  ;;  %v115_v54 = vmul.f32 %v1104_v53, %v50_v42  ;;  %v226_v55 = vmax.f32 %v178_v39, 0.0  ;;  %v229_v6 = vmax.f32 %v181_v57, 0.0 }
  0x37   :  { %v180_v1 = vadd.f32 %v1136_v3, %v115_v54 }
  0x38   :  { %421 = vmatmul.mubr.f32.gmra.mrb[10].mxu0 %v213_v30  ;;  %882 = vmatmul.mubr.msk.f32.gmra.mrb[10].mxu1 %vm282_vm0, %v209_v61  ;;  %v119_v30 = vmul.f32 %v1069_v33, %v54_v47  ;;  %v129_v61 = vmul.f32 %v1184_v35, %v64_v48  ;;  %v118_v33 = vmul.f32 %v1104_v53, %v53_v62 }
  0x39   :  { %425 = vmatprep.mubr.f32.mxu0 %v217_v0  ;;  %884 = vmatprep.mubr.msk.f32.mxu1 %vm282_vm0, %v212_v7  ;;  %v225_v0 = vmax.f32 %v177_v52, 0.0  ;;  %v236_v7 = vmax.f32 %v188_v60, 0.0  ;;  %v228_v10 = vmax.f32 %v180_v1, 0.0  ;;  %v197_v53 = vadd.f32 %v1209_v51, %v132_v5 }
  0x3a   :  { %v184_v8 = vadd.f32 %v1072_v34, %v119_v30  ;;  %v194_v9 = vadd.f32 %v1209_v51, %v129_v61  ;;  %v183_v12 = vadd.f32 %v1136_v3, %v118_v33  ;;  %v959_v3 = vmov 0.0  }
  0x3b   :  { %v245_v14 = vmax.f32 %v197_v53, 0.0  ;;  %626 = vst.msk [vmem:[%s1526_s5] sm:$0x1] %vm625_vm1, %v959_v3  ;;  %627 = vst.msk [vmem:[%s1527_s6] sm:$0x1] %vm625_vm1, %v959_v3 }
  0x3c   :  { %426 = vmatmul.mubr.f32.gmra.mrb[12].mxu0 %v216_v13  ;;  %885 = vmatmul.mubr.msk.f32.gmra.mrb[12].mxu1 %vm282_vm0, %v215_v18  ;;  %v232_v35 = vmax.f32 %v184_v8, 0.0  ;;  %v242_v13 = vmax.f32 %v194_v9, 0.0  ;;  %v231_v34 = vmax.f32 %v183_v12, 0.0 }
  0x3d   :  { %430 = vmatprep.mubr.f32.mxu0 %v220_v19  ;;  %887 = vmatprep.mubr.msk.f32.mxu1 %vm282_vm0, %v218_v15 }
  0x40   :  { %431 = vmatmul.mubr.f32.gmra.mrb[14].mxu0 %v219_v31  ;;  %888 = vmatmul.mubr.msk.f32.gmra.mrb[14].mxu1 %vm282_vm0, %v221_v38 }
  0x41   :  { %435 = vmatprep.mubr.f32.mxu0 %v223_v43  ;;  %890 = vmatprep.mubr.msk.f32.mxu1 %vm282_vm0, %v224_v29 }
  0x44   :  { %436 = vmatmul.mubr.f32.gmra.mrb[16].mxu0 %v222_v49  ;;  %891 = vmatmul.mubr.msk.f32.gmra.mrb[16].mxu1 %vm282_vm0, %v227_v50 }
  0x45   :  { %440 = vmatprep.mubr.f32.mxu0 %v226_v55  ;;  %893 = vmatprep.mubr.msk.f32.mxu1 %vm282_vm0, %v230_v59 }
  0x48   :  { %441 = vmatmul.mubr.f32.gmra.mrb[18].mxu0 %v225_v0  ;;  %894 = vmatmul.mubr.msk.f32.gmra.mrb[18].mxu1 %vm282_vm0, %v233_v2 }
  0x49   :  { %445 = vmatprep.mubr.f32.mxu0 %v229_v6  ;;  %896 = vmatprep.mubr.msk.f32.mxu1 %vm282_vm0, %v236_v7 }
  0x4c   :  { %446 = vmatmul.mubr.f32.gmra.mrb[20].mxu0 %v228_v10  ;;  %897 = vmatmul.mubr.msk.f32.gmra.mrb[20].mxu1 %vm282_vm0, %v239_v11 }
  0x4d   :  { %450 = vmatprep.mubr.f32.mxu0 %v232_v35  ;;  %899 = vmatprep.mubr.msk.f32.mxu1 %vm282_vm0, %v242_v13 }
  0x50   :  { %451 = vmatmul.mubr.f32.gmra.mrb[22].mxu0 %v231_v34  ;;  %900 = vmatmul.mubr.msk.f32.gmra.mrb[22].mxu1 %vm282_vm0, %v245_v14 }
  0xf7   :  { %v802_v51 = vpop.f32.mrb[0].mxu0  ;;  %v838_v16 = vpop.f32.mrb[0].mxu1 }
  0xf8   :  { %v803_v17 = vpop.f32.mrb[1].mxu0  ;;  %v839_v18 = vpop.f32.mrb[1].mxu1 }
  0xf9   :  { %v804_v19 = vadd.f32 %v803_v17, %v802_v51  ;;  %v1400_v20 = vadd.f32 %v839_v18, %v838_v16 }
  0xfb   :  { %v805_v21 = vpop.f32.mrb[2].mxu0  ;;  %v841_v22 = vpop.f32.mrb[2].mxu1 }
  0xfc   :  { %v806_v15 = vpop.f32.mrb[3].mxu0  ;;  %v842_v23 = vpop.f32.mrb[3].mxu1 }
  0xfd   :  { %v807_v24 = vadd.f32 %v806_v15, %v805_v21  ;;  %v1402_v25 = vadd.f32 %v842_v23, %v841_v22 }
  0xff   :  { %v808_v26 = vpop.f32.mrb[4].mxu0  ;;  %v844_v27 = vpop.f32.mrb[4].mxu1 }
 0x100   :  { %v809_v28 = vpop.f32.mrb[5].mxu0  ;;  %v845_v31 = vpop.f32.mrb[5].mxu1 }
 0x101   :  { %v810_v32 = vadd.f32 %v809_v28, %v808_v26  ;;  %v1404_v36 = vadd.f32 %v845_v31, %v844_v27 }
 0x103   :  { %v811_v37 = vpop.f32.mrb[6].mxu0  ;;  %v847_v38 = vpop.f32.mrb[6].mxu1 }
 0x104   :  { %v812_v39 = vpop.f32.mrb[7].mxu0  ;;  %v848_v40 = vpop.f32.mrb[7].mxu1 }
 0x105   :  { %v813_v41 = vadd.f32 %v812_v39, %v811_v37  ;;  %v1406_v42 = vadd.f32 %v848_v40, %v847_v38 }
 0x107   :  { %v814_v43 = vpop.f32.mrb[8].mxu0  ;;  %v880_v29 = vpop.f32.mrb[8].mxu1 }
 0x108   :  { %v548_v44 = vadd.f32 %v880_v29, %v807_v24  ;;  %v815_v45 = vpop.f32.mrb[9].mxu0  ;;  %v542_v46 = vpop.f32.mrb[9].mxu1 }
 0x109   :  { %v816_v47 = vadd.f32 %v815_v45, %v814_v43  ;;  %v543_v48 = vadd.f32 %v804_v19, %v542_v46 }
 0x10a   :  { %v631_v49 = vsel %vm629_vm2, %v548_v44, 0.0  ;;  %v672_v50 = vmul.f32 %v548_v44, %v548_v44  ;;  %727 = vst.msk [vmem:[%s1528_s4 + $0x8] sm:$0xff] %vm629_vm2, %v548_v44 }
 0x10b   :  { %v630_v52 = vsel %vm629_vm2, %v543_v48, 0.0  ;;  %v671_v54 = vmul.f32 %v543_v48, %v543_v48  ;;  %726 = vst.msk [vmem:[%s1528_s4] sm:$0xff] %vm629_vm2, %v543_v48  ;;  %v817_v55 = vpop.f32.mrb[10].mxu0  ;;  %v883_v56 = vpop.f32.mrb[10].mxu1 }
 0x10c   :  { %v688_v57 = vsel %vm629_vm2, %v672_v50, 0.0  ;;  %v632_v58 = vadd.f32 %v631_v49, %v630_v52  ;;  %v558_v59 = vadd.f32 %v883_v56, %v813_v41  ;;  %v818_v60 = vpop.f32.mrb[11].mxu0  ;;  %v552_v30 = vpop.f32.mrb[11].mxu1 }
 0x10d   :  { %v687_v61 = vsel %vm629_vm2, %v671_v54, 0.0  ;;  %v819_v62 = vadd.f32 %v818_v60, %v817_v55  ;;  %v553_v63 = vadd.f32 %v810_v32, %v552_v30 }
 0x10e   :  { %v689_v0 = vadd.f32 %v688_v57, %v687_v61  ;;  %729 = vst.msk [vmem:[%s1528_s4 + $0x18] sm:$0xff] %vm629_vm2, %v558_v59  ;;  %v674_v1 = vmul.f32 %v558_v59, %v558_v59  ;;  %v635_v10 = vsel %vm629_vm2, %v558_v59, 0.0 }
 0x10f   :  { %v633_v2 = vsel %vm629_vm2, %v553_v63, 0.0  ;;  %v673_v4 = vmul.f32 %v553_v63, %v553_v63  ;;  %728 = vst.msk [vmem:[%s1528_s4 + $0x10] sm:$0xff] %vm629_vm2, %v553_v63  ;;  %v820_v33 = vpop.f32.mrb[12].mxu0  ;;  %v886_v5 = vpop.f32.mrb[12].mxu1 }
 0x110   :  { %v634_v6 = vadd.f32 %v633_v2, %v632_v58  ;;  %v568_v7 = vadd.f32 %v886_v5, %v819_v62  ;;  %v821_v8 = vpop.f32.mrb[13].mxu0  ;;  %v562_v9 = vpop.f32.mrb[13].mxu1  ;;  %v692_v34 = vsel %vm629_vm2, %v674_v1, 0.0 }
 0x111   :  { %v690_v11 = vsel %vm629_vm2, %v673_v4, 0.0  ;;  %v822_v12 = vadd.f32 %v821_v8, %v820_v33  ;;  %v563_v53 = vadd.f32 %v816_v47, %v562_v9 }
 0x112   :  { %v691_v35 = vadd.f32 %v690_v11, %v689_v0  ;;  %731 = vst.msk [vmem:[%s1528_s4 + $0x28] sm:$0xff] %vm629_vm2, %v568_v7  ;;  %v636_v13 = vadd.f32 %v635_v10, %v634_v6  ;;  %v676_v14 = vmul.f32 %v568_v7, %v568_v7  ;;  %v639_v15 = vsel %vm629_vm2, %v568_v7, 0.0 }
 0x113   :  { %v637_v3 = vsel %vm629_vm2, %v563_v53, 0.0  ;;  %v675_v51 = vmul.f32 %v563_v53, %v563_v53  ;;  %730 = vst.msk [vmem:[%s1528_s4 + $0x20] sm:$0xff] %vm629_vm2, %v563_v53  ;;  %v823_v16 = vpop.f32.mrb[14].mxu0  ;;  %v889_v17 = vpop.f32.mrb[14].mxu1 }
 0x114   :  { %v638_v18 = vadd.f32 %v637_v3, %v636_v13  ;;  %v693_v19 = vadd.f32 %v692_v34, %v691_v35  ;;  %v824_v21 = vpop.f32.mrb[15].mxu0  ;;  %v572_v22 = vpop.f32.mrb[15].mxu1  ;;  %v696_v31 = vsel %vm629_vm2, %v676_v14, 0.0 }
 0x115   :  { %v694_v23 = vsel %vm629_vm2, %v675_v51, 0.0  ;;  %v825_v24 = vadd.f32 %v824_v21, %v823_v16  ;;  %v573_v26 = vadd.f32 %v822_v12, %v572_v22 }
 0x116   :  { %v695_v27 = vadd.f32 %v694_v23, %v693_v19  ;;  %v640_v28 = vadd.f32 %v639_v15, %v638_v18 }
 0x117   :  { %v578_v32 = vadd.f32 %v889_v17, %v825_v24  ;;  %v641_v37 = vsel %vm629_vm2, %v573_v26, 0.0  ;;  %v677_v38 = vmul.f32 %v573_v26, %v573_v26  ;;  %732 = vst.msk [vmem:[%s1528_s4 + $0x30] sm:$0xff] %vm629_vm2, %v573_v26  ;;  %v826_v39 = vpop.f32.mrb[16].mxu0  ;;  %v892_v40 = vpop.f32.mrb[16].mxu1 }
 0x118   :  { %v642_v41 = vadd.f32 %v641_v37, %v640_v28  ;;  %v697_v43 = vadd.f32 %v696_v31, %v695_v27  ;;  %v827_v29 = vpop.f32.mrb[17].mxu0  ;;  %v582_v44 = vpop.f32.mrb[17].mxu1 }
 0x119   :  { %v643_v45 = vsel %vm629_vm2, %v578_v32, 0.0  ;;  %v678_v46 = vmul.f32 %v578_v32, %v578_v32  ;;  %733 = vst.msk [vmem:[%s1528_s4 + $0x38] sm:$0xff] %vm629_vm2, %v578_v32  ;;  %v698_v47 = vsel %vm629_vm2, %v677_v38, 0.0  ;;  %v828_v48 = vadd.f32 %v827_v29, %v826_v39 }
 0x11a   :  { %v699_v49 = vadd.f32 %v698_v47, %v697_v43  ;;  %v644_v50 = vadd.f32 %v643_v45, %v642_v41 }
 0x11b   :  { %v700_v52 = vsel %vm629_vm2, %v678_v46, 0.0  ;;  %v583_v54 = vadd.f32 %v828_v48, %v582_v44  ;;  %v829_v55 = vpop.f32.mrb[18].mxu0  ;;  %v895_v56 = vpop.f32.mrb[18].mxu1 }
 0x11c   :  { %v701_v57 = vadd.f32 %v700_v52, %v699_v49  ;;  %v830_v58 = vpop.f32.mrb[19].mxu0  ;;  %v592_v59 = vpop.f32.mrb[19].mxu1 }
 0x11d   :  { %v645_v60 = vsel %vm629_vm2, %v583_v54, 0.0  ;;  %v679_v30 = vmul.f32 %v583_v54, %v583_v54  ;;  %734 = vst.msk [vmem:[%s1528_s4 + $0x40] sm:$0xff] %vm629_vm2, %v583_v54  ;;  %v831_v61 = vadd.f32 %v830_v58, %v829_v55 }
 0x11e   :  { %v646_v62 = vadd.f32 %v645_v60, %v644_v50 }
 0x11f   :  { %v702_v63 = vsel %vm629_vm2, %v679_v30, 0.0  ;;  %v588_v0 = vadd.f32 %v892_v40, %v831_v61  ;;  %v832_v1 = vpop.f32.mrb[20].mxu0  ;;  %v898_v2 = vpop.f32.mrb[20].mxu1 }
 0x120   :  { %v703_v4 = vadd.f32 %v702_v63, %v701_v57  ;;  %v608_v33 = vadd.f32 %v898_v2, %v1402_v25  ;;  %v833_v5 = vpop.f32.mrb[21].mxu0  ;;  %v602_v6 = vpop.f32.mrb[21].mxu1 }
 0x121   :  { %v647_v7 = vsel %vm629_vm2, %v588_v0, 0.0  ;;  %v680_v8 = vmul.f32 %v588_v0, %v588_v0  ;;  %735 = vst.msk [vmem:[%s1528_s4 + $0x48] sm:$0xff] %vm629_vm2, %v588_v0  ;;  %v834_v9 = vadd.f32 %v833_v5, %v832_v1  ;;  %v603_v10 = vadd.f32 %v1400_v20, %v602_v6  ;;  %v670_v1 = vld [vmem:[%s1527_s6] sm:$0x1] }
 0x122   :  { %v648_v11 = vadd.f32 %v647_v7, %v646_v62  ;;  %739 = vst.msk [vmem:[%s1528_s4 + $0x68] sm:$0xff] %vm629_vm2, %v608_v33  ;;  %v655_v32 = vsel %vm629_vm2, %v608_v33, 0.0  ;;  %v628_v62 = vld [vmem:[%s1526_s5] sm:$0x1] }
 0x123   :  { %v704_v25 = vsel %vm629_vm2, %v680_v8, 0.0  ;;  %v593_v12 = vadd.f32 %v834_v9, %v592_v59  ;;  %738 = vst.msk [vmem:[%s1528_s4 + $0x60] sm:$0xff] %vm629_vm2, %v603_v10  ;;  %v835_v53 = vpop.f32.mrb[22].mxu0  ;;  %v901_v35 = vpop.f32.mrb[22].mxu1  ;;  %v683_v22 = vmul.f32 %v603_v10, %v603_v10  ;;  %v653_v26 = vsel %vm629_vm2, %v603_v10, 0.0 }
 0x124   :  { %v705_v13 = vadd.f32 %v704_v25, %v703_v4  ;;  %v618_v34 = vadd.f32 %v901_v35, %v1406_v42  ;;  %v836_v20 = vpop.f32.mrb[23].mxu0  ;;  %v612_v14 = vpop.f32.mrb[23].mxu1 }
 0x125   :  { %v649_v3 = vsel %vm629_vm2, %v593_v12, 0.0  ;;  %v681_v51 = vmul.f32 %v593_v12, %v593_v12  ;;  %736 = vst.msk [vmem:[%s1528_s4 + $0x50] sm:$0xff] %vm629_vm2, %v593_v12  ;;  %v837_v16 = vadd.f32 %v836_v20, %v835_v53  ;;  %v613_v18 = vadd.f32 %v1404_v36, %v612_v14 }
 0x126   :  { %v650_v17 = vadd.f32 %v649_v3, %v648_v11  ;;  %741 = vst.msk [vmem:[%s1528_s4 + $0x78] sm:$0xff] %vm629_vm2, %v618_v34  ;;  %v684_v36 = vmul.f32 %v608_v33, %v608_v33  ;;  %v710_v37 = vsel %vm629_vm2, %v683_v22, 0.0  ;;  %v686_v43 = vmul.f32 %v618_v34, %v618_v34 }
 0x127   :  { %v706_v42 = vsel %vm629_vm2, %v681_v51, 0.0  ;;  %v598_v19 = vadd.f32 %v895_v56, %v837_v16  ;;  %740 = vst.msk [vmem:[%s1528_s4 + $0x70] sm:$0xff] %vm629_vm2, %v613_v18  ;;  %v685_v38 = vmul.f32 %v613_v18, %v613_v18  ;;  %v657_v29 = vsel %vm629_vm2, %v613_v18, 0.0 }
 0x128   :  { %v707_v21 = vadd.f32 %v706_v42, %v705_v13  ;;  %v712_v41 = vsel %vm629_vm2, %v684_v36, 0.0  ;;  %v659_v46 = vsel %vm629_vm2, %v618_v34, 0.0  ;;  %v716_v50 = vsel %vm629_vm2, %v686_v43, 0.0 }
 0x129   :  { %v651_v15 = vsel %vm629_vm2, %v598_v19, 0.0  ;;  %v682_v23 = vmul.f32 %v598_v19, %v598_v19  ;;  %737 = vst.msk [vmem:[%s1528_s4 + $0x58] sm:$0xff] %vm629_vm2, %v598_v19  ;;  %v714_v47 = vsel %vm629_vm2, %v685_v38, 0.0 }
 0x12a   :  { %v652_v24 = vadd.f32 %v651_v15, %v650_v17 }
 0x12b   :  { %v708_v27 = vsel %vm629_vm2, %v682_v23, 0.0 }
 0x12c   :  { %v709_v28 = vadd.f32 %v708_v27, %v707_v21  ;;  %v654_v31 = vadd.f32 %v653_v26, %v652_v24 }
 0x12e   :  { %v656_v39 = vadd.f32 %v655_v32, %v654_v31  ;;  %v711_v40 = vadd.f32 %v710_v37, %v709_v28 }
 0x130   :  { %v658_v44 = vadd.f32 %v657_v29, %v656_v39  ;;  %v713_v45 = vadd.f32 %v712_v41, %v711_v40 }
 0x132   :  { %v660_v48 = vadd.f32 %v659_v46, %v658_v44  ;;  %v715_v49 = vadd.f32 %v714_v47, %v713_v45 }
 0x134   :  { %v661_v52 = vrot.slane %v660_v48, 4  ;;  %v717_v54 = vadd.f32 %v716_v50, %v715_v49 }
 0x136   :  { %v662_v55 = vadd.f32 %v661_v52, %v660_v48  ;;  %v718_v56 = vrot.slane %v717_v54, 4 }
 0x138   :  { %v663_v57 = vrot.slane %v662_v55, 2  ;;  %v719_v58 = vadd.f32 %v718_v56, %v717_v54 }
 0x13a   :  { %v664_v59 = vadd.f32 %v663_v57, %v662_v55  ;;  %v720_v60 = vrot.slane %v719_v58, 2 }
 0x13c   :  { %v665_v30 = vrot.slane %v664_v59, 1  ;;  %v721_v61 = vadd.f32 %v720_v60, %v719_v58 }
 0x13e   :  { %v666_v63 = vadd.f32 %v665_v30, %v664_v59  ;;  %v722_v0 = vrot.slane %v721_v61, 1 }
 0x140   :  { %v667_v2 = vadd.f32 %v666_v63, %v628_v62  ;;  %v723_v4 = vadd.f32 %v722_v0, %v721_v61 }
 0x142   :  { %669 = vst.msk [vmem:[%s1526_s5] sm:$0x1] %vm625_vm1, %v667_v2  ;;  %v724_v33 = vadd.f32 %v723_v4, %v670_v1 }
 0x144   :  { %725 = vst.msk [vmem:[%s1527_s6] sm:$0x1] %vm625_vm1, %v724_v33 }

// kernel: generator_forward.8
= control target key start
LH: loop header
LB: loop body
LE: loop exit
PB: predicated region body
PF: predicated region fallthrough
CT: control target
= control target key end

     0   :  { %v150_v0 = vlaneseq  ;;  %v1684_v1 = vmov 0.0|0.0   ;;  %vm574_vm0 = vcmask 130048   ;;  %vm1160_vm1 = vcmask 261120   ;;  %s3109_s1 = inlined_call_operand.vmem [shape: f32[144,32], index: 1, kind: input, shape index: {}]   ;;  %s3110_s0 = inlined_call_operand.vmem [shape: f32[512,144], index: 0, kind: input, shape index: {}]   ;;  %s3111_s2 = inlined_call_operand.vmem [shape: f32[1,144], index: 2, kind: input, shape index: {}]   ;;  %s3112_s3 = inlined_call_operand.vmem [shape: f32[1,144], index: 3, kind: input, shape index: {}]   ;;  %s3113_s4 = inlined_call_operand.vmem [shape: f32[512,32], index: 4, kind: output, shape index: {0}]   ;;  %s3114_s5 = inlined_call_operand.vmem [shape: f32[1,32], index: 5, kind: output, shape index: {1}]   ;;  %s3115_s6 = inlined_call_operand.vmem [shape: f32[1,32], index: 6, kind: output, shape index: {2}]  }
   0x1   :  { %1637 = vmatprep.subr.bf16.mxu0 %v1684_v1  ;;  %v556_v2 = vld [vmem:[%s3109_s1] sm:$0xff]  ;;  %v557_v3 = vld [vmem:[%s3109_s1 + $0x8] sm:$0xff]  ;;  %v558_v4 = vld [vmem:[%s3109_s1 + $0x10] sm:$0xff]  ;;  %1664 = vmatprep.subr.bf16.mxu1 %v1684_v1  ;;  %vm1156_vm2 = vcmask 253952  }
   0x2   :  { %v1638_v5 = vpack.c.bf16 %v557_v3, %v556_v2  ;;  %v559_v6 = vld [vmem:[%s3109_s1 + $0x18] sm:$0xff]  ;;  %v151_v7 = vshrl.u32 %v150_v0, 7  ;;  %v560_v10 = vld [vmem:[%s3109_s1 + $0x20] sm:$0xff]  ;;  %v561_v11 = vld [vmem:[%s3109_s1 + $0x28] sm:$0xff] }
   0x3   :  { %v1641_v8 = vpack.c.bf16 %v559_v6, %v558_v4  ;;  %v21_v12 = vld [vmem:[%s3110_s0 + $0x8] sm:$0xff]  ;;  %v148_v13 = vld [vmem:[%s3111_s2] sm:$0x3]  ;;  %v1644_v15 = vpack.c.bf16 %v561_v11, %v560_v10  ;;  %v562_v18 = vld [vmem:[%s3109_s1 + $0x30] sm:$0xff] }
   0x4   :  { %1639 = vmatpush1.bf16.msra.mxu0 %v1638_v5  ;;  %v156_v9 = vsub.s32 1, %v151_v7  ;;  %1673 = vmatpush1.bf16.msra.mxu1 %v1638_v5  ;;  %v288_v14 = vld [vmem:[%s3112_s3] sm:$0x3]  ;;  %v563_v19 = vld [vmem:[%s3109_s1 + $0x38] sm:$0xff]  ;;  %v565_v24 = vld [vmem:[%s3109_s1 + $0x48] sm:$0xff]  ;;  %v152_v29 = vsub.s32 0, %v151_v7 }
   0x5   :  { %1640 = vmatprep.subr.bf16.mxu0 %v1684_v1  ;;  %1665 = vmatprep.subr.bf16.mxu1 %v1684_v1  ;;  %v1647_v21 = vpack.c.bf16 %v563_v19, %v562_v18  ;;  %v564_v23 = vld [vmem:[%s3109_s1 + $0x40] sm:$0xff]  ;;  %v566_v27 = vld [vmem:[%s3109_s1 + $0x50] sm:$0xff]  ;;  %v567_v28 = vld [vmem:[%s3109_s1 + $0x58] sm:$0xff] }
   0x6   :  { %v1752_v16 = vrot.slane %v148_v13, %v156_v9  ;;  %v1754_v17 = vrot.slane %v288_v14, %v156_v9  ;;  %v1650_v26 = vpack.c.bf16 %v565_v24, %v564_v23  ;;  %v1653_v30 = vpack.c.bf16 %v567_v28, %v566_v27  ;;  %v568_v31 = vld [vmem:[%s3109_s1 + $0x60] sm:$0xff]  ;;  %v569_v32 = vld [vmem:[%s3109_s1 + $0x68] sm:$0xff]  ;;  %v570_v36 = vld [vmem:[%s3109_s1 + $0x70] sm:$0xff] }
   0x7   :  { %v1790_v33 = vrot.slane %v148_v13, %v152_v29  ;;  %v1656_v34 = vpack.c.bf16 %v569_v32, %v568_v31  ;;  %v20_v35 = vld [vmem:[%s3110_s0] sm:$0xff]  ;;  %v571_v37 = vld [vmem:[%s3109_s1 + $0x78] sm:$0xff]  ;;  %v1806_v39 = vrot.slane %v288_v14, %v152_v29  ;;  %v22_v43 = vld [vmem:[%s3110_s0 + $0x10] sm:$0xff] }
   0x8   :  { %1642 = vmatpush1.bf16.msra.mxu0 %v1641_v8  ;;  %1674 = vmatpush1.bf16.msra.mxu1 %v1641_v8  ;;  %v161_v20 = vmul.f32 %v1752_v16, %v21_v12  ;;  %v23_v38 = vld [vmem:[%s3110_s0 + $0x18] sm:$0xff]  ;;  %v1659_v41 = vpack.c.bf16 %v571_v37, %v570_v36  ;;  %v572_v44 = vld [vmem:[%s3109_s1 + $0x80] sm:$0xff]  ;;  %v573_v45 = vld [vmem:[%s3109_s1 + $0x88] sm:$0xff] }
   0x9   :  { %1643 = vmatprep.subr.bf16.mxu0 %v1684_v1  ;;  %1666 = vmatprep.subr.bf16.mxu1 %v1684_v1  ;;  %v160_v40 = vmul.f32 %v1790_v33, %v20_v35  ;;  %v163_v42 = vmul.f32 %v1752_v16, %v23_v38  ;;  %v25_v46 = vld [vmem:[%s3110_s0 + $0x28] sm:$0xff]  ;;  %v24_v47 = vld [vmem:[%s3110_s0 + $0x20] sm:$0xff]  ;;  %v162_v49 = vmul.f32 %v1790_v33, %v22_v43  ;;  %v27_v50 = vld [vmem:[%s3110_s0 + $0x38] sm:$0xff] }
   0xa   :  { %v301_v22 = vadd.f32 %v1754_v17, %v161_v20  ;;  %v85_v51 = vld [vmem:[%s3110_s0 + $0x208] sm:$0xff]  ;;  %v84_v52 = vld [vmem:[%s3110_s0 + $0x200] sm:$0xff]  ;;  %v1662_v53 = vpack.c.bf16 %v573_v45, %v572_v44  ;;  %v165_v55 = vmul.f32 %v1752_v16, %v25_v46  ;;  %v87_v56 = vld [vmem:[%s3110_s0 + $0x218] sm:$0xff]  ;;  %v164_v58 = vmul.f32 %v1790_v33, %v24_v47 }
   0xb   :  { %v300_v48 = vadd.f32 %v1806_v39, %v160_v40  ;;  %v303_v54 = vadd.f32 %v1754_v17, %v163_v42  ;;  %v86_v57 = vld [vmem:[%s3110_s0 + $0x210] sm:$0xff]  ;;  %v167_v59 = vmul.f32 %v1752_v16, %v27_v50  ;;  %v225_v60 = vmul.f32 %v1752_v16, %v85_v51  ;;  %v29_v8 = vld [vmem:[%s3110_s0 + $0x48] sm:$0xff]  ;;  %v88_v11 = vld [vmem:[%s3110_s0 + $0x220] sm:$0xff] }
   0xc   :  { %1645 = vmatpush1.bf16.msra.mxu0 %v1644_v15  ;;  %v429_v25 = vmax.f32 %v301_v22, 0.0  ;;  %1675 = vmatpush1.bf16.msra.mxu1 %v1644_v15  ;;  %v224_v61 = vmul.f32 %v1790_v33, %v84_v52  ;;  %v302_v63 = vadd.f32 %v1806_v39, %v162_v49  ;;  %v26_v0 = vld [vmem:[%s3110_s0 + $0x30] sm:$0xff]  ;;  %v227_v2 = vmul.f32 %v1752_v16, %v87_v56  ;;  %v89_v10 = vld [vmem:[%s3110_s0 + $0x228] sm:$0xff]  ;;  %v91_v15 = vld [vmem:[%s3110_s0 + $0x238] sm:$0xff] }
   0xd   :  { %1646 = vmatprep.subr.bf16.mxu0 %v1684_v1  ;;  %1667 = vmatprep.subr.bf16.mxu1 %v1684_v1  ;;  %v428_v62 = vmax.f32 %v300_v48, 0.0  ;;  %v226_v3 = vmul.f32 %v1790_v33, %v86_v57  ;;  %v431_v4 = vmax.f32 %v303_v54, 0.0  ;;  %v305_v5 = vadd.f32 %v1754_v17, %v165_v55  ;;  %v90_v18 = vld [vmem:[%s3110_s0 + $0x230] sm:$0xff]  ;;  %v31_v28 = vld [vmem:[%s3110_s0 + $0x58] sm:$0xff]  ;;  %v93_v40 = vld [vmem:[%s3110_s0 + $0x248] sm:$0xff] }
   0xe   :  { %1573 = vmatprep.mubr.msk.f32.mxu0 %vm574_vm0, %v429_v25  ;;  %v365_v6 = vadd.f32 %v1754_v17, %v225_v60  ;;  %v364_v7 = vadd.f32 %v1806_v39, %v224_v61  ;;  %v367_v9 = vadd.f32 %v1754_v17, %v227_v2  ;;  %v166_v12 = vmul.f32 %v1790_v33, %v26_v0  ;;  %v28_v25 = vld [vmem:[%s3110_s0 + $0x40] sm:$0xff]  ;;  %v30_v45 = vld [vmem:[%s3110_s0 + $0x50] sm:$0xff]  ;;  %v95_v47 = vld [vmem:[%s3110_s0 + $0x258] sm:$0xff] }
   0xf   :  { %v430_v19 = vmax.f32 %v302_v63, 0.0  ;;  %v304_v20 = vadd.f32 %v1806_v39, %v164_v58  ;;  %v433_v23 = vmax.f32 %v305_v5, 0.0  ;;  %v169_v24 = vmul.f32 %v1752_v16, %v29_v8  ;;  %v33_v48 = vld [vmem:[%s3110_s0 + $0x68] sm:$0xff]  ;;  %v94_v54 = vld [vmem:[%s3110_s0 + $0x250] sm:$0xff]  ;;  %v35_v0 = vld [vmem:[%s3110_s0 + $0x78] sm:$0xff] }
  0x10   :  { %1648 = vmatpush1.bf16.msra.mxu0 %v1647_v21  ;;  %1676 = vmatpush1.bf16.msra.mxu1 %v1647_v21  ;;  %v493_v13 = vmax.f32 %v365_v6, 0.0  ;;  %v492_v14 = vmax.f32 %v364_v7, 0.0  ;;  %v307_v21 = vadd.f32 %v1754_v17, %v167_v59  ;;  %v495_v22 = vmax.f32 %v367_v9, 0.0  ;;  %v97_v5 = vld [vmem:[%s3110_s0 + $0x268] sm:$0xff]  ;;  %v96_v8 = vld [vmem:[%s3110_s0 + $0x260] sm:$0xff] }
  0x11   :  { %1649 = vmatprep.subr.bf16.mxu0 %v1684_v1  ;;  %1668 = vmatprep.subr.bf16.mxu1 %v1684_v1  ;;  %v228_v27 = vmul.f32 %v1790_v33, %v88_v11  ;;  %v230_v31 = vmul.f32 %v1790_v33, %v90_v18  ;;  %v432_v35 = vmax.f32 %v304_v20, 0.0  ;;  %v306_v36 = vadd.f32 %v1806_v39, %v166_v12  ;;  %v99_v11 = vld [vmem:[%s3110_s0 + $0x278] sm:$0xff] }
  0x12   :  { %1605 = vmatprep.mubr.msk.f32.mxu1 %vm574_vm0, %v493_v13  ;;  %v168_v37 = vmul.f32 %v1790_v33, %v28_v25  ;;  %v435_v42 = vmax.f32 %v307_v21, 0.0  ;;  %v309_v43 = vadd.f32 %v1754_v17, %v169_v24  ;;  %v171_v44 = vmul.f32 %v1752_v16, %v31_v28 }
  0x13   :  { %v370_v50 = vadd.f32 %v1806_v39, %v230_v31  ;;  %v233_v52 = vmul.f32 %v1752_v16, %v93_v40  ;;  %v434_v55 = vmax.f32 %v306_v36, 0.0  ;;  %v170_v57 = vmul.f32 %v1790_v33, %v30_v45  ;;  %v39_v36 = vld [vmem:[%s3110_s0 + $0x98] sm:$0xff] }
  0x14   :  { %1651 = vmatpush1.bf16.msra.mxu0 %v1650_v26  ;;  %1677 = vmatpush1.bf16.msra.mxu1 %v1650_v26  ;;  %v229_v26 = vmul.f32 %v1752_v16, %v89_v10  ;;  %v308_v56 = vadd.f32 %v1806_v39, %v168_v37  ;;  %v235_v58 = vmul.f32 %v1752_v16, %v95_v47  ;;  %v437_v59 = vmax.f32 %v309_v43, 0.0 }
  0x15   :  { %1652 = vmatprep.subr.bf16.mxu0 %v1684_v1  ;;  %1669 = vmatprep.subr.bf16.mxu1 %v1684_v1  ;;  %v311_v60 = vadd.f32 %v1754_v17, %v171_v44  ;;  %v173_v61 = vmul.f32 %v1752_v16, %v33_v48  ;;  %v373_v63 = vadd.f32 %v1754_v17, %v233_v52  ;;  %v498_v2 = vmax.f32 %v370_v50, 0.0  ;;  %v100_v44 = vld [vmem:[%s3110_s0 + $0x280] sm:$0xff]  ;;  %v103_v48 = vld [vmem:[%s3110_s0 + $0x298] sm:$0xff]  ;;  %v38_v52 = vld [vmem:[%s3110_s0 + $0x90] sm:$0xff] }
  0x16   :  { %v369_v32 = vadd.f32 %v1754_v17, %v229_v26  ;;  %v375_v7 = vadd.f32 %v1754_v17, %v235_v58  ;;  %v436_v9 = vmax.f32 %v308_v56, 0.0  ;;  %v237_v18 = vmul.f32 %v1752_v16, %v97_v5  ;;  %v98_v26 = vld [vmem:[%s3110_s0 + $0x270] sm:$0xff]  ;;  %v40_v5 = vld [vmem:[%s3110_s0 + $0xa0] sm:$0xff] }
  0x17   :  { %v501_v6 = vmax.f32 %v373_v63, 0.0  ;;  %v439_v12 = vmax.f32 %v311_v60, 0.0  ;;  %v313_v13 = vadd.f32 %v1754_v17, %v173_v61  ;;  %v239_v25 = vmul.f32 %v1752_v16, %v99_v11  ;;  %v102_v60 = vld [vmem:[%s3110_s0 + $0x290] sm:$0xff] }
  0x18   :  { %1654 = vmatpush1.bf16.msra.mxu0 %v1653_v30  ;;  %1678 = vmatpush1.bf16.msra.mxu1 %v1653_v30  ;;  %v231_v30 = vmul.f32 %v1752_v16, %v91_v15  ;;  %v497_v46 = vmax.f32 %v369_v32, 0.0  ;;  %v34_v15 = vld [vmem:[%s3110_s0 + $0x70] sm:$0xff]  ;;  %v377_v24 = vadd.f32 %v1754_v17, %v237_v18  ;;  %v238_v40 = vmul.f32 %v1790_v33, %v98_v26  ;;  %v107_v18 = vld [vmem:[%s3110_s0 + $0x2b8] sm:$0xff] }
  0x19   :  { %1655 = vmatprep.subr.bf16.mxu0 %v1684_v1  ;;  %1670 = vmatprep.subr.bf16.mxu1 %v1684_v1  ;;  %v441_v31 = vmax.f32 %v313_v13, 0.0  ;;  %v240_v56 = vmul.f32 %v1790_v33, %v100_v44  ;;  %v178_v63 = vmul.f32 %v1790_v33, %v38_v52  ;;  %v111_v52 = vld [vmem:[%s3110_s0 + $0x2d8] sm:$0xff] }
  0x1a   :  { %v371_v38 = vadd.f32 %v1754_v17, %v231_v30  ;;  %v101_v30 = vld [vmem:[%s3110_s0 + $0x288] sm:$0xff] }
  0x1b   :  { %v241_v43 = vmul.f32 %v1752_v16, %v101_v30  ;;  %v106_v30 = vld [vmem:[%s3110_s0 + $0x2b0] sm:$0xff] }
  0x1c   :  { %1657 = vmatpush1.bf16.msra.mxu0 %v1656_v34  ;;  %1679 = vmatpush1.bf16.msra.mxu1 %v1656_v34  ;;  %v368_v34 = vadd.f32 %v1806_v39, %v228_v27  ;;  %v499_v51 = vmax.f32 %v371_v38, 0.0  ;;  %v246_v44 = vmul.f32 %v1790_v33, %v106_v30 }
  0x1d   :  { %1658 = vmatprep.subr.bf16.mxu0 %v1684_v1  ;;  %1671 = vmatprep.subr.bf16.mxu1 %v1684_v1  ;;  %v381_v58 = vadd.f32 %v1754_v17, %v241_v43 }
  0x1e   :  { %v496_v49 = vmax.f32 %v368_v34, 0.0 }
  0x20   :  { %1660 = vmatpush1.bf16.msra.mxu0 %v1659_v41  ;;  %1680 = vmatpush1.bf16.msra.mxu1 %v1659_v41  ;;  %v92_v41 = vld [vmem:[%s3110_s0 + $0x240] sm:$0xff] }
  0x21   :  { %1661 = vmatprep.subr.bf16.mxu0 %v1684_v1  ;;  %1672 = vmatprep.subr.bf16.mxu1 %v1684_v1  ;;  %v366_v1 = vadd.f32 %v1806_v39, %v226_v3 }
  0x23   :  { %v494_v29 = vmax.f32 %v366_v1, 0.0  ;;  %v310_v1 = vadd.f32 %v1806_v39, %v170_v57 }
  0x24   :  { %1663 = vmatpush1.bf16.msra.mxu0 %v1662_v53  ;;  %1681 = vmatpush1.bf16.msra.mxu1 %v1662_v53  ;;  %v232_v53 = vmul.f32 %v1790_v33, %v92_v41  ;;  %v505_v41 = vmax.f32 %v377_v24, 0.0 }
  0x25   :  { %v438_v27 = vmax.f32 %v310_v1, 0.0  ;;  %v509_v1 = vmax.f32 %v381_v58, 0.0 }
  0x26   :  { %v372_v3 = vadd.f32 %v1806_v39, %v232_v53  ;;  %v41_v53 = vld [vmem:[%s3110_s0 + $0xa8] sm:$0xff] }
  0x27   :  { %832 = vmatmul.mubr.f32.vlgmr.msra.gmra.mrb[0].mxu0 %v428_v62  ;;  %992 = vmatmul.mubr.f32.vlgmr.msra.gmra.mrb[0].mxu1 %v492_v14  ;;  %v32_v62 = vld [vmem:[%s3110_s0 + $0x60] sm:$0xff]  ;;  %v175_v14 = vmul.f32 %v1752_v16, %v35_v0  ;;  %v105_v0 = vld [vmem:[%s3110_s0 + $0x2a8] sm:$0xff] }
  0x28   :  { %1574 = vmatprep.mubr.msk.f32.mxu0 %vm574_vm0, %v431_v4  ;;  %1606 = vmatprep.mubr.msk.f32.mxu1 %vm574_vm0, %v495_v22  ;;  %v234_v4 = vmul.f32 %v1790_v33, %v94_v54  ;;  %v172_v10 = vmul.f32 %v1790_v33, %v32_v62  ;;  %v500_v20 = vmax.f32 %v372_v3, 0.0  ;;  %v236_v22 = vmul.f32 %v1790_v33, %v96_v8 }
  0x29   :  { %v315_v32 = vadd.f32 %v1754_v17, %v175_v14  ;;  %v380_v8 = vadd.f32 %v1806_v39, %v240_v56  ;;  %v245_v11 = vmul.f32 %v1752_v16, %v105_v0  ;;  %v318_v14 = vadd.f32 %v1806_v39, %v178_v63  ;;  %v46_v56 = vld [vmem:[%s3110_s0 + $0xd0] sm:$0xff] }
  0x2a   :  { %v374_v21 = vadd.f32 %v1806_v39, %v234_v4  ;;  %v312_v28 = vadd.f32 %v1806_v39, %v172_v10  ;;  %v376_v38 = vadd.f32 %v1806_v39, %v236_v22  ;;  %v181_v4 = vmul.f32 %v1752_v16, %v41_v53  ;;  %v42_v22 = vld [vmem:[%s3110_s0 + $0xb0] sm:$0xff] }
  0x2b   :  { %837 = vmatmul.mubr.f32.gmra.mrb[2].mxu0 %v430_v19  ;;  %997 = vmatmul.mubr.f32.gmra.mrb[2].mxu1 %v494_v29  ;;  %v37_v19 = vld [vmem:[%s3110_s0 + $0x88] sm:$0xff]  ;;  %v174_v29 = vmul.f32 %v1790_v33, %v34_v15  ;;  %v180_v15 = vmul.f32 %v1790_v33, %v40_v5  ;;  %v508_v24 = vmax.f32 %v380_v8, 0.0  ;;  %v251_v63 = vmul.f32 %v1752_v16, %v111_v52  ;;  %v110_v0 = vld [vmem:[%s3110_s0 + $0x2d0] sm:$0xff]  ;;  %v116_v52 = vld [vmem:[%s3110_s0 + $0x300] sm:$0xff] }
  0x2c   :  { %1575 = vmatprep.mubr.msk.f32.mxu0 %vm574_vm0, %v433_v23  ;;  %1607 = vmatprep.mubr.msk.f32.mxu1 %vm574_vm0, %v497_v46  ;;  %v503_v23 = vmax.f32 %v375_v7, 0.0  ;;  %v177_v34 = vmul.f32 %v1752_v16, %v37_v19  ;;  %v502_v37 = vmax.f32 %v374_v21, 0.0  ;;  %v440_v45 = vmax.f32 %v312_v28, 0.0  ;;  %v113_v5 = vld [vmem:[%s3110_s0 + $0x2e8] sm:$0xff] }
  0x2d   :  { %v314_v46 = vadd.f32 %v1806_v39, %v174_v29  ;;  %v504_v54 = vmax.f32 %v376_v38, 0.0  ;;  %v385_v28 = vadd.f32 %v1754_v17, %v245_v11  ;;  %v247_v29 = vmul.f32 %v1752_v16, %v107_v18  ;;  %v112_v18 = vld [vmem:[%s3110_s0 + $0x2e0] sm:$0xff] }
  0x2e   :  { %v317_v50 = vadd.f32 %v1754_v17, %v177_v34  ;;  %v182_v34 = vmul.f32 %v1790_v33, %v42_v22  ;;  %v115_v22 = vld [vmem:[%s3110_s0 + $0x2f8] sm:$0xff]  ;;  %v252_v30 = vmul.f32 %v1790_v33, %v112_v18 }
  0x2f   :  { %842 = vmatmul.mubr.f32.gmra.mrb[4].mxu0 %v432_v35  ;;  %1002 = vmatmul.mubr.f32.gmra.mrb[4].mxu1 %v496_v49  ;;  %v36_v35 = vld [vmem:[%s3110_s0 + $0x80] sm:$0xff]  ;;  %v443_v49 = vmax.f32 %v315_v32, 0.0  ;;  %v442_v61 = vmax.f32 %v314_v46, 0.0  ;;  %v320_v32 = vadd.f32 %v1806_v39, %v180_v15  ;;  %v387_v46 = vadd.f32 %v1754_v17, %v247_v29 }
  0x30   :  { %1576 = vmatprep.mubr.msk.f32.mxu0 %vm574_vm0, %v435_v42  ;;  %1608 = vmatprep.mubr.msk.f32.mxu1 %vm574_vm0, %v499_v51  ;;  %v379_v42 = vadd.f32 %v1754_v17, %v239_v25  ;;  %v176_v47 = vmul.f32 %v1790_v33, %v36_v35  ;;  %v179_v51 = vmul.f32 %v1752_v16, %v39_v36  ;;  %v109_v35 = vld [vmem:[%s3110_s0 + $0x2c8] sm:$0xff] }
  0x31   :  { %v253_v15 = vmul.f32 %v1752_v16, %v113_v5  ;;  %v118_v5 = vld [vmem:[%s3110_s0 + $0x310] sm:$0xff] }
  0x32   :  { %v507_v57 = vmax.f32 %v379_v42, 0.0  ;;  %v316_v62 = vadd.f32 %v1806_v39, %v176_v47  ;;  %v319_v3 = vadd.f32 %v1754_v17, %v179_v51  ;;  %v249_v47 = vmul.f32 %v1752_v16, %v109_v35  ;;  %v114_v35 = vld [vmem:[%s3110_s0 + $0x2f0] sm:$0xff] }
  0x33   :  { %847 = vmatmul.mubr.f32.gmra.mrb[6].mxu0 %v434_v55  ;;  %1007 = vmatmul.mubr.f32.gmra.mrb[6].mxu1 %v498_v2  ;;  %v378_v55 = vadd.f32 %v1806_v39, %v238_v40  ;;  %v445_v2 = vmax.f32 %v317_v50, 0.0  ;;  %v44_v40 = vld [vmem:[%s3110_s0 + $0xc0] sm:$0xff]  ;;  %v322_v50 = vadd.f32 %v1806_v39, %v182_v34  ;;  %v255_v34 = vmul.f32 %v1752_v16, %v115_v22 }
  0x34   :  { %1577 = vmatprep.mubr.msk.f32.mxu0 %vm574_vm0, %v437_v59  ;;  %1609 = vmatprep.mubr.msk.f32.mxu1 %vm574_vm0, %v501_v6  ;;  %v243_v59 = vmul.f32 %v1752_v16, %v103_v48  ;;  %v43_v6 = vld [vmem:[%s3110_s0 + $0xb8] sm:$0xff]  ;;  %v444_v13 = vmax.f32 %v316_v62, 0.0  ;;  %v447_v19 = vmax.f32 %v319_v3, 0.0  ;;  %v108_v48 = vld [vmem:[%s3110_s0 + $0x2c0] sm:$0xff]  ;;  %v184_v51 = vmul.f32 %v1790_v33, %v44_v40  ;;  %v117_v40 = vld [vmem:[%s3110_s0 + $0x308] sm:$0xff] }
  0x35   :  { %v506_v7 = vmax.f32 %v378_v55, 0.0  ;;  %v183_v21 = vmul.f32 %v1752_v16, %v43_v6  ;;  %v389_v62 = vadd.f32 %v1754_v17, %v249_v47  ;;  %v392_v47 = vadd.f32 %v1806_v39, %v252_v30  ;;  %v120_v22 = vld [vmem:[%s3110_s0 + $0x320] sm:$0xff]  ;;  %v58_v30 = vld [vmem:[%s3110_s0 + $0x130] sm:$0xff] }
  0x36   :  { %v383_v10 = vadd.f32 %v1754_v17, %v243_v59  ;;  %v386_v59 = vadd.f32 %v1806_v39, %v246_v44  ;;  %v324_v3 = vadd.f32 %v1806_v39, %v184_v51  ;;  %v52_v44 = vld [vmem:[%s3110_s0 + $0x100] sm:$0xff]  ;;  %v257_v51 = vmul.f32 %v1752_v16, %v117_v40  ;;  %v122_v40 = vld [vmem:[%s3110_s0 + $0x330] sm:$0xff] }
  0x37   :  { %852 = vmatmul.mubr.f32.gmra.mrb[8].mxu0 %v436_v9  ;;  %1012 = vmatmul.mubr.f32.gmra.mrb[8].mxu1 %v500_v20  ;;  %v242_v9 = vmul.f32 %v1790_v33, %v102_v60  ;;  %v321_v20 = vadd.f32 %v1754_v17, %v181_v4  ;;  %v248_v60 = vmul.f32 %v1790_v33, %v108_v48 }
  0x38   :  { %1578 = vmatprep.mubr.msk.f32.mxu0 %vm574_vm0, %v439_v12  ;;  %1610 = vmatprep.mubr.msk.f32.mxu1 %vm574_vm0, %v503_v23  ;;  %v104_v12 = vld [vmem:[%s3110_s0 + $0x2a0] sm:$0xff]  ;;  %v45_v23 = vld [vmem:[%s3110_s0 + $0xc8] sm:$0xff]  ;;  %v186_v4 = vmul.f32 %v1790_v33, %v46_v56  ;;  %v254_v48 = vmul.f32 %v1790_v33, %v114_v35  ;;  %v119_v56 = vld [vmem:[%s3110_s0 + $0x318] sm:$0xff]  ;;  %v258_v18 = vmul.f32 %v1790_v33, %v118_v5 }
  0x39   :  { %v382_v25 = vadd.f32 %v1806_v39, %v242_v9  ;;  %v244_v26 = vmul.f32 %v1790_v33, %v104_v12  ;;  %v449_v36 = vmax.f32 %v321_v20, 0.0  ;;  %v185_v38 = vmul.f32 %v1752_v16, %v45_v23  ;;  %v48_v9 = vld [vmem:[%s3110_s0 + $0xe0] sm:$0xff] }
  0x3a   :  { %v388_v11 = vadd.f32 %v1806_v39, %v248_v60  ;;  %v250_v12 = vmul.f32 %v1790_v33, %v110_v0  ;;  %v326_v20 = vadd.f32 %v1806_v39, %v186_v4  ;;  %v54_v60 = vld [vmem:[%s3110_s0 + $0x110] sm:$0xff]  ;;  %v256_v0 = vmul.f32 %v1790_v33, %v116_v52 }
  0x3b   :  { %857 = vmatmul.mubr.f32.gmra.mrb[10].mxu0 %v438_v27  ;;  %1017 = vmatmul.mubr.f32.gmra.mrb[10].mxu1 %v502_v37  ;;  %v511_v27 = vmax.f32 %v383_v10, 0.0  ;;  %v323_v37 = vadd.f32 %v1754_v17, %v183_v21  ;;  %v510_v42 = vmax.f32 %v382_v25, 0.0  ;;  %v384_v43 = vadd.f32 %v1806_v39, %v244_v26  ;;  %v50_v26 = vld [vmem:[%s3110_s0 + $0xf0] sm:$0xff] }
  0x3c   :  { %1579 = vmatprep.mubr.msk.f32.mxu0 %vm574_vm0, %v441_v31  ;;  %1611 = vmatprep.mubr.msk.f32.mxu1 %vm574_vm0, %v505_v41  ;;  %v446_v31 = vmax.f32 %v318_v14, 0.0  ;;  %v47_v41 = vld [vmem:[%s3110_s0 + $0xd8] sm:$0xff]  ;;  %v514_v10 = vmax.f32 %v386_v59, 0.0  ;;  %v391_v14 = vadd.f32 %v1754_v17, %v251_v63  ;;  %v188_v21 = vmul.f32 %v1790_v33, %v48_v9  ;;  %v121_v9 = vld [vmem:[%s3110_s0 + $0x328] sm:$0xff] }
  0x3d   :  { %v451_v53 = vmax.f32 %v323_v37, 0.0  ;;  %v187_v55 = vmul.f32 %v1752_v16, %v47_v41  ;;  %v512_v58 = vmax.f32 %v384_v43, 0.0  ;;  %v390_v29 = vadd.f32 %v1806_v39, %v250_v12  ;;  %v56_v12 = vld [vmem:[%s3110_s0 + $0x120] sm:$0xff] }
  0x3e   :  { %v328_v37 = vadd.f32 %v1806_v39, %v188_v21  ;;  %v394_v63 = vadd.f32 %v1806_v39, %v254_v48  ;;  %v259_v4 = vmul.f32 %v1752_v16, %v119_v56  ;;  %v261_v21 = vmul.f32 %v1752_v16, %v121_v9  ;;  %v60_v48 = vld [vmem:[%s3110_s0 + $0x140] sm:$0xff]  ;;  %v126_v9 = vld [vmem:[%s3110_s0 + $0x350] sm:$0xff] }
  0x3f   :  { %862 = vmatmul.mubr.f32.gmra.mrb[12].mxu0 %v440_v45  ;;  %1022 = vmatmul.mubr.f32.gmra.mrb[12].mxu1 %v504_v54  ;;  %v513_v45 = vmax.f32 %v385_v28, 0.0  ;;  %v325_v54 = vadd.f32 %v1754_v17, %v185_v38  ;;  %v516_v28 = vmax.f32 %v388_v11, 0.0  ;;  %v190_v38 = vmul.f32 %v1790_v33, %v50_v26  ;;  %v123_v26 = vld [vmem:[%s3110_s0 + $0x338] sm:$0xff]  ;;  %v124_v56 = vld [vmem:[%s3110_s0 + $0x340] sm:$0xff] }
  0x40   :  { %1580 = vmatprep.mubr.msk.f32.mxu0 %vm574_vm0, %v443_v49  ;;  %1612 = vmatprep.mubr.msk.f32.mxu1 %vm574_vm0, %v507_v57  ;;  %v448_v49 = vmax.f32 %v320_v32, 0.0  ;;  %v49_v57 = vld [vmem:[%s3110_s0 + $0xe8] sm:$0xff]  ;;  %v393_v32 = vadd.f32 %v1754_v17, %v253_v15  ;;  %v396_v15 = vadd.f32 %v1806_v39, %v256_v0  ;;  %v260_v35 = vmul.f32 %v1790_v33, %v120_v22  ;;  %v62_v0 = vld [vmem:[%s3110_s0 + $0x150] sm:$0xff] }
  0x41   :  { %v453_v6 = vmax.f32 %v325_v54, 0.0  ;;  %v189_v8 = vmul.f32 %v1752_v16, %v49_v57  ;;  %v330_v54 = vadd.f32 %v1806_v39, %v190_v38  ;;  %v263_v38 = vmul.f32 %v1752_v16, %v123_v26  ;;  %v128_v26 = vld [vmem:[%s3110_s0 + $0x360] sm:$0xff] }
  0x42   :  { %v262_v52 = vmul.f32 %v1790_v33, %v122_v40  ;;  %v264_v5 = vmul.f32 %v1790_v33, %v124_v56  ;;  %v266_v22 = vmul.f32 %v1790_v33, %v126_v9  ;;  %v268_v40 = vmul.f32 %v1790_v33, %v128_v26 }
  0x43   :  { %867 = vmatmul.mubr.f32.gmra.mrb[14].mxu0 %v442_v61  ;;  %1027 = vmatmul.mubr.f32.gmra.mrb[14].mxu1 %v506_v7  ;;  %v515_v61 = vmax.f32 %v387_v46, 0.0  ;;  %v327_v7 = vadd.f32 %v1754_v17, %v187_v55  ;;  %v518_v46 = vmax.f32 %v390_v29, 0.0  ;;  %v192_v55 = vmul.f32 %v1790_v33, %v52_v44  ;;  %v125_v44 = vld [vmem:[%s3110_s0 + $0x348] sm:$0xff] }
  0x44   :  { %1581 = vmatprep.mubr.msk.f32.mxu0 %vm574_vm0, %v445_v2  ;;  %1613 = vmatprep.mubr.msk.f32.mxu1 %vm574_vm0, %v509_v1  ;;  %v450_v2 = vmax.f32 %v322_v50, 0.0  ;;  %v51_v1 = vld [vmem:[%s3110_s0 + $0xf8] sm:$0xff]  ;;  %v395_v50 = vadd.f32 %v1754_v17, %v255_v34  ;;  %v398_v34 = vadd.f32 %v1806_v39, %v258_v18  ;;  %v64_v18 = vld [vmem:[%s3110_s0 + $0x160] sm:$0xff] }
  0x45   :  { %v455_v23 = vmax.f32 %v327_v7, 0.0  ;;  %v191_v25 = vmul.f32 %v1752_v16, %v51_v1  ;;  %v332_v7 = vadd.f32 %v1806_v39, %v192_v55  ;;  %v265_v55 = vmul.f32 %v1752_v16, %v125_v44  ;;  %v130_v44 = vld [vmem:[%s3110_s0 + $0x370] sm:$0xff] }
  0x46   :  { %v270_v56 = vmul.f32 %v1790_v33, %v130_v44 }
  0x47   :  { %872 = vmatmul.mubr.f32.gmra.mrb[16].mxu0 %v444_v13  ;;  %1032 = vmatmul.mubr.f32.gmra.mrb[16].mxu1 %v508_v24  ;;  %v517_v13 = vmax.f32 %v389_v62, 0.0  ;;  %v329_v24 = vadd.f32 %v1754_v17, %v189_v8  ;;  %v520_v62 = vmax.f32 %v392_v47, 0.0  ;;  %v194_v8 = vmul.f32 %v1790_v33, %v54_v60  ;;  %v127_v60 = vld [vmem:[%s3110_s0 + $0x358] sm:$0xff] }
  0x48   :  { %1582 = vmatprep.mubr.msk.f32.mxu0 %vm574_vm0, %v447_v19  ;;  %1614 = vmatprep.mubr.msk.f32.mxu1 %vm574_vm0, %v511_v27  ;;  %v452_v19 = vmax.f32 %v324_v3, 0.0  ;;  %v53_v27 = vld [vmem:[%s3110_s0 + $0x108] sm:$0xff]  ;;  %v397_v3 = vadd.f32 %v1754_v17, %v257_v51  ;;  %v400_v51 = vadd.f32 %v1806_v39, %v260_v35  ;;  %v66_v35 = vld [vmem:[%s3110_s0 + $0x170] sm:$0xff] }
  0x49   :  { %v457_v41 = vmax.f32 %v329_v24, 0.0  ;;  %v193_v43 = vmul.f32 %v1752_v16, %v53_v27  ;;  %v334_v24 = vadd.f32 %v1806_v39, %v194_v8  ;;  %v267_v8 = vmul.f32 %v1752_v16, %v127_v60  ;;  %v132_v60 = vld [vmem:[%s3110_s0 + $0x380] sm:$0xff] }
  0x4a   :  { %v272_v9 = vmul.f32 %v1790_v33, %v132_v60 }
  0x4b   :  { %877 = vmatmul.mubr.f32.gmra.mrb[18].mxu0 %v446_v31  ;;  %1037 = vmatmul.mubr.f32.gmra.mrb[18].mxu1 %v510_v42  ;;  %v519_v31 = vmax.f32 %v391_v14, 0.0  ;;  %v331_v42 = vadd.f32 %v1754_v17, %v191_v25  ;;  %v522_v14 = vmax.f32 %v394_v63, 0.0  ;;  %v196_v25 = vmul.f32 %v1790_v33, %v56_v12  ;;  %v129_v12 = vld [vmem:[%s3110_s0 + $0x368] sm:$0xff] }
  0x4c   :  { %1583 = vmatprep.mubr.msk.f32.mxu0 %vm574_vm0, %v449_v36  ;;  %1615 = vmatprep.mubr.msk.f32.mxu1 %vm574_vm0, %v513_v45  ;;  %v454_v36 = vmax.f32 %v326_v20, 0.0  ;;  %v55_v45 = vld [vmem:[%s3110_s0 + $0x118] sm:$0xff]  ;;  %v399_v20 = vadd.f32 %v1754_v17, %v259_v4  ;;  %v402_v4 = vadd.f32 %v1806_v39, %v262_v52  ;;  %v68_v52 = vld [vmem:[%s3110_s0 + $0x180] sm:$0xff] }
  0x4d   :  { %v459_v57 = vmax.f32 %v331_v42, 0.0  ;;  %v195_v59 = vmul.f32 %v1752_v16, %v55_v45  ;;  %v336_v42 = vadd.f32 %v1806_v39, %v196_v25  ;;  %v269_v25 = vmul.f32 %v1752_v16, %v129_v12  ;;  %v134_v12 = vld [vmem:[%s3110_s0 + $0x390] sm:$0xff] }
  0x4e   :  { %v274_v26 = vmul.f32 %v1790_v33, %v134_v12 }
  0x4f   :  { %882 = vmatmul.mubr.f32.gmra.mrb[20].mxu0 %v448_v49  ;;  %1042 = vmatmul.mubr.f32.gmra.mrb[20].mxu1 %v512_v58  ;;  %v521_v49 = vmax.f32 %v393_v32, 0.0  ;;  %v333_v58 = vadd.f32 %v1754_v17, %v193_v43  ;;  %v524_v32 = vmax.f32 %v396_v15, 0.0  ;;  %v198_v43 = vmul.f32 %v1790_v33, %v58_v30  ;;  %v131_v30 = vld [vmem:[%s3110_s0 + $0x378] sm:$0xff] }
  0x50   :  { %1584 = vmatprep.mubr.msk.f32.mxu0 %vm574_vm0, %v451_v53  ;;  %1616 = vmatprep.mubr.msk.f32.mxu1 %vm574_vm0, %v515_v61  ;;  %v456_v53 = vmax.f32 %v328_v37, 0.0  ;;  %v57_v61 = vld [vmem:[%s3110_s0 + $0x128] sm:$0xff]  ;;  %v401_v37 = vadd.f32 %v1754_v17, %v261_v21  ;;  %v404_v21 = vadd.f32 %v1806_v39, %v264_v5  ;;  %v70_v5 = vld [vmem:[%s3110_s0 + $0x190] sm:$0xff] }
  0x51   :  { %v461_v1 = vmax.f32 %v333_v58, 0.0  ;;  %v197_v11 = vmul.f32 %v1752_v16, %v57_v61  ;;  %v338_v58 = vadd.f32 %v1806_v39, %v198_v43  ;;  %v271_v43 = vmul.f32 %v1752_v16, %v131_v30  ;;  %v136_v30 = vld [vmem:[%s3110_s0 + $0x3a0] sm:$0xff] }
  0x52   :  { %v276_v44 = vmul.f32 %v1790_v33, %v136_v30 }
  0x53   :  { %887 = vmatmul.mubr.f32.gmra.mrb[22].mxu0 %v450_v2  ;;  %1047 = vmatmul.mubr.f32.gmra.mrb[22].mxu1 %v514_v10  ;;  %v523_v2 = vmax.f32 %v395_v50, 0.0  ;;  %v335_v10 = vadd.f32 %v1754_v17, %v195_v59  ;;  %v526_v50 = vmax.f32 %v398_v34, 0.0  ;;  %v200_v59 = vmul.f32 %v1790_v33, %v60_v48  ;;  %v133_v48 = vld [vmem:[%s3110_s0 + $0x388] sm:$0xff] }
  0x54   :  { %1585 = vmatprep.mubr.msk.f32.mxu0 %vm574_vm0, %v453_v6  ;;  %1617 = vmatprep.mubr.msk.f32.mxu1 %vm574_vm0, %v517_v13  ;;  %v458_v6 = vmax.f32 %v330_v54, 0.0  ;;  %v59_v13 = vld [vmem:[%s3110_s0 + $0x138] sm:$0xff]  ;;  %v403_v54 = vadd.f32 %v1754_v17, %v263_v38  ;;  %v406_v38 = vadd.f32 %v1806_v39, %v266_v22  ;;  %v72_v22 = vld [vmem:[%s3110_s0 + $0x1a0] sm:$0xff] }
  0x55   :  { %v463_v27 = vmax.f32 %v335_v10, 0.0  ;;  %v199_v29 = vmul.f32 %v1752_v16, %v59_v13  ;;  %v340_v10 = vadd.f32 %v1806_v39, %v200_v59  ;;  %v273_v59 = vmul.f32 %v1752_v16, %v133_v48  ;;  %v138_v48 = vld [vmem:[%s3110_s0 + $0x3b0] sm:$0xff] }
  0x56   :  { %v278_v60 = vmul.f32 %v1790_v33, %v138_v48 }
  0x57   :  { %892 = vmatmul.mubr.f32.gmra.mrb[24].mxu0 %v452_v19  ;;  %1052 = vmatmul.mubr.f32.gmra.mrb[24].mxu1 %v516_v28  ;;  %v525_v19 = vmax.f32 %v397_v3, 0.0  ;;  %v337_v28 = vadd.f32 %v1754_v17, %v197_v11  ;;  %v528_v3 = vmax.f32 %v400_v51, 0.0  ;;  %v202_v11 = vmul.f32 %v1790_v33, %v62_v0  ;;  %v135_v0 = vld [vmem:[%s3110_s0 + $0x398] sm:$0xff] }
  0x58   :  { %1586 = vmatprep.mubr.msk.f32.mxu0 %vm574_vm0, %v455_v23  ;;  %1618 = vmatprep.mubr.msk.f32.mxu1 %vm574_vm0, %v519_v31  ;;  %v460_v23 = vmax.f32 %v332_v7, 0.0  ;;  %v61_v31 = vld [vmem:[%s3110_s0 + $0x148] sm:$0xff]  ;;  %v405_v7 = vadd.f32 %v1754_v17, %v265_v55  ;;  %v408_v55 = vadd.f32 %v1806_v39, %v268_v40  ;;  %v74_v40 = vld [vmem:[%s3110_s0 + $0x1b0] sm:$0xff] }
  0x59   :  { %v465_v45 = vmax.f32 %v337_v28, 0.0  ;;  %v201_v47 = vmul.f32 %v1752_v16, %v61_v31  ;;  %v342_v28 = vadd.f32 %v1806_v39, %v202_v11  ;;  %v275_v11 = vmul.f32 %v1752_v16, %v135_v0  ;;  %v140_v0 = vld [vmem:[%s3110_s0 + $0x3c0] sm:$0xff] }
  0x5a   :  { %v280_v12 = vmul.f32 %v1790_v33, %v140_v0 }
  0x5b   :  { %897 = vmatmul.mubr.f32.gmra.mrb[26].mxu0 %v454_v36  ;;  %1057 = vmatmul.mubr.f32.gmra.mrb[26].mxu1 %v518_v46  ;;  %v527_v36 = vmax.f32 %v399_v20, 0.0  ;;  %v339_v46 = vadd.f32 %v1754_v17, %v199_v29  ;;  %v530_v20 = vmax.f32 %v402_v4, 0.0  ;;  %v204_v29 = vmul.f32 %v1790_v33, %v64_v18  ;;  %v137_v18 = vld [vmem:[%s3110_s0 + $0x3a8] sm:$0xff] }
  0x5c   :  { %1587 = vmatprep.mubr.msk.f32.mxu0 %vm574_vm0, %v457_v41  ;;  %1619 = vmatprep.mubr.msk.f32.mxu1 %vm574_vm0, %v521_v49  ;;  %v462_v41 = vmax.f32 %v334_v24, 0.0  ;;  %v63_v49 = vld [vmem:[%s3110_s0 + $0x158] sm:$0xff]  ;;  %v407_v24 = vadd.f32 %v1754_v17, %v267_v8  ;;  %v410_v8 = vadd.f32 %v1806_v39, %v270_v56  ;;  %v76_v56 = vld [vmem:[%s3110_s0 + $0x1c0] sm:$0xff] }
  0x5d   :  { %v467_v61 = vmax.f32 %v339_v46, 0.0  ;;  %v203_v63 = vmul.f32 %v1752_v16, %v63_v49  ;;  %v344_v46 = vadd.f32 %v1806_v39, %v204_v29  ;;  %v277_v29 = vmul.f32 %v1752_v16, %v137_v18  ;;  %v142_v18 = vld [vmem:[%s3110_s0 + $0x3d0] sm:$0xff] }
  0x5e   :  { %v282_v30 = vmul.f32 %v1790_v33, %v142_v18 }
  0x5f   :  { %902 = vmatmul.mubr.f32.gmra.mrb[28].mxu0 %v456_v53  ;;  %1062 = vmatmul.mubr.f32.gmra.mrb[28].mxu1 %v520_v62  ;;  %v529_v53 = vmax.f32 %v401_v37, 0.0  ;;  %v341_v62 = vadd.f32 %v1754_v17, %v201_v47  ;;  %v532_v37 = vmax.f32 %v404_v21, 0.0  ;;  %v206_v47 = vmul.f32 %v1790_v33, %v66_v35  ;;  %v139_v35 = vld [vmem:[%s3110_s0 + $0x3b8] sm:$0xff] }
  0x60   :  { %1588 = vmatprep.mubr.msk.f32.mxu0 %vm574_vm0, %v459_v57  ;;  %1620 = vmatprep.mubr.msk.f32.mxu1 %vm574_vm0, %v523_v2  ;;  %v464_v57 = vmax.f32 %v336_v42, 0.0  ;;  %v65_v2 = vld [vmem:[%s3110_s0 + $0x168] sm:$0xff]  ;;  %v409_v42 = vadd.f32 %v1754_v17, %v269_v25  ;;  %v412_v25 = vadd.f32 %v1806_v39, %v272_v9  ;;  %v78_v9 = vld [vmem:[%s3110_s0 + $0x1d0] sm:$0xff] }
  0x61   :  { %v469_v13 = vmax.f32 %v341_v62, 0.0  ;;  %v205_v15 = vmul.f32 %v1752_v16, %v65_v2  ;;  %v346_v62 = vadd.f32 %v1806_v39, %v206_v47  ;;  %v279_v47 = vmul.f32 %v1752_v16, %v139_v35  ;;  %v144_v35 = vld [vmem:[%s3110_s0 + $0x3e0] sm:$0xff] }
  0x63   :  { %907 = vmatmul.mubr.f32.gmra.mrb[30].mxu0 %v458_v6  ;;  %1067 = vmatmul.mubr.f32.gmra.mrb[30].mxu1 %v522_v14  ;;  %v531_v6 = vmax.f32 %v403_v54, 0.0  ;;  %v343_v14 = vadd.f32 %v1754_v17, %v203_v63  ;;  %v534_v54 = vmax.f32 %v406_v38, 0.0  ;;  %v208_v63 = vmul.f32 %v1790_v33, %v68_v52  ;;  %v141_v52 = vld [vmem:[%s3110_s0 + $0x3c8] sm:$0xff] }
  0x64   :  { %1589 = vmatprep.mubr.msk.f32.mxu0 %vm574_vm0, %v461_v1  ;;  %1621 = vmatprep.mubr.msk.f32.mxu1 %vm574_vm0, %v525_v19  ;;  %v466_v1 = vmax.f32 %v338_v58, 0.0  ;;  %v67_v19 = vld [vmem:[%s3110_s0 + $0x178] sm:$0xff]  ;;  %v411_v58 = vadd.f32 %v1754_v17, %v271_v43  ;;  %v414_v43 = vadd.f32 %v1806_v39, %v274_v26  ;;  %v80_v26 = vld [vmem:[%s3110_s0 + $0x1e0] sm:$0xff] }
  0x65   :  { %v471_v31 = vmax.f32 %v343_v14, 0.0  ;;  %v207_v34 = vmul.f32 %v1752_v16, %v67_v19  ;;  %v348_v14 = vadd.f32 %v1806_v39, %v208_v63  ;;  %v281_v63 = vmul.f32 %v1752_v16, %v141_v52 }
  0x67   :  { %912 = vmatmul.mubr.f32.gmra.mrb[32].mxu0 %v460_v23  ;;  %1072 = vmatmul.mubr.f32.gmra.mrb[32].mxu1 %v524_v32  ;;  %v533_v23 = vmax.f32 %v405_v7, 0.0  ;;  %v345_v32 = vadd.f32 %v1754_v17, %v205_v15  ;;  %v536_v7 = vmax.f32 %v408_v55, 0.0  ;;  %v210_v15 = vmul.f32 %v1790_v33, %v70_v5  ;;  %v143_v5 = vld [vmem:[%s3110_s0 + $0x3d8] sm:$0xff] }
  0x68   :  { %1590 = vmatprep.mubr.msk.f32.mxu0 %vm574_vm0, %v463_v27  ;;  %1622 = vmatprep.mubr.msk.f32.mxu1 %vm574_vm0, %v527_v36  ;;  %v468_v27 = vmax.f32 %v340_v10, 0.0  ;;  %v69_v36 = vld [vmem:[%s3110_s0 + $0x188] sm:$0xff]  ;;  %v413_v10 = vadd.f32 %v1754_v17, %v273_v59  ;;  %v416_v59 = vadd.f32 %v1806_v39, %v276_v44  ;;  %v82_v44 = vld [vmem:[%s3110_s0 + $0x1f0] sm:$0xff] }
  0x69   :  { %v473_v49 = vmax.f32 %v345_v32, 0.0  ;;  %v209_v51 = vmul.f32 %v1752_v16, %v69_v36  ;;  %v350_v32 = vadd.f32 %v1806_v39, %v210_v15  ;;  %v283_v15 = vmul.f32 %v1752_v16, %v143_v5 }
  0x6b   :  { %917 = vmatmul.mubr.f32.gmra.mrb[34].mxu0 %v462_v41  ;;  %1077 = vmatmul.mubr.f32.gmra.mrb[34].mxu1 %v526_v50  ;;  %v535_v41 = vmax.f32 %v407_v24, 0.0  ;;  %v347_v50 = vadd.f32 %v1754_v17, %v207_v34  ;;  %v538_v24 = vmax.f32 %v410_v8, 0.0  ;;  %v212_v34 = vmul.f32 %v1790_v33, %v72_v22  ;;  %v145_v22 = vld [vmem:[%s3110_s0 + $0x3e8] sm:$0xff] }
  0x6c   :  { %1591 = vmatprep.mubr.msk.f32.mxu0 %vm574_vm0, %v465_v45  ;;  %1623 = vmatprep.mubr.msk.f32.mxu1 %vm574_vm0, %v529_v53  ;;  %v470_v45 = vmax.f32 %v342_v28, 0.0  ;;  %v71_v53 = vld [vmem:[%s3110_s0 + $0x198] sm:$0xff]  ;;  %v415_v28 = vadd.f32 %v1754_v17, %v275_v11  ;;  %v418_v11 = vadd.f32 %v1806_v39, %v278_v60 }
  0x6d   :  { %v475_v2 = vmax.f32 %v347_v50, 0.0  ;;  %v211_v4 = vmul.f32 %v1752_v16, %v71_v53  ;;  %v352_v50 = vadd.f32 %v1806_v39, %v212_v34  ;;  %v285_v34 = vmul.f32 %v1752_v16, %v145_v22 }
  0x6f   :  { %922 = vmatmul.mubr.f32.gmra.mrb[36].mxu0 %v464_v57  ;;  %1082 = vmatmul.mubr.f32.gmra.mrb[36].mxu1 %v528_v3  ;;  %v537_v57 = vmax.f32 %v409_v42, 0.0  ;;  %v349_v3 = vadd.f32 %v1754_v17, %v209_v51  ;;  %v540_v42 = vmax.f32 %v412_v25, 0.0  ;;  %v214_v51 = vmul.f32 %v1790_v33, %v74_v40  ;;  %v147_v40 = vld [vmem:[%s3110_s0 + $0x3f8] sm:$0xff] }
  0x70   :  { %1592 = vmatprep.mubr.msk.f32.mxu0 %vm574_vm0, %v467_v61  ;;  %1624 = vmatprep.mubr.msk.f32.mxu1 %vm574_vm0, %v531_v6  ;;  %v472_v61 = vmax.f32 %v344_v46, 0.0  ;;  %v73_v6 = vld [vmem:[%s3110_s0 + $0x1a8] sm:$0xff]  ;;  %v417_v46 = vadd.f32 %v1754_v17, %v277_v29  ;;  %v420_v29 = vadd.f32 %v1806_v39, %v280_v12 }
  0x71   :  { %v477_v19 = vmax.f32 %v349_v3, 0.0  ;;  %v213_v21 = vmul.f32 %v1752_v16, %v73_v6  ;;  %v354_v3 = vadd.f32 %v1806_v39, %v214_v51  ;;  %v146_v51 = vld [vmem:[%s3110_s0 + $0x3f0] sm:$0xff] }
  0x73   :  { %927 = vmatmul.mubr.f32.gmra.mrb[38].mxu0 %v466_v1  ;;  %1087 = vmatmul.mubr.f32.gmra.mrb[38].mxu1 %v530_v20  ;;  %v539_v1 = vmax.f32 %v411_v58, 0.0  ;;  %v351_v20 = vadd.f32 %v1754_v17, %v211_v4  ;;  %v542_v58 = vmax.f32 %v414_v43, 0.0  ;;  %v216_v4 = vmul.f32 %v1790_v33, %v76_v56 }
  0x74   :  { %1593 = vmatprep.mubr.msk.f32.mxu0 %vm574_vm0, %v469_v13  ;;  %1625 = vmatprep.mubr.msk.f32.mxu1 %vm574_vm0, %v533_v23  ;;  %v474_v13 = vmax.f32 %v346_v62, 0.0  ;;  %v75_v23 = vld [vmem:[%s3110_s0 + $0x1b8] sm:$0xff]  ;;  %v419_v62 = vadd.f32 %v1754_v17, %v279_v47  ;;  %v284_v47 = vmul.f32 %v1790_v33, %v144_v35 }
  0x75   :  { %v479_v36 = vmax.f32 %v351_v20, 0.0  ;;  %v215_v38 = vmul.f32 %v1752_v16, %v75_v23  ;;  %v356_v20 = vadd.f32 %v1806_v39, %v216_v4 }
  0x77   :  { %932 = vmatmul.mubr.f32.gmra.mrb[40].mxu0 %v468_v27  ;;  %1092 = vmatmul.mubr.f32.gmra.mrb[40].mxu1 %v532_v37  ;;  %v541_v27 = vmax.f32 %v413_v10, 0.0  ;;  %v353_v37 = vadd.f32 %v1754_v17, %v213_v21  ;;  %v544_v10 = vmax.f32 %v416_v59, 0.0  ;;  %v218_v21 = vmul.f32 %v1790_v33, %v78_v9 }
  0x78   :  { %1594 = vmatprep.mubr.msk.f32.mxu0 %vm574_vm0, %v471_v31  ;;  %1626 = vmatprep.mubr.msk.f32.mxu1 %vm574_vm0, %v535_v41  ;;  %v476_v31 = vmax.f32 %v348_v14, 0.0  ;;  %v77_v41 = vld [vmem:[%s3110_s0 + $0x1c8] sm:$0xff]  ;;  %v421_v14 = vadd.f32 %v1754_v17, %v281_v63 }
  0x79   :  { %v481_v53 = vmax.f32 %v353_v37, 0.0  ;;  %v217_v55 = vmul.f32 %v1752_v16, %v77_v41  ;;  %v358_v37 = vadd.f32 %v1806_v39, %v218_v21 }
  0x7b   :  { %937 = vmatmul.mubr.f32.gmra.mrb[42].mxu0 %v470_v45  ;;  %1097 = vmatmul.mubr.f32.gmra.mrb[42].mxu1 %v534_v54  ;;  %v543_v45 = vmax.f32 %v415_v28, 0.0  ;;  %v355_v54 = vadd.f32 %v1754_v17, %v215_v38  ;;  %v546_v28 = vmax.f32 %v418_v11, 0.0  ;;  %v220_v38 = vmul.f32 %v1790_v33, %v80_v26 }
  0x7c   :  { %1595 = vmatprep.mubr.msk.f32.mxu0 %vm574_vm0, %v473_v49  ;;  %1627 = vmatprep.mubr.msk.f32.mxu1 %vm574_vm0, %v537_v57  ;;  %v478_v49 = vmax.f32 %v350_v32, 0.0  ;;  %v79_v57 = vld [vmem:[%s3110_s0 + $0x1d8] sm:$0xff]  ;;  %v423_v32 = vadd.f32 %v1754_v17, %v283_v15  ;;  %v486_v52 = vmax.f32 %v358_v37, 0.0 }
  0x7d   :  { %v483_v6 = vmax.f32 %v355_v54, 0.0  ;;  %v219_v8 = vmul.f32 %v1752_v16, %v79_v57  ;;  %v222_v54 = vmul.f32 %v1790_v33, %v82_v44 }
  0x7e   :  { %v551_v48 = vmax.f32 %v423_v32, 0.0 }
  0x7f   :  { %942 = vmatmul.mubr.f32.gmra.mrb[44].mxu0 %v472_v61  ;;  %1102 = vmatmul.mubr.f32.gmra.mrb[44].mxu1 %v536_v7  ;;  %v545_v61 = vmax.f32 %v417_v46, 0.0  ;;  %v357_v7 = vadd.f32 %v1754_v17, %v217_v55  ;;  %v422_v46 = vadd.f32 %v1806_v39, %v282_v30 }
  0x80   :  { %1596 = vmatprep.mubr.msk.f32.mxu0 %vm574_vm0, %v475_v2  ;;  %1628 = vmatprep.mubr.msk.f32.mxu1 %vm574_vm0, %v539_v1  ;;  %v480_v2 = vmax.f32 %v352_v50, 0.0  ;;  %v81_v1 = vld [vmem:[%s3110_s0 + $0x1e8] sm:$0xff]  ;;  %v287_v50 = vmul.f32 %v1752_v16, %v147_v40 }
  0x81   :  { %v485_v23 = vmax.f32 %v357_v7, 0.0  ;;  %v221_v25 = vmul.f32 %v1752_v16, %v81_v1  ;;  %v550_v57 = vmax.f32 %v422_v46, 0.0 }
  0x82   :  { %v427_v60 = vadd.f32 %v1754_v17, %v287_v50 }
  0x83   :  { %947 = vmatmul.mubr.f32.gmra.mrb[46].mxu0 %v474_v13  ;;  %1107 = vmatmul.mubr.f32.gmra.mrb[46].mxu1 %v538_v24  ;;  %v547_v13 = vmax.f32 %v419_v62, 0.0  ;;  %v359_v24 = vadd.f32 %v1754_v17, %v219_v8  ;;  %v362_v62 = vadd.f32 %v1806_v39, %v222_v54 }
  0x84   :  { %1597 = vmatprep.mubr.msk.f32.mxu0 %vm574_vm0, %v477_v19  ;;  %1629 = vmatprep.mubr.msk.f32.mxu1 %vm574_vm0, %v541_v27  ;;  %v482_v19 = vmax.f32 %v354_v3, 0.0  ;;  %v83_v27 = vld [vmem:[%s3110_s0 + $0x1f8] sm:$0xff]  ;;  %v555_v3 = vmax.f32 %v427_v60, 0.0 }
  0x85   :  { %v487_v41 = vmax.f32 %v359_v24, 0.0  ;;  %v223_v43 = vmul.f32 %v1752_v16, %v83_v27  ;;  %v286_v16 = vmul.f32 %v1790_v33, %v146_v51  ;;  %v490_v33 = vmax.f32 %v362_v62, 0.0 }
  0x87   :  { %952 = vmatmul.mubr.f32.gmra.mrb[48].mxu0 %v476_v31  ;;  %1112 = vmatmul.mubr.f32.gmra.mrb[48].mxu1 %v540_v42  ;;  %v549_v31 = vmax.f32 %v421_v14, 0.0  ;;  %v361_v42 = vadd.f32 %v1754_v17, %v221_v25  ;;  %v363_v56 = vadd.f32 %v1754_v17, %v223_v43 }
  0x88   :  { %1598 = vmatprep.mubr.msk.f32.mxu0 %vm574_vm0, %v479_v36  ;;  %1630 = vmatprep.mubr.msk.f32.mxu1 %vm574_vm0, %v543_v45  ;;  %v484_v36 = vmax.f32 %v356_v20, 0.0  ;;  %v548_v45 = vmax.f32 %v420_v29, 0.0 }
  0x89   :  { %v489_v55 = vmax.f32 %v361_v42, 0.0  ;;  %v491_v63 = vmax.f32 %v363_v56, 0.0 }
  0x8b   :  { %957 = vmatmul.mubr.f32.gmra.mrb[50].mxu0 %v478_v49  ;;  %1117 = vmatmul.mubr.f32.gmra.mrb[50].mxu1 %v542_v58  ;;  %v425_v49 = vadd.f32 %v1754_v17, %v285_v34  ;;  %v424_v58 = vadd.f32 %v1806_v39, %v284_v47 }
  0x8c   :  { %1599 = vmatprep.mubr.msk.f32.mxu0 %vm574_vm0, %v481_v53  ;;  %1631 = vmatprep.mubr.msk.f32.mxu1 %vm574_vm0, %v545_v61  ;;  %v360_v53 = vadd.f32 %v1806_v39, %v220_v38 }
  0x8d   :  { %v553_v59 = vmax.f32 %v425_v49, 0.0  ;;  %v552_v0 = vmax.f32 %v424_v58, 0.0 }
  0x8e   :  { %v488_v61 = vmax.f32 %v360_v53, 0.0 }
  0x8f   :  { %962 = vmatmul.mubr.f32.gmra.mrb[52].mxu0 %v480_v2  ;;  %1122 = vmatmul.mubr.f32.gmra.mrb[52].mxu1 %v544_v10  ;;  %v426_v2 = vadd.f32 %v1806_v39, %v286_v16 }
  0x90   :  { %1600 = vmatprep.mubr.msk.f32.mxu0 %vm574_vm0, %v483_v6  ;;  %1632 = vmatprep.mubr.msk.f32.mxu1 %vm574_vm0, %v547_v13 }
  0x91   :  { %v554_v17 = vmax.f32 %v426_v2, 0.0 }
  0x93   :  { %967 = vmatmul.mubr.f32.gmra.mrb[54].mxu0 %v482_v19  ;;  %1127 = vmatmul.mubr.f32.gmra.mrb[54].mxu1 %v546_v28 }
  0x94   :  { %1601 = vmatprep.mubr.msk.f32.mxu0 %vm574_vm0, %v485_v23  ;;  %1633 = vmatprep.mubr.msk.f32.mxu1 %vm574_vm0, %v549_v31 }
  0x97   :  { %972 = vmatmul.mubr.f32.gmra.mrb[56].mxu0 %v484_v36  ;;  %1132 = vmatmul.mubr.f32.gmra.mrb[56].mxu1 %v548_v45 }
  0x98   :  { %1602 = vmatprep.mubr.msk.f32.mxu0 %vm574_vm0, %v487_v41  ;;  %1634 = vmatprep.mubr.msk.f32.mxu1 %vm574_vm0, %v551_v48 }
  0x9b   :  { %977 = vmatmul.mubr.f32.gmra.mrb[58].mxu0 %v486_v52  ;;  %1137 = vmatmul.mubr.f32.gmra.mrb[58].mxu1 %v550_v57 }
  0x9c   :  { %1603 = vmatprep.mubr.msk.f32.mxu0 %vm574_vm0, %v489_v55  ;;  %1635 = vmatprep.mubr.msk.f32.mxu1 %vm574_vm0, %v553_v59 }
  0x9f   :  { %982 = vmatmul.mubr.f32.gmra.mrb[60].mxu0 %v488_v61  ;;  %1142 = vmatmul.mubr.f32.gmra.mrb[60].mxu1 %v552_v0 }
  0xa0   :  { %1604 = vmatprep.mubr.msk.f32.mxu0 %vm574_vm0, %v491_v63  ;;  %1636 = vmatprep.mubr.msk.f32.mxu1 %vm574_vm0, %v555_v3 }
  0xa3   :  { %987 = vmatmul.mubr.f32.gmra.mrb[62].mxu0 %v490_v33  ;;  %1147 = vmatmul.mubr.f32.gmra.mrb[62].mxu1 %v554_v17 }
  0xfa   :  { %v833_v4 = vpop.f32.mrb[0].mxu0  ;;  %v2515_v5 = vpop.f32.mrb[0].mxu1 }
  0xfb   :  { %1497 = vst.msk [vmem:[%s3113_s4] sm:$0xff] %vm1160_vm1, %v833_v4  ;;  %v835_v39 = vpop.f32.mrb[1].mxu0  ;;  %v1298_v6 = vmul.f32 %v833_v4, %v833_v4  ;;  %1529 = vst.msk [vmem:[%s3113_s4 + $0x100] sm:$0xff] %vm1160_vm1, %v2515_v5  ;;  %v995_v7 = vpop.f32.mrb[1].mxu1  ;;  %v1161_v9 = vsel %vm1160_vm1, %v833_v4, 0.0 }
  0xfd   :  { %v1362_v14 = vsel %vm1160_vm1, %v1298_v6, 0.0 }
  0xfe   :  { %v838_v8 = vpop.f32.mrb[2].mxu0  ;;  %v2528_v13 = vpop.f32.mrb[2].mxu1 }
  0xff   :  { %v1162_v1 = vsel %vm1160_vm1, %v838_v8, 0.0  ;;  %v1299_v10 = vmul.f32 %v838_v8, %v838_v8  ;;  %1498 = vst.msk [vmem:[%s3113_s4 + $0x8] sm:$0xff] %vm1160_vm1, %v838_v8  ;;  %v840_v11 = vpop.f32.mrb[3].mxu0  ;;  %1530 = vst.msk [vmem:[%s3113_s4 + $0x108] sm:$0xff] %vm1160_vm1, %v2528_v13  ;;  %v1000_v18 = vpop.f32.mrb[3].mxu1 }
 0x100   :  { %v1163_v12 = vadd.f32 %v1162_v1, %v1161_v9 }
 0x101   :  { %v1363_v15 = vsel %vm1160_vm1, %v1299_v10, 0.0 }
 0x102   :  { %v1364_v19 = vadd.f32 %v1363_v15, %v1362_v14  ;;  %v843_v20 = vpop.f32.mrb[4].mxu0  ;;  %v2542_v25 = vpop.f32.mrb[4].mxu1 }
 0x103   :  { %v1164_v21 = vsel %vm1160_vm1, %v843_v20, 0.0  ;;  %v1300_v22 = vmul.f32 %v843_v20, %v843_v20  ;;  %1499 = vst.msk [vmem:[%s3113_s4 + $0x10] sm:$0xff] %vm1160_vm1, %v843_v20  ;;  %v845_v23 = vpop.f32.mrb[5].mxu0  ;;  %1531 = vst.msk [vmem:[%s3113_s4 + $0x110] sm:$0xff] %vm1160_vm1, %v2542_v25  ;;  %v1005_v27 = vpop.f32.mrb[5].mxu1 }
 0x104   :  { %v1165_v24 = vadd.f32 %v1164_v21, %v1163_v12 }
 0x105   :  { %v1365_v26 = vsel %vm1160_vm1, %v1300_v22, 0.0 }
 0x106   :  { %v1366_v28 = vadd.f32 %v1365_v26, %v1364_v19  ;;  %v848_v29 = vpop.f32.mrb[6].mxu0  ;;  %v2555_v35 = vpop.f32.mrb[6].mxu1 }
 0x107   :  { %v1166_v30 = vsel %vm1160_vm1, %v848_v29, 0.0  ;;  %v1301_v31 = vmul.f32 %v848_v29, %v848_v29  ;;  %1500 = vst.msk [vmem:[%s3113_s4 + $0x18] sm:$0xff] %vm1160_vm1, %v848_v29  ;;  %v850_v32 = vpop.f32.mrb[7].mxu0  ;;  %1532 = vst.msk [vmem:[%s3113_s4 + $0x118] sm:$0xff] %vm1160_vm1, %v2555_v35  ;;  %v1010_v37 = vpop.f32.mrb[7].mxu1 }
 0x108   :  { %v1167_v34 = vadd.f32 %v1166_v30, %v1165_v24 }
 0x109   :  { %v1367_v36 = vsel %vm1160_vm1, %v1301_v31, 0.0 }
 0x10a   :  { %v1368_v38 = vadd.f32 %v1367_v36, %v1366_v28  ;;  %v853_v40 = vpop.f32.mrb[8].mxu0  ;;  %v2568_v45 = vpop.f32.mrb[8].mxu1 }
 0x10b   :  { %v1168_v41 = vsel %vm1160_vm1, %v853_v40, 0.0  ;;  %v1302_v42 = vmul.f32 %v853_v40, %v853_v40  ;;  %1501 = vst.msk [vmem:[%s3113_s4 + $0x20] sm:$0xff] %vm1160_vm1, %v853_v40  ;;  %v855_v43 = vpop.f32.mrb[9].mxu0  ;;  %1533 = vst.msk [vmem:[%s3113_s4 + $0x120] sm:$0xff] %vm1160_vm1, %v2568_v45  ;;  %v1015_v47 = vpop.f32.mrb[9].mxu1 }
 0x10c   :  { %v1169_v44 = vadd.f32 %v1168_v41, %v1167_v34 }
 0x10d   :  { %v1369_v46 = vsel %vm1160_vm1, %v1302_v42, 0.0 }
 0x10e   :  { %v1370_v48 = vadd.f32 %v1369_v46, %v1368_v38  ;;  %v858_v49 = vpop.f32.mrb[10].mxu0  ;;  %v2581_v54 = vpop.f32.mrb[10].mxu1 }
 0x10f   :  { %v1170_v50 = vsel %vm1160_vm1, %v858_v49, 0.0  ;;  %v1303_v51 = vmul.f32 %v858_v49, %v858_v49  ;;  %1502 = vst.msk [vmem:[%s3113_s4 + $0x28] sm:$0xff] %vm1160_vm1, %v858_v49  ;;  %v860_v52 = vpop.f32.mrb[11].mxu0  ;;  %1534 = vst.msk [vmem:[%s3113_s4 + $0x128] sm:$0xff] %vm1160_vm1, %v2581_v54  ;;  %v1020_v56 = vpop.f32.mrb[11].mxu1 }
 0x110   :  { %v1171_v53 = vadd.f32 %v1170_v50, %v1169_v44 }
 0x111   :  { %v1371_v55 = vsel %vm1160_vm1, %v1303_v51, 0.0 }
 0x112   :  { %v1372_v57 = vadd.f32 %v1371_v55, %v1370_v48  ;;  %v863_v58 = vpop.f32.mrb[12].mxu0  ;;  %v2594_v62 = vpop.f32.mrb[12].mxu1 }
 0x113   :  { %v1172_v16 = vsel %vm1160_vm1, %v863_v58, 0.0  ;;  %v1304_v59 = vmul.f32 %v863_v58, %v863_v58  ;;  %1503 = vst.msk [vmem:[%s3113_s4 + $0x30] sm:$0xff] %vm1160_vm1, %v863_v58  ;;  %v865_v60 = vpop.f32.mrb[13].mxu0  ;;  %1535 = vst.msk [vmem:[%s3113_s4 + $0x130] sm:$0xff] %vm1160_vm1, %v2594_v62  ;;  %v1025_v0 = vpop.f32.mrb[13].mxu1 }
 0x114   :  { %v1173_v61 = vadd.f32 %v1172_v16, %v1171_v53 }
 0x115   :  { %v1373_v63 = vsel %vm1160_vm1, %v1304_v59, 0.0 }
 0x116   :  { %v1374_v2 = vadd.f32 %v1373_v63, %v1372_v57  ;;  %v868_v3 = vpop.f32.mrb[14].mxu0  ;;  %v2607_v6 = vpop.f32.mrb[14].mxu1 }
 0x117   :  { %v1174_v33 = vsel %vm1160_vm1, %v868_v3, 0.0  ;;  %v1305_v17 = vmul.f32 %v868_v3, %v868_v3  ;;  %1504 = vst.msk [vmem:[%s3113_s4 + $0x38] sm:$0xff] %vm1160_vm1, %v868_v3  ;;  %v870_v4 = vpop.f32.mrb[15].mxu0  ;;  %1536 = vst.msk [vmem:[%s3113_s4 + $0x138] sm:$0xff] %vm1160_vm1, %v2607_v6  ;;  %v1030_v8 = vpop.f32.mrb[15].mxu1 }
 0x118   :  { %v1175_v39 = vadd.f32 %v1174_v33, %v1173_v61 }
 0x119   :  { %v1375_v7 = vsel %vm1160_vm1, %v1305_v17, 0.0 }
 0x11a   :  { %v1376_v9 = vadd.f32 %v1375_v7, %v1374_v2  ;;  %v873_v1 = vpop.f32.mrb[16].mxu0  ;;  %v2620_v15 = vpop.f32.mrb[16].mxu1 }
 0x11b   :  { %v1176_v10 = vsel %vm1160_vm1, %v873_v1, 0.0  ;;  %v1306_v11 = vmul.f32 %v873_v1, %v873_v1  ;;  %1505 = vst.msk [vmem:[%s3113_s4 + $0x40] sm:$0xff] %vm1160_vm1, %v873_v1  ;;  %v875_v12 = vpop.f32.mrb[17].mxu0  ;;  %1537 = vst.msk [vmem:[%s3113_s4 + $0x140] sm:$0xff] %vm1160_vm1, %v2620_v15  ;;  %v1035_v19 = vpop.f32.mrb[17].mxu1 }
 0x11c   :  { %v1177_v14 = vadd.f32 %v1176_v10, %v1175_v39 }
 0x11d   :  { %v1377_v18 = vsel %vm1160_vm1, %v1306_v11, 0.0 }
 0x11e   :  { %v1378_v20 = vadd.f32 %v1377_v18, %v1376_v9  ;;  %v878_v21 = vpop.f32.mrb[18].mxu0  ;;  %v2633_v27 = vpop.f32.mrb[18].mxu1 }
 0x11f   :  { %v1178_v22 = vsel %vm1160_vm1, %v878_v21, 0.0  ;;  %v1307_v23 = vmul.f32 %v878_v21, %v878_v21  ;;  %1506 = vst.msk [vmem:[%s3113_s4 + $0x48] sm:$0xff] %vm1160_vm1, %v878_v21  ;;  %v880_v24 = vpop.f32.mrb[19].mxu0  ;;  %1538 = vst.msk [vmem:[%s3113_s4 + $0x148] sm:$0xff] %vm1160_vm1, %v2633_v27  ;;  %v1040_v29 = vpop.f32.mrb[19].mxu1 }
 0x120   :  { %v1179_v26 = vadd.f32 %v1178_v22, %v1177_v14 }
 0x121   :  { %v1379_v28 = vsel %vm1160_vm1, %v1307_v23, 0.0 }
 0x122   :  { %v1380_v30 = vadd.f32 %v1379_v28, %v1378_v20  ;;  %v883_v31 = vpop.f32.mrb[20].mxu0  ;;  %v2646_v38 = vpop.f32.mrb[20].mxu1 }
 0x123   :  { %v1180_v32 = vsel %vm1160_vm1, %v883_v31, 0.0  ;;  %v1308_v34 = vmul.f32 %v883_v31, %v883_v31  ;;  %1507 = vst.msk [vmem:[%s3113_s4 + $0x50] sm:$0xff] %vm1160_vm1, %v883_v31  ;;  %v885_v36 = vpop.f32.mrb[21].mxu0  ;;  %1539 = vst.msk [vmem:[%s3113_s4 + $0x150] sm:$0xff] %vm1160_vm1, %v2646_v38  ;;  %v1045_v41 = vpop.f32.mrb[21].mxu1 }
 0x124   :  { %v1181_v37 = vadd.f32 %v1180_v32, %v1179_v26 }
 0x125   :  { %v1381_v40 = vsel %vm1160_vm1, %v1308_v34, 0.0 }
 0x126   :  { %v1382_v42 = vadd.f32 %v1381_v40, %v1380_v30  ;;  %v888_v43 = vpop.f32.mrb[22].mxu0  ;;  %v2659_v49 = vpop.f32.mrb[22].mxu1  ;;  %v1685_v30 = vmov 0.0  }
 0x127   :  { %v1182_v44 = vsel %vm1160_vm1, %v888_v43, 0.0  ;;  %v1309_v46 = vmul.f32 %v888_v43, %v888_v43  ;;  %1508 = vst.msk [vmem:[%s3113_s4 + $0x58] sm:$0xff] %vm1160_vm1, %v888_v43  ;;  %v890_v47 = vpop.f32.mrb[23].mxu0  ;;  %1540 = vst.msk [vmem:[%s3113_s4 + $0x158] sm:$0xff] %vm1160_vm1, %v2659_v49  ;;  %v1050_v51 = vpop.f32.mrb[23].mxu1 }
 0x128   :  { %v1183_v48 = vadd.f32 %v1182_v44, %v1181_v37  ;;  %1157 = vst.msk [vmem:[%s3114_s5] sm:$0x1] %vm1156_vm2, %v1685_v30  ;;  %1158 = vst.msk [vmem:[%s3115_s6] sm:$0x1] %vm1156_vm2, %v1685_v30 }
 0x129   :  { %v1383_v50 = vsel %vm1160_vm1, %v1309_v46, 0.0 }
 0x12a   :  { %v1384_v52 = vadd.f32 %v1383_v50, %v1382_v42  ;;  %v893_v53 = vpop.f32.mrb[24].mxu0  ;;  %v2672_v16 = vpop.f32.mrb[24].mxu1 }
 0x12b   :  { %v1184_v55 = vsel %vm1160_vm1, %v893_v53, 0.0  ;;  %v1310_v56 = vmul.f32 %v893_v53, %v893_v53  ;;  %1509 = vst.msk [vmem:[%s3113_s4 + $0x60] sm:$0xff] %vm1160_vm1, %v893_v53  ;;  %v895_v57 = vpop.f32.mrb[25].mxu0  ;;  %1541 = vst.msk [vmem:[%s3113_s4 + $0x160] sm:$0xff] %vm1160_vm1, %v2672_v16  ;;  %v1055_v60 = vpop.f32.mrb[25].mxu1 }
 0x12c   :  { %v1185_v58 = vadd.f32 %v1184_v55, %v1183_v48 }
 0x12d   :  { %v1385_v59 = vsel %vm1160_vm1, %v1310_v56, 0.0 }
 0x12e   :  { %v1386_v61 = vadd.f32 %v1385_v59, %v1384_v52  ;;  %v898_v63 = vpop.f32.mrb[26].mxu0  ;;  %v2685_v17 = vpop.f32.mrb[26].mxu1 }
 0x12f   :  { %v1186_v0 = vsel %vm1160_vm1, %v898_v63, 0.0  ;;  %v1311_v2 = vmul.f32 %v898_v63, %v898_v63  ;;  %1510 = vst.msk [vmem:[%s3113_s4 + $0x68] sm:$0xff] %vm1160_vm1, %v898_v63  ;;  %v900_v3 = vpop.f32.mrb[27].mxu0  ;;  %1542 = vst.msk [vmem:[%s3113_s4 + $0x168] sm:$0xff] %vm1160_vm1, %v2685_v17  ;;  %v1060_v39 = vpop.f32.mrb[27].mxu1 }
 0x130   :  { %v1187_v33 = vadd.f32 %v1186_v0, %v1185_v58 }
 0x131   :  { %v1387_v4 = vsel %vm1160_vm1, %v1311_v2, 0.0 }
 0x132   :  { %v1388_v7 = vadd.f32 %v1387_v4, %v1386_v61  ;;  %v903_v8 = vpop.f32.mrb[28].mxu0  ;;  %v2698_v12 = vpop.f32.mrb[28].mxu1 }
 0x133   :  { %v1188_v9 = vsel %vm1160_vm1, %v903_v8, 0.0  ;;  %v1312_v1 = vmul.f32 %v903_v8, %v903_v8  ;;  %1511 = vst.msk [vmem:[%s3113_s4 + $0x70] sm:$0xff] %vm1160_vm1, %v903_v8  ;;  %v905_v10 = vpop.f32.mrb[29].mxu0  ;;  %1543 = vst.msk [vmem:[%s3113_s4 + $0x170] sm:$0xff] %vm1160_vm1, %v2698_v12  ;;  %v1065_v18 = vpop.f32.mrb[29].mxu1 }
 0x134   :  { %v1189_v11 = vadd.f32 %v1188_v9, %v1187_v33 }
 0x135   :  { %v1389_v14 = vsel %vm1160_vm1, %v1312_v1, 0.0 }
 0x136   :  { %v1390_v19 = vadd.f32 %v1389_v14, %v1388_v7  ;;  %v908_v20 = vpop.f32.mrb[30].mxu0  ;;  %v2711_v26 = vpop.f32.mrb[30].mxu1 }
 0x137   :  { %v1190_v21 = vsel %vm1160_vm1, %v908_v20, 0.0  ;;  %v1313_v22 = vmul.f32 %v908_v20, %v908_v20  ;;  %1512 = vst.msk [vmem:[%s3113_s4 + $0x78] sm:$0xff] %vm1160_vm1, %v908_v20  ;;  %v910_v23 = vpop.f32.mrb[31].mxu0  ;;  %1544 = vst.msk [vmem:[%s3113_s4 + $0x178] sm:$0xff] %vm1160_vm1, %v2711_v26  ;;  %v1070_v29 = vpop.f32.mrb[31].mxu1 }
 0x138   :  { %v1191_v24 = vadd.f32 %v1190_v21, %v1189_v11 }
 0x139   :  { %v1391_v28 = vsel %vm1160_vm1, %v1313_v22, 0.0 }
 0x13a   :  { %v1392_v31 = vadd.f32 %v1391_v28, %v1390_v19  ;;  %v913_v32 = vpop.f32.mrb[32].mxu0  ;;  %v2732_v41 = vpop.f32.mrb[32].mxu1 }
 0x13b   :  { %v1192_v34 = vsel %vm1160_vm1, %v913_v32, 0.0  ;;  %v1314_v36 = vmul.f32 %v913_v32, %v913_v32  ;;  %1513 = vst.msk [vmem:[%s3113_s4 + $0x80] sm:$0xff] %vm1160_vm1, %v913_v32  ;;  %v915_v37 = vpop.f32.mrb[33].mxu0  ;;  %1545 = vst.msk [vmem:[%s3113_s4 + $0x180] sm:$0xff] %vm1160_vm1, %v2732_v41  ;;  %v1075_v43 = vpop.f32.mrb[33].mxu1 }
 0x13c   :  { %v1193_v40 = vadd.f32 %v1192_v34, %v1191_v24 }
 0x13d   :  { %v1393_v42 = vsel %vm1160_vm1, %v1314_v36, 0.0 }
 0x13e   :  { %v1394_v44 = vadd.f32 %v1393_v42, %v1392_v31  ;;  %v918_v46 = vpop.f32.mrb[34].mxu0  ;;  %v2745_v52 = vpop.f32.mrb[34].mxu1 }
 0x13f   :  { %v1194_v47 = vsel %vm1160_vm1, %v918_v46, 0.0  ;;  %v1315_v48 = vmul.f32 %v918_v46, %v918_v46  ;;  %1514 = vst.msk [vmem:[%s3113_s4 + $0x88] sm:$0xff] %vm1160_vm1, %v918_v46  ;;  %v920_v50 = vpop.f32.mrb[35].mxu0  ;;  %1546 = vst.msk [vmem:[%s3113_s4 + $0x188] sm:$0xff] %vm1160_vm1, %v2745_v52  ;;  %v1080_v55 = vpop.f32.mrb[35].mxu1 }
 0x140   :  { %v1195_v51 = vadd.f32 %v1194_v47, %v1193_v40 }
 0x141   :  { %v1395_v53 = vsel %vm1160_vm1, %v1315_v48, 0.0 }
 0x142   :  { %v1396_v56 = vadd.f32 %v1395_v53, %v1394_v44  ;;  %v923_v57 = vpop.f32.mrb[36].mxu0  ;;  %v2758_v63 = vpop.f32.mrb[36].mxu1 }
 0x143   :  { %v1196_v58 = vsel %vm1160_vm1, %v923_v57, 0.0  ;;  %v1316_v59 = vmul.f32 %v923_v57, %v923_v57  ;;  %1515 = vst.msk [vmem:[%s3113_s4 + $0x90] sm:$0xff] %vm1160_vm1, %v923_v57  ;;  %v925_v60 = vpop.f32.mrb[37].mxu0  ;;  %1547 = vst.msk [vmem:[%s3113_s4 + $0x190] sm:$0xff] %vm1160_vm1, %v2758_v63  ;;  %v1085_v2 = vpop.f32.mrb[37].mxu1 }
 0x144   :  { %v1197_v61 = vadd.f32 %v1196_v58, %v1195_v51 }
 0x145   :  { %v1397_v0 = vsel %vm1160_vm1, %v1316_v59, 0.0 }
 0x146   :  { %v1398_v3 = vadd.f32 %v1397_v0, %v1396_v56  ;;  %v928_v33 = vpop.f32.mrb[38].mxu0  ;;  %v2771_v9 = vpop.f32.mrb[38].mxu1 }
 0x147   :  { %v1198_v4 = vsel %vm1160_vm1, %v928_v33, 0.0  ;;  %v1317_v39 = vmul.f32 %v928_v33, %v928_v33  ;;  %1516 = vst.msk [vmem:[%s3113_s4 + $0x98] sm:$0xff] %vm1160_vm1, %v928_v33  ;;  %v930_v7 = vpop.f32.mrb[39].mxu0  ;;  %1548 = vst.msk [vmem:[%s3113_s4 + $0x198] sm:$0xff] %vm1160_vm1, %v2771_v9  ;;  %v1090_v10 = vpop.f32.mrb[39].mxu1 }
 0x148   :  { %v1199_v8 = vadd.f32 %v1198_v4, %v1197_v61 }
 0x149   :  { %v1399_v1 = vsel %vm1160_vm1, %v1317_v39, 0.0 }
 0x14a   :  { %v1400_v11 = vadd.f32 %v1399_v1, %v1398_v3  ;;  %v933_v14 = vpop.f32.mrb[40].mxu0  ;;  %v2784_v22 = vpop.f32.mrb[40].mxu1 }
 0x14b   :  { %v1200_v18 = vsel %vm1160_vm1, %v933_v14, 0.0  ;;  %v1318_v19 = vmul.f32 %v933_v14, %v933_v14  ;;  %1517 = vst.msk [vmem:[%s3113_s4 + $0xa0] sm:$0xff] %vm1160_vm1, %v933_v14  ;;  %v935_v20 = vpop.f32.mrb[41].mxu0  ;;  %1549 = vst.msk [vmem:[%s3113_s4 + $0x1a0] sm:$0xff] %vm1160_vm1, %v2784_v22  ;;  %v1095_v24 = vpop.f32.mrb[41].mxu1 }
 0x14c   :  { %v1201_v21 = vadd.f32 %v1200_v18, %v1199_v8 }
 0x14d   :  { %v1401_v23 = vsel %vm1160_vm1, %v1318_v19, 0.0 }
 0x14e   :  { %v1402_v28 = vadd.f32 %v1401_v23, %v1400_v11  ;;  %v938_v29 = vpop.f32.mrb[42].mxu0  ;;  %v2797_v36 = vpop.f32.mrb[42].mxu1 }
 0x14f   :  { %v1202_v30 = vsel %vm1160_vm1, %v938_v29, 0.0  ;;  %v1319_v31 = vmul.f32 %v938_v29, %v938_v29  ;;  %1518 = vst.msk [vmem:[%s3113_s4 + $0xa8] sm:$0xff] %vm1160_vm1, %v938_v29  ;;  %v940_v32 = vpop.f32.mrb[43].mxu0  ;;  %1550 = vst.msk [vmem:[%s3113_s4 + $0x1a8] sm:$0xff] %vm1160_vm1, %v2797_v36  ;;  %v1100_v40 = vpop.f32.mrb[43].mxu1 }
 0x150   :  { %v1203_v34 = vadd.f32 %v1202_v30, %v1201_v21 }
 0x151   :  { %v1403_v37 = vsel %vm1160_vm1, %v1319_v31, 0.0 }
 0x152   :  { %v1404_v42 = vadd.f32 %v1403_v37, %v1402_v28  ;;  %v943_v43 = vpop.f32.mrb[44].mxu0  ;;  %v2810_v50 = vpop.f32.mrb[44].mxu1 }
 0x153   :  { %v1204_v44 = vsel %vm1160_vm1, %v943_v43, 0.0  ;;  %v1320_v46 = vmul.f32 %v943_v43, %v943_v43  ;;  %1519 = vst.msk [vmem:[%s3113_s4 + $0xb0] sm:$0xff] %vm1160_vm1, %v943_v43  ;;  %v945_v47 = vpop.f32.mrb[45].mxu0  ;;  %1551 = vst.msk [vmem:[%s3113_s4 + $0x1b0] sm:$0xff] %vm1160_vm1, %v2810_v50  ;;  %v1105_v53 = vpop.f32.mrb[45].mxu1 }
 0x154   :  { %v1205_v48 = vadd.f32 %v1204_v44, %v1203_v34 }
 0x155   :  { %v1405_v51 = vsel %vm1160_vm1, %v1320_v46, 0.0 }
 0x156   :  { %v1406_v55 = vadd.f32 %v1405_v51, %v1404_v42  ;;  %v948_v56 = vpop.f32.mrb[46].mxu0  ;;  %v2823_v61 = vpop.f32.mrb[46].mxu1 }
 0x157   :  { %v1206_v57 = vsel %vm1160_vm1, %v948_v56, 0.0  ;;  %v1321_v58 = vmul.f32 %v948_v56, %v948_v56  ;;  %1520 = vst.msk [vmem:[%s3113_s4 + $0xb8] sm:$0xff] %vm1160_vm1, %v948_v56  ;;  %v950_v59 = vpop.f32.mrb[47].mxu0  ;;  %1552 = vst.msk [vmem:[%s3113_s4 + $0x1b8] sm:$0xff] %vm1160_vm1, %v2823_v61  ;;  %v1110_v2 = vpop.f32.mrb[47].mxu1 }
 0x158   :  { %v1207_v60 = vadd.f32 %v1206_v57, %v1205_v48 }
 0x159   :  { %v1407_v0 = vsel %vm1160_vm1, %v1321_v58, 0.0 }
 0x15a   :  { %v1408_v3 = vadd.f32 %v1407_v0, %v1406_v55  ;;  %v953_v33 = vpop.f32.mrb[48].mxu0  ;;  %v2836_v1 = vpop.f32.mrb[48].mxu1 }
 0x15b   :  { %v1208_v4 = vsel %vm1160_vm1, %v953_v33, 0.0  ;;  %v1322_v39 = vmul.f32 %v953_v33, %v953_v33  ;;  %1521 = vst.msk [vmem:[%s3113_s4 + $0xc0] sm:$0xff] %vm1160_vm1, %v953_v33  ;;  %v955_v7 = vpop.f32.mrb[49].mxu0  ;;  %1553 = vst.msk [vmem:[%s3113_s4 + $0x1c0] sm:$0xff] %vm1160_vm1, %v2836_v1  ;;  %v1115_v11 = vpop.f32.mrb[49].mxu1 }
 0x15c   :  { %v1209_v8 = vadd.f32 %v1208_v4, %v1207_v60 }
 0x15d   :  { %v1409_v10 = vsel %vm1160_vm1, %v1322_v39, 0.0 }
 0x15e   :  { %v1410_v14 = vadd.f32 %v1409_v10, %v1408_v3  ;;  %v958_v18 = vpop.f32.mrb[50].mxu0  ;;  %v2849_v24 = vpop.f32.mrb[50].mxu1 }
 0x15f   :  { %v1210_v19 = vsel %vm1160_vm1, %v958_v18, 0.0  ;;  %v1323_v20 = vmul.f32 %v958_v18, %v958_v18  ;;  %1522 = vst.msk [vmem:[%s3113_s4 + $0xc8] sm:$0xff] %vm1160_vm1, %v958_v18  ;;  %v960_v21 = vpop.f32.mrb[51].mxu0  ;;  %1554 = vst.msk [vmem:[%s3113_s4 + $0x1c8] sm:$0xff] %vm1160_vm1, %v2849_v24  ;;  %v1120_v29 = vpop.f32.mrb[51].mxu1 }
 0x160   :  { %v1211_v23 = vadd.f32 %v1210_v19, %v1209_v8 }
 0x161   :  { %v1411_v28 = vsel %vm1160_vm1, %v1323_v20, 0.0 }
 0x162   :  { %v1412_v30 = vadd.f32 %v1411_v28, %v1410_v14  ;;  %v963_v31 = vpop.f32.mrb[52].mxu0  ;;  %v2862_v42 = vpop.f32.mrb[52].mxu1 }
 0x163   :  { %v1212_v32 = vsel %vm1160_vm1, %v963_v31, 0.0  ;;  %v1324_v34 = vmul.f32 %v963_v31, %v963_v31  ;;  %1523 = vst.msk [vmem:[%s3113_s4 + $0xd0] sm:$0xff] %vm1160_vm1, %v963_v31  ;;  %v965_v37 = vpop.f32.mrb[53].mxu0  ;;  %1555 = vst.msk [vmem:[%s3113_s4 + $0x1d0] sm:$0xff] %vm1160_vm1, %v2862_v42  ;;  %v1125_v44 = vpop.f32.mrb[53].mxu1 }
 0x164   :  { %v1213_v40 = vadd.f32 %v1212_v32, %v1211_v23 }
 0x165   :  { %v1413_v43 = vsel %vm1160_vm1, %v1324_v34, 0.0 }
 0x166   :  { %v1414_v46 = vadd.f32 %v1413_v43, %v1412_v30  ;;  %v968_v47 = vpop.f32.mrb[54].mxu0  ;;  %v2875_v56 = vpop.f32.mrb[54].mxu1 }
 0x167   :  { %v1214_v48 = vsel %vm1160_vm1, %v968_v47, 0.0  ;;  %v1325_v51 = vmul.f32 %v968_v47, %v968_v47  ;;  %1524 = vst.msk [vmem:[%s3113_s4 + $0xd8] sm:$0xff] %vm1160_vm1, %v968_v47  ;;  %v970_v53 = vpop.f32.mrb[55].mxu0  ;;  %1556 = vst.msk [vmem:[%s3113_s4 + $0x1d8] sm:$0xff] %vm1160_vm1, %v2875_v56  ;;  %v1130_v58 = vpop.f32.mrb[55].mxu1  ;;  %v1330_v47 = vmul.f32 %v2515_v5, %v2515_v5 }
 0x168   :  { %v1215_v55 = vadd.f32 %v1214_v48, %v1213_v40  ;;  %v1224_v58 = vsel %vm1160_vm1, %v2515_v5, 0.0  ;;  %v1332_v5 = vmul.f32 %v2542_v25, %v2542_v25 }
 0x169   :  { %v1415_v57 = vsel %vm1160_vm1, %v1325_v51, 0.0 }
 0x16a   :  { %v1416_v59 = vadd.f32 %v1415_v57, %v1414_v46  ;;  %v973_v60 = vpop.f32.mrb[56].mxu0  ;;  %v2888_v4 = vpop.f32.mrb[56].mxu1 }
 0x16b   :  { %v1216_v0 = vsel %vm1160_vm1, %v973_v60, 0.0  ;;  %v1326_v2 = vmul.f32 %v973_v60, %v973_v60  ;;  %1525 = vst.msk [vmem:[%s3113_s4 + $0xe0] sm:$0xff] %vm1160_vm1, %v973_v60  ;;  %v975_v3 = vpop.f32.mrb[57].mxu0  ;;  %1557 = vst.msk [vmem:[%s3113_s4 + $0x1e0] sm:$0xff] %vm1160_vm1, %v2888_v4  ;;  %v1135_v7 = vpop.f32.mrb[57].mxu1 }
 0x16c   :  { %v1217_v33 = vadd.f32 %v1216_v0, %v1215_v55 }
 0x16d   :  { %v1417_v39 = vsel %vm1160_vm1, %v1326_v2, 0.0 }
 0x16e   :  { %v1418_v8 = vadd.f32 %v1417_v39, %v1416_v59  ;;  %v978_v10 = vpop.f32.mrb[58].mxu0  ;;  %v2901_v20 = vpop.f32.mrb[58].mxu1  ;;  %v1331_v59 = vmul.f32 %v2528_v13, %v2528_v13  ;;  %v1226_v39 = vsel %vm1160_vm1, %v2528_v13, 0.0  ;;  %v1230_v13 = vsel %vm1160_vm1, %v2555_v35, 0.0 }
 0x16f   :  { %v1218_v11 = vsel %vm1160_vm1, %v978_v10, 0.0  ;;  %v1327_v14 = vmul.f32 %v978_v10, %v978_v10  ;;  %1526 = vst.msk [vmem:[%s3113_s4 + $0xe8] sm:$0xff] %vm1160_vm1, %v978_v10  ;;  %v980_v18 = vpop.f32.mrb[59].mxu0  ;;  %1558 = vst.msk [vmem:[%s3113_s4 + $0x1e8] sm:$0xff] %vm1160_vm1, %v2901_v20  ;;  %v1140_v23 = vpop.f32.mrb[59].mxu1 }
 0x170   :  { %v1219_v19 = vadd.f32 %v1218_v11, %v1217_v33  ;;  %v1425_v33 = vsel %vm1160_vm1, %v1330_v47, 0.0  ;;  %v1427_v10 = vsel %vm1160_vm1, %v1331_v59, 0.0  ;;  %v1228_v11 = vsel %vm1160_vm1, %v2542_v25, 0.0 }
 0x171   :  { %v1419_v21 = vsel %vm1160_vm1, %v1327_v14, 0.0  ;;  %v1333_v14 = vmul.f32 %v2555_v35, %v2555_v35  ;;  %v1334_v23 = vmul.f32 %v2568_v45, %v2568_v45  ;;  %v1232_v25 = vsel %vm1160_vm1, %v2568_v45, 0.0 }
 0x172   :  { %v1420_v28 = vadd.f32 %v1419_v21, %v1418_v8  ;;  %v983_v29 = vpop.f32.mrb[60].mxu0  ;;  %v2914_v37 = vpop.f32.mrb[60].mxu1  ;;  %v1429_v21 = vsel %vm1160_vm1, %v1332_v5, 0.0  ;;  %v1234_v35 = vsel %vm1160_vm1, %v2581_v54, 0.0  ;;  %v1236_v45 = vsel %vm1160_vm1, %v2594_v62, 0.0 }
 0x173   :  { %v1220_v30 = vsel %vm1160_vm1, %v983_v29, 0.0  ;;  %v1328_v31 = vmul.f32 %v983_v29, %v983_v29  ;;  %1527 = vst.msk [vmem:[%s3113_s4 + $0xf0] sm:$0xff] %vm1160_vm1, %v983_v29  ;;  %v985_v32 = vpop.f32.mrb[61].mxu0  ;;  %1559 = vst.msk [vmem:[%s3113_s4 + $0x1f0] sm:$0xff] %vm1160_vm1, %v2914_v37  ;;  %v1145_v43 = vpop.f32.mrb[61].mxu1  ;;  %v1340_v5 = vmul.f32 %v2646_v38, %v2646_v38 }
 0x174   :  { %v1221_v34 = vadd.f32 %v1220_v30, %v1219_v19  ;;  %v1431_v30 = vsel %vm1160_vm1, %v1333_v14, 0.0  ;;  %v1336_v43 = vmul.f32 %v2594_v62, %v2594_v62  ;;  %v1240_v62 = vsel %vm1160_vm1, %v2620_v15, 0.0 }
 0x175   :  { %v1421_v40 = vsel %vm1160_vm1, %v1328_v31, 0.0  ;;  %v1335_v31 = vmul.f32 %v2581_v54, %v2581_v54  ;;  %v1238_v54 = vsel %vm1160_vm1, %v2607_v6, 0.0 }
 0x176   :  { %v1422_v44 = vadd.f32 %v1421_v40, %v1420_v28  ;;  %v988_v46 = vpop.f32.mrb[62].mxu0  ;;  %v2929_v57 = vpop.f32.mrb[62].mxu1  ;;  %v1433_v40 = vsel %vm1160_vm1, %v1334_v23, 0.0 }
 0x177   :  { %v1222_v48 = vsel %vm1160_vm1, %v988_v46, 0.0  ;;  %v1329_v51 = vmul.f32 %v988_v46, %v988_v46  ;;  %1528 = vst.msk [vmem:[%s3113_s4 + $0xf8] sm:$0xff] %vm1160_vm1, %v988_v46  ;;  %v990_v53 = vpop.f32.mrb[63].mxu0  ;;  %1560 = vst.msk [vmem:[%s3113_s4 + $0x1f8] sm:$0xff] %vm1160_vm1, %v2929_v57  ;;  %v1150_v0 = vpop.f32.mrb[63].mxu1  ;;  %v1435_v47 = vsel %vm1160_vm1, %v1335_v31, 0.0 }
 0x178   :  { %v1223_v55 = vadd.f32 %v1222_v48, %v1221_v34  ;;  %v1337_v48 = vmul.f32 %v2607_v6, %v2607_v6  ;;  %v1242_v6 = vsel %vm1160_vm1, %v2633_v27, 0.0 }
 0x179   :  { %v1423_v60 = vsel %vm1160_vm1, %v1329_v51, 0.0 }
 0x17a   :  { %v1225_v2 = vadd.f32 %v1224_v58, %v1223_v55  ;;  %v1424_v3 = vadd.f32 %v1423_v60, %v1422_v44  ;;  %v1437_v55 = vsel %vm1160_vm1, %v1336_v43, 0.0  ;;  %v1338_v58 = vmul.f32 %v2620_v15, %v2620_v15 }
 0x17b   :  { %v1439_v0 = vsel %vm1160_vm1, %v1337_v48, 0.0  ;;  %v1244_v15 = vsel %vm1160_vm1, %v2646_v38, 0.0  ;;  %v1248_v38 = vsel %vm1160_vm1, %v2672_v16, 0.0  ;;  %v1345_v43 = vmul.f32 %v2711_v26, %v2711_v26 }
 0x17c   :  { %v1227_v7 = vadd.f32 %v1226_v39, %v1225_v2  ;;  %v1426_v8 = vadd.f32 %v1425_v33, %v1424_v3  ;;  %v1339_v2 = vmul.f32 %v2633_v27, %v2633_v27  ;;  %v1441_v39 = vsel %vm1160_vm1, %v1338_v58, 0.0 }
 0x17d   :  { %v1246_v27 = vsel %vm1160_vm1, %v2659_v49, 0.0 }
 0x17e   :  { %v1229_v18 = vadd.f32 %v1228_v11, %v1227_v7  ;;  %v1428_v19 = vadd.f32 %v1427_v10, %v1426_v8  ;;  %v1443_v10 = vsel %vm1160_vm1, %v1339_v2, 0.0  ;;  %v1341_v11 = vmul.f32 %v2659_v49, %v2659_v49 }
 0x17f   :  { %v1250_v49 = vsel %vm1160_vm1, %v2685_v17, 0.0 }
 0x180   :  { %v1231_v28 = vadd.f32 %v1230_v13, %v1229_v18  ;;  %v1430_v29 = vadd.f32 %v1429_v21, %v1428_v19  ;;  %v1445_v19 = vsel %vm1160_vm1, %v1340_v5, 0.0  ;;  %v1342_v21 = vmul.f32 %v2672_v16, %v2672_v16 }
 0x181   :  { %v1252_v16 = vsel %vm1160_vm1, %v2698_v12, 0.0  ;;  %v1350_v5 = vmul.f32 %v2784_v22, %v2784_v22 }
 0x182   :  { %v1233_v32 = vadd.f32 %v1232_v25, %v1231_v28  ;;  %v1432_v34 = vadd.f32 %v1431_v30, %v1430_v29  ;;  %v1447_v28 = vsel %vm1160_vm1, %v1341_v11, 0.0  ;;  %v1343_v29 = vmul.f32 %v2685_v17, %v2685_v17 }
 0x183   :  { %v1449_v31 = vsel %vm1160_vm1, %v1342_v21, 0.0  ;;  %v1254_v17 = vsel %vm1160_vm1, %v2711_v26, 0.0  ;;  %v1258_v26 = vsel %vm1160_vm1, %v2745_v52, 0.0 }
 0x184   :  { %v1235_v44 = vadd.f32 %v1234_v35, %v1233_v32  ;;  %v1434_v46 = vadd.f32 %v1433_v40, %v1432_v34  ;;  %v1344_v32 = vmul.f32 %v2698_v12, %v2698_v12  ;;  %v1451_v35 = vsel %vm1160_vm1, %v1343_v29, 0.0 }
 0x185   :  { %v1256_v12 = vsel %vm1160_vm1, %v2732_v41, 0.0 }
 0x186   :  { %v1237_v51 = vadd.f32 %v1236_v45, %v1235_v44  ;;  %v1436_v53 = vadd.f32 %v1435_v47, %v1434_v46  ;;  %v1453_v47 = vsel %vm1160_vm1, %v1344_v32, 0.0  ;;  %v1346_v45 = vmul.f32 %v2732_v41, %v2732_v41 }
 0x187   :  { %v1260_v41 = vsel %vm1160_vm1, %v2758_v63, 0.0  ;;  %v1355_v32 = vmul.f32 %v2849_v24, %v2849_v24 }
 0x188   :  { %v1239_v59 = vadd.f32 %v1238_v54, %v1237_v51  ;;  %v1438_v60 = vadd.f32 %v1437_v55, %v1436_v53  ;;  %v1455_v53 = vsel %vm1160_vm1, %v1345_v43, 0.0  ;;  %v1347_v55 = vmul.f32 %v2745_v52, %v2745_v52 }
 0x189   :  { %v1262_v52 = vsel %vm1160_vm1, %v2771_v9, 0.0 }
 0x18a   :  { %v1440_v3 = vadd.f32 %v1439_v0, %v1438_v60  ;;  %v1241_v33 = vadd.f32 %v1240_v62, %v1239_v59  ;;  %v1457_v59 = vsel %vm1160_vm1, %v1346_v45, 0.0  ;;  %v1348_v60 = vmul.f32 %v2758_v63, %v2758_v63 }
 0x18b   :  { %v1459_v2 = vsel %vm1160_vm1, %v1347_v55, 0.0  ;;  %v1264_v63 = vsel %vm1160_vm1, %v2784_v22, 0.0  ;;  %v1268_v22 = vsel %vm1160_vm1, %v2810_v50, 0.0 }
 0x18c   :  { %v1243_v7 = vadd.f32 %v1242_v6, %v1241_v33  ;;  %v1442_v8 = vadd.f32 %v1441_v39, %v1440_v3  ;;  %v1349_v3 = vmul.f32 %v2771_v9, %v2771_v9  ;;  %v1461_v6 = vsel %vm1160_vm1, %v1348_v60, 0.0 }
 0x18d   :  { %v1266_v9 = vsel %vm1160_vm1, %v2797_v36, 0.0  ;;  %v1360_v60 = vmul.f32 %v2914_v37, %v2914_v37 }
 0x18e   :  { %v1245_v14 = vadd.f32 %v1244_v15, %v1243_v7  ;;  %v1444_v18 = vadd.f32 %v1443_v10, %v1442_v8  ;;  %v1463_v10 = vsel %vm1160_vm1, %v1349_v3, 0.0  ;;  %v1351_v15 = vmul.f32 %v2797_v36, %v2797_v36 }
 0x18f   :  { %v1270_v36 = vsel %vm1160_vm1, %v2823_v61, 0.0  ;;  %v1286_v3 = vsel %vm1160_vm1, %v2929_v57, 0.0 }
 0x190   :  { %v1247_v13 = vadd.f32 %v1246_v27, %v1245_v14  ;;  %v1446_v23 = vadd.f32 %v1445_v19, %v1444_v18  ;;  %v1465_v18 = vsel %vm1160_vm1, %v1350_v5, 0.0  ;;  %v1352_v19 = vmul.f32 %v2810_v50, %v2810_v50 }
 0x191   :  { %v1272_v50 = vsel %vm1160_vm1, %v2836_v1, 0.0 }
 0x192   :  { %v1249_v30 = vadd.f32 %v1248_v38, %v1247_v13  ;;  %v1448_v25 = vadd.f32 %v1447_v28, %v1446_v23  ;;  %v1467_v13 = vsel %vm1160_vm1, %v1351_v15, 0.0  ;;  %v1353_v23 = vmul.f32 %v2823_v61, %v2823_v61 }
 0x193   :  { %v1469_v29 = vsel %vm1160_vm1, %v1352_v19, 0.0  ;;  %v1274_v61 = vsel %vm1160_vm1, %v2849_v24, 0.0  ;;  %v1278_v24 = vsel %vm1160_vm1, %v2875_v56, 0.0 }
 0x194   :  { %v1251_v34 = vadd.f32 %v1250_v49, %v1249_v30  ;;  %v1450_v40 = vadd.f32 %v1449_v31, %v1448_v25  ;;  %v1354_v30 = vmul.f32 %v2836_v1, %v2836_v1  ;;  %v1471_v49 = vsel %vm1160_vm1, %v1353_v23, 0.0 }
 0x195   :  { %v1276_v1 = vsel %vm1160_vm1, %v2862_v42, 0.0 }
 0x196   :  { %v1253_v44 = vadd.f32 %v1252_v16, %v1251_v34  ;;  %v1452_v46 = vadd.f32 %v1451_v35, %v1450_v40  ;;  %v1473_v35 = vsel %vm1160_vm1, %v1354_v30, 0.0  ;;  %v1356_v16 = vmul.f32 %v2862_v42, %v2862_v42 }
 0x197   :  { %v1280_v42 = vsel %vm1160_vm1, %v2888_v4, 0.0 }
 0x198   :  { %v1255_v48 = vadd.f32 %v1254_v17, %v1253_v44  ;;  %v1454_v51 = vadd.f32 %v1453_v47, %v1452_v46  ;;  %v1475_v46 = vsel %vm1160_vm1, %v1355_v32, 0.0  ;;  %v1357_v47 = vmul.f32 %v2875_v56, %v2875_v56 }
 0x199   :  { %v1282_v56 = vsel %vm1160_vm1, %v2901_v20, 0.0 }
 0x19a   :  { %v1257_v54 = vadd.f32 %v1256_v12, %v1255_v48  ;;  %v1456_v58 = vadd.f32 %v1455_v53, %v1454_v51  ;;  %v1477_v48 = vsel %vm1160_vm1, %v1356_v16, 0.0  ;;  %v1358_v51 = vmul.f32 %v2888_v4, %v2888_v4 }
 0x19b   :  { %v1479_v55 = vsel %vm1160_vm1, %v1357_v47, 0.0 }
 0x19c   :  { %v1458_v0 = vadd.f32 %v1457_v59, %v1456_v58  ;;  %v1259_v62 = vadd.f32 %v1258_v26, %v1257_v54  ;;  %v1359_v54 = vmul.f32 %v2901_v20, %v2901_v20  ;;  %v1481_v26 = vsel %vm1160_vm1, %v1358_v51, 0.0 }
 0x19d   :  { %v1485_v20 = vsel %vm1160_vm1, %v1360_v60, 0.0 }
 0x19e   :  { %v1460_v33 = vadd.f32 %v1459_v2, %v1458_v0  ;;  %v1261_v39 = vadd.f32 %v1260_v41, %v1259_v62  ;;  %v1361_v0 = vmul.f32 %v2929_v57, %v2929_v57  ;;  %v1483_v4 = vsel %vm1160_vm1, %v1359_v54, 0.0  ;;  %v1159_v57 = vld [vmem:[%s3114_s5] sm:$0x1] }
 0x19f   :  { %v1284_v41 = vsel %vm1160_vm1, %v2914_v37, 0.0 }
 0x1a0   :  { %v1462_v7 = vadd.f32 %v1461_v6, %v1460_v33  ;;  %v1263_v8 = vadd.f32 %v1262_v52, %v1261_v39  ;;  %v1487_v6 = vsel %vm1160_vm1, %v1361_v0, 0.0 }
 0x1a2   :  { %v1464_v11 = vadd.f32 %v1463_v10, %v1462_v7  ;;  %v1265_v14 = vadd.f32 %v1264_v63, %v1263_v8 }
 0x1a4   :  { %v1466_v27 = vadd.f32 %v1465_v18, %v1464_v11  ;;  %v1267_v21 = vadd.f32 %v1266_v9, %v1265_v14 }
 0x1a6   :  { %v1468_v28 = vadd.f32 %v1467_v13, %v1466_v27  ;;  %v1269_v38 = vadd.f32 %v1268_v22, %v1267_v21  ;;  %v1297_v21 = vld [vmem:[%s3115_s6] sm:$0x1] }
 0x1a8   :  { %v1470_v25 = vadd.f32 %v1469_v29, %v1468_v28  ;;  %v1271_v31 = vadd.f32 %v1270_v36, %v1269_v38 }
 0x1aa   :  { %v1472_v34 = vadd.f32 %v1471_v49, %v1470_v25  ;;  %v1273_v40 = vadd.f32 %v1272_v50, %v1271_v31 }
 0x1ac   :  { %v1474_v43 = vadd.f32 %v1473_v35, %v1472_v34  ;;  %v1275_v44 = vadd.f32 %v1274_v61, %v1273_v40 }
 0x1ae   :  { %v1476_v17 = vadd.f32 %v1475_v46, %v1474_v43  ;;  %v1277_v45 = vadd.f32 %v1276_v1, %v1275_v44 }
 0x1b0   :  { %v1478_v53 = vadd.f32 %v1477_v48, %v1476_v17  ;;  %v1279_v12 = vadd.f32 %v1278_v24, %v1277_v45 }
 0x1b2   :  { %v1480_v58 = vadd.f32 %v1479_v55, %v1478_v53  ;;  %v1281_v59 = vadd.f32 %v1280_v42, %v1279_v12 }
 0x1b4   :  { %v1482_v62 = vadd.f32 %v1481_v26, %v1480_v58  ;;  %v1283_v2 = vadd.f32 %v1282_v56, %v1281_v59 }
 0x1b6   :  { %v1484_v33 = vadd.f32 %v1483_v4, %v1482_v62  ;;  %v1285_v39 = vadd.f32 %v1284_v41, %v1283_v2 }
 0x1b8   :  { %v1486_v52 = vadd.f32 %v1485_v20, %v1484_v33  ;;  %v1287_v5 = vadd.f32 %v1286_v3, %v1285_v39 }
 0x1ba   :  { %v1288_v7 = vrot.slane %v1287_v5, 4  ;;  %v1488_v8 = vadd.f32 %v1487_v6, %v1486_v52 }
 0x1bc   :  { %v1289_v10 = vadd.f32 %v1288_v7, %v1287_v5  ;;  %v1489_v63 = vrot.slane %v1488_v8, 4 }
 0x1be   :  { %v1290_v15 = vrot.slane %v1289_v10, 2  ;;  %v1490_v11 = vadd.f32 %v1489_v63, %v1488_v8 }
 0x1c0   :  { %v1291_v14 = vadd.f32 %v1290_v15, %v1289_v10  ;;  %v1491_v18 = vrot.slane %v1490_v11, 2 }
 0x1c2   :  { %v1292_v37 = vrot.slane %v1291_v14, 1  ;;  %v1492_v9 = vadd.f32 %v1491_v18, %v1490_v11 }
 0x1c4   :  { %v1293_v19 = vadd.f32 %v1292_v37, %v1291_v14  ;;  %v1493_v27 = vrot.slane %v1492_v9, 1 }
 0x1c6   :  { %v1294_v13 = vadd.f32 %v1293_v19, %v1159_v57  ;;  %v1494_v22 = vadd.f32 %v1493_v27, %v1492_v9 }
 0x1c8   :  { %1296 = vst.msk [vmem:[%s3114_s5] sm:$0x1] %vm1156_vm2, %v1294_v13  ;;  %v1495_v23 = vadd.f32 %v1494_v22, %v1297_v21 }
 0x1ca   :  { %1496 = vst.msk [vmem:[%s3115_s6] sm:$0x1] %vm1156_vm2, %v1495_v23 }

// kernel: generator_forward.9
= control target key start
LH: loop header
LB: loop body
LE: loop exit
PB: predicated region body
PF: predicated region fallthrough
CT: control target
= control target key end

     0   :  { %s1702_s15 = smov 0   ;;  %s2163_s0 = inlined_call_operand.vmem [shape: f32[2048,72], index: 0, kind: input, shape index: {}]   ;;  %s2164_s1 = inlined_call_operand.vmem [shape: f32[72,12], index: 1, kind: input, shape index: {}]   ;;  %s2165_s2 = inlined_call_operand.vmem [shape: f32[1,72], index: 2, kind: input, shape index: {}]   ;;  %s2166_s3 = inlined_call_operand.vmem [shape: f32[1,72], index: 3, kind: input, shape index: {}]   ;;  %s2167_s4 = inlined_call_operand.vmem [shape: f32[2048,12], index: 4, kind: output, shape index: {}]  }
   0x1 LB: > { %s1243_s16 = sadd.s32 4294967295, %s1675_s15   ;;  %p1247_p0 = scmp.ge.s32.totalorder %s1675_s15, 1  ;;  %s1675_s15 = sphi %s1702_s15, %s14_s15  }
   0x2   : > { %p163_p1 = scmp.lt.s32.totalorder %s1675_s15, 5 }
   0x4   : > { %p164_p2 = pnand %p1247_p0, %p163_p1 }
   0x5   : > { %v471_v0 = vld [vmem:[%s2164_s1] sm:$0xff] (!%p164_p2)  ;;  %v472_v1 = vld [vmem:[%s2164_s1 + $0x8] sm:$0xff] (!%p164_p2)  ;;  %v473_v2 = vld [vmem:[%s2164_s1 + $0x10] sm:$0xff] (!%p164_p2)  ;;  %s1248_s23 = sshll.u32 (!%p164_p2), %s1243_s16, 6  ;;  %vm480_vm0 = vcmask (!%p164_p2), 588800   ;;  %vm1122_vm1 = vcmask (!%p164_p2), 97280  }
   0x6   : > { %167 = sbr.rel (%p164_p2) target bundleno = 314 (0x13a), region = 36  ;;  %v1507_v3 = vpack.c.bf16 (!%p164_p2), %v472_v1, %v471_v0  ;;  %v474_v4 = vld [vmem:[%s2164_s1 + $0x18] sm:$0xff] (!%p164_p2)  ;;  %p190_p3 = scmp.lt.s32.totalorder (!%p164_p2), %s1248_s23, 255  ;;  %v475_v6 = vld [vmem:[%s2164_s1 + $0x20] sm:$0xff] (!%p164_p2)  ;;  %v476_v7 = vld [vmem:[%s2164_s1 + $0x28] sm:$0xff] (!%p164_p2) }
   0x7   : > { %v1511_v5 = vpack.c.bf16 (!%p164_p2), %v474_v4, %v473_v2  ;;  %v1515_v8 = vpack.c.bf16 (!%p164_p2), %v476_v7, %v475_v6  ;;  %v1734_v9 = vld [vmem:[%s2165_s2] ss:$0 sm:$0xff] (!%p164_p2)  ;;  %v477_v10 = vld [vmem:[%s2164_s1 + $0x30] sm:$0xff] (!%p164_p2)  ;;  %v478_v11 = vld [vmem:[%s2164_s1 + $0x38] sm:$0xff] (!%p164_p2) }
   0x8   : > { %1508 = vmatprep.subr.bf16.mxu0 (!%p164_p2), %v1507_v3  ;;  %1523 = vmatprep.subr.bf16.mxu1 (!%p164_p2), %v1507_v3  ;;  %v1752_v12 = vld [vmem:[%s2166_s3] ss:$0 sm:$0xff] (!%p164_p2)  ;;  %v1519_v22 = vpack.c.bf16 (!%p164_p2), %v478_v11, %v477_v10 }
   0x9   : > { %1510 = vmatpush3.bf16.msra.mxu0 (!%p164_p2), %v1507_v3  ;;  %1528 = vmatpush3.bf16.msra.mxu1 (!%p164_p2), %v1507_v3  ;;  %v479_v40 = vld [vmem:[%s2164_s1 + $0x40] sm:$0xff] (!%p164_p2) }
   0xa   : > { %1512 = vmatprep.subr.bf16.mxu0 (!%p164_p2), %v1511_v5  ;;  %1524 = vmatprep.subr.bf16.mxu1 (!%p164_p2), %v1511_v5 }
   0xd   : > { %s2169_s23 = smov (!%p190_p3, %s1248_s23), 255  ;;  %1514 = vmatpush3.bf16.msra.mxu0 %v1511_v5  ;;  %1529 = vmatpush3.bf16.msra.mxu1 %v1511_v5 }
   0xe   : > { %s1249_s30 = sshll.u32 %s2169_s23, 3  ;;  %1516 = vmatprep.subr.bf16.mxu0 %v1515_v8  ;;  %1525 = vmatprep.subr.bf16.mxu1 %v1515_v8 }
   0xf   : > { %s1747_s13 = scalar_lea.vmem %s2163_s0, %s1249_s30  ;;  %s2030_s21 = scalar_lea.vmem %s2167_s4, %s1249_s30 }
  0x10   : > { %v201_v13 = vld [vmem:[%s1747_s13] sm:$0xff]  ;;  %v202_v15 = vld [vmem:[%s1747_s13 + $0x8] sm:$0xff]  ;;  %v203_v20 = vld [vmem:[%s1747_s13 + $0x10] sm:$0xff] }
  0x11   : > { %v233_v14 = vld [vmem:[%s1747_s13 + $0x100] sm:$0xff]  ;;  %v272_v16 = vmul.f32 %v1734_v9, %v201_v13  ;;  %v273_v18 = vmul.f32 %v1734_v9, %v202_v15  ;;  %v234_v19 = vld [vmem:[%s1747_s13 + $0x108] sm:$0xff]  ;;  %v235_v21 = vld [vmem:[%s1747_s13 + $0x110] sm:$0xff]  ;;  %v274_v24 = vmul.f32 %v1734_v9, %v203_v20  ;;  %1518 = vmatpush3.bf16.msra.mxu0 %v1515_v8  ;;  %1530 = vmatpush3.bf16.msra.mxu1 %v1515_v8 }
  0x12   : > { %v304_v17 = vmul.f32 %v1734_v9, %v233_v14  ;;  %v305_v23 = vmul.f32 %v1734_v9, %v234_v19  ;;  %v204_v25 = vld [vmem:[%s1747_s13 + $0x18] sm:$0xff]  ;;  %v306_v28 = vmul.f32 %v1734_v9, %v235_v21  ;;  %v205_v31 = vld [vmem:[%s1747_s13 + $0x20] sm:$0xff]  ;;  %1520 = vmatprep.subr.bf16.mxu0 %v1519_v22  ;;  %1526 = vmatprep.subr.bf16.mxu1 %v1519_v22  ;;  %v206_v39 = vld [vmem:[%s1747_s13 + $0x28] sm:$0xff] }
  0x13   : > { %v343_v26 = vadd.f32 %v1752_v12, %v272_v16  ;;  %v236_v29 = vld [vmem:[%s1747_s13 + $0x118] sm:$0xff]  ;;  %v344_v30 = vadd.f32 %v1752_v12, %v273_v18  ;;  %v237_v32 = vld [vmem:[%s1747_s13 + $0x120] sm:$0xff]  ;;  %v275_v36 = vmul.f32 %v1734_v9, %v204_v25  ;;  %v345_v37 = vadd.f32 %v1752_v12, %v274_v24  ;;  %v238_v44 = vld [vmem:[%s1747_s13 + $0x128] sm:$0xff] }
  0x14   : > { %v375_v27 = vadd.f32 %v1752_v12, %v304_v17  ;;  %v376_v35 = vadd.f32 %v1752_v12, %v305_v23  ;;  %v307_v38 = vmul.f32 %v1734_v9, %v236_v29  ;;  %v377_v41 = vadd.f32 %v1752_v12, %v306_v28  ;;  %v207_v45 = vld [vmem:[%s1747_s13 + $0x30] sm:$0xff]  ;;  %v208_v55 = vld [vmem:[%s1747_s13 + $0x38] sm:$0xff]  ;;  %v209_v61 = vld [vmem:[%s1747_s13 + $0x40] sm:$0xff] }
  0x15   : > { %v407_v33 = vmax.f32 %v343_v26, 0.0  ;;  %v276_v42 = vmul.f32 %v1734_v9, %v205_v31  ;;  %v308_v43 = vmul.f32 %v1734_v9, %v237_v32  ;;  %v239_v46 = vld [vmem:[%s1747_s13 + $0x130] sm:$0xff]  ;;  %1522 = vmatpush3.bf16.msra.mxu0 %v1519_v22  ;;  %1531 = vmatpush3.bf16.msra.mxu1 %v1519_v22  ;;  %v408_v47 = vmax.f32 %v344_v30, 0.0  ;;  %v240_v56 = vld [vmem:[%s1747_s13 + $0x138] sm:$0xff]  ;;  %v241_v62 = vld [vmem:[%s1747_s13 + $0x140] sm:$0xff] }
  0x16   : > { %v439_v34 = vmax.f32 %v375_v27, 0.0  ;;  %v440_v48 = vmax.f32 %v376_v35, 0.0  ;;  %v346_v49 = vadd.f32 %v1752_v12, %v275_v36  ;;  %v277_v50 = vmul.f32 %v1734_v9, %v206_v39  ;;  %1409 = vmatprep.subr.mxu0 %v479_v40  ;;  %1527 = vmatprep.subr.mxu1 %v479_v40  ;;  %v210_v7 = vld [vmem:[%s1747_s13 + $0x48] sm:$0xff]  ;;  %v211_v15 = vld [vmem:[%s1747_s13 + $0x50] sm:$0xff]  ;;  %v212_v29 = vld [vmem:[%s1747_s13 + $0x58] sm:$0xff] }
  0x17   : > { %1411 = vmatprep.mubr.msk.f32.mxu0 %vm480_vm0, %v407_v33  ;;  %v409_v51 = vmax.f32 %v345_v37, 0.0  ;;  %v378_v52 = vadd.f32 %v1752_v12, %v307_v38  ;;  %v309_v53 = vmul.f32 %v1734_v9, %v238_v44  ;;  %v278_v54 = vmul.f32 %v1734_v9, %v207_v45  ;;  %v242_v8 = vld [vmem:[%s1747_s13 + $0x148] sm:$0xff]  ;;  %v243_v16 = vld [vmem:[%s1747_s13 + $0x150] sm:$0xff]  ;;  %v244_v30 = vld [vmem:[%s1747_s13 + $0x158] sm:$0xff] }
  0x18   : > { %1459 = vmatprep.mubr.msk.f32.mxu1 %vm480_vm0, %v439_v34  ;;  %v441_v57 = vmax.f32 %v377_v41, 0.0  ;;  %v347_v58 = vadd.f32 %v1752_v12, %v276_v42  ;;  %v379_v59 = vadd.f32 %v1752_v12, %v308_v43  ;;  %v310_v60 = vmul.f32 %v1734_v9, %v239_v46  ;;  %v213_v31 = vld [vmem:[%s1747_s13 + $0x60] sm:$0xff]  ;;  %v214_v41 = vld [vmem:[%s1747_s13 + $0x68] sm:$0xff] }
  0x19   : > { %1410 = vmatpush3.msra.mxu0 %v479_v40  ;;  %1532 = vmatpush3.msra.mxu1 %v479_v40  ;;  %v410_v63 = vmax.f32 %v346_v49, 0.0  ;;  %v348_v0 = vadd.f32 %v1752_v12, %v277_v50  ;;  %v279_v1 = vmul.f32 %v1734_v9, %v208_v55  ;;  %v311_v2 = vmul.f32 %v1734_v9, %v240_v56  ;;  %v245_v32 = vld [vmem:[%s1747_s13 + $0x160] sm:$0xff]  ;;  %v246_v42 = vld [vmem:[%s1747_s13 + $0x168] sm:$0xff] }
  0x1a   : > { %1412 = vmatmul.mubr.msk.f32.vlgmr.msra.gmra.mrb[0].mxu0 %vm480_vm0, %v408_v47  ;;  %1460 = vmatmul.mubr.msk.f32.vlgmr.msra.gmra.mrb[0].mxu1 %vm480_vm0, %v440_v48  ;;  %v442_v3 = vmax.f32 %v378_v52, 0.0  ;;  %v380_v4 = vadd.f32 %v1752_v12, %v309_v53  ;;  %v349_v5 = vadd.f32 %v1752_v12, %v278_v54  ;;  %v280_v6 = vmul.f32 %v1734_v9, %v209_v61  ;;  %v215_v47 = vld [vmem:[%s1747_s13 + $0x70] sm:$0xff] }
  0x1b   : > { %1414 = vmatprep.mubr.msk.f32.mxu0 %vm480_vm0, %v409_v51  ;;  %1462 = vmatprep.mubr.msk.f32.mxu1 %vm480_vm0, %v441_v57  ;;  %v411_v10 = vmax.f32 %v347_v58, 0.0  ;;  %v443_v11 = vmax.f32 %v379_v59, 0.0  ;;  %v381_v13 = vadd.f32 %v1752_v12, %v310_v60  ;;  %v312_v14 = vmul.f32 %v1734_v9, %v241_v62  ;;  %v247_v48 = vld [vmem:[%s1747_s13 + $0x170] sm:$0xff]  ;;  %v216_v57 = vld [vmem:[%s1747_s13 + $0x78] sm:$0xff] }
  0x1c   : > { %v350_v17 = vadd.f32 %v1752_v12, %v279_v1  ;;  %v382_v18 = vadd.f32 %v1752_v12, %v311_v2  ;;  %v281_v19 = vmul.f32 %v1734_v9, %v210_v7  ;;  %v313_v20 = vmul.f32 %v1734_v9, %v242_v8  ;;  %v248_v58 = vld [vmem:[%s1747_s13 + $0x178] sm:$0xff] }
  0x1d   : > { %v412_v21 = vmax.f32 %v348_v0, 0.0  ;;  %v444_v22 = vmax.f32 %v380_v4, 0.0  ;;  %v351_v23 = vadd.f32 %v1752_v12, %v280_v6  ;;  %v282_v24 = vmul.f32 %v1734_v9, %v211_v15  ;;  %v249_v0 = vld [vmem:[%s1747_s13 + $0x180] sm:$0xff]  ;;  %v218_v15 = vld [vmem:[%s1747_s13 + $0x88] sm:$0xff] }
  0x1e   : > { %1415 = vmatmul.mubr.msk.f32.gmra.mrb[2].mxu0 %vm480_vm0, %v410_v63  ;;  %1463 = vmatmul.mubr.msk.f32.gmra.mrb[2].mxu1 %vm480_vm0, %v442_v3  ;;  %v413_v25 = vmax.f32 %v349_v5, 0.0  ;;  %v445_v26 = vmax.f32 %v381_v13, 0.0  ;;  %v383_v27 = vadd.f32 %v1752_v12, %v312_v14  ;;  %v314_v28 = vmul.f32 %v1734_v9, %v243_v16  ;;  %v217_v63 = vld [vmem:[%s1747_s13 + $0x80] sm:$0xff]  ;;  %v250_v16 = vld [vmem:[%s1747_s13 + $0x188] sm:$0xff] }
  0x1f   : > { %1417 = vmatprep.mubr.msk.f32.mxu0 %vm480_vm0, %v411_v10  ;;  %1465 = vmatprep.mubr.msk.f32.mxu1 %vm480_vm0, %v443_v11  ;;  %v414_v33 = vmax.f32 %v350_v17, 0.0  ;;  %v446_v34 = vmax.f32 %v382_v18, 0.0  ;;  %v352_v35 = vadd.f32 %v1752_v12, %v281_v19  ;;  %v384_v36 = vadd.f32 %v1752_v12, %v313_v20  ;;  %v219_v17 = vld [vmem:[%s1747_s13 + $0x90] sm:$0xff] }
  0x20   : > { %v415_v37 = vmax.f32 %v351_v23, 0.0  ;;  %v353_v38 = vadd.f32 %v1752_v12, %v282_v24  ;;  %v283_v39 = vmul.f32 %v1734_v9, %v212_v29  ;;  %v315_v40 = vmul.f32 %v1734_v9, %v244_v30  ;;  %v251_v18 = vld [vmem:[%s1747_s13 + $0x190] sm:$0xff]  ;;  %v220_v23 = vld [vmem:[%s1747_s13 + $0x98] sm:$0xff] }
  0x21   : > { %v447_v43 = vmax.f32 %v383_v27, 0.0  ;;  %v385_v44 = vadd.f32 %v1752_v12, %v314_v28  ;;  %v284_v45 = vmul.f32 %v1734_v9, %v213_v31  ;;  %v316_v46 = vmul.f32 %v1734_v9, %v245_v32  ;;  %v252_v24 = vld [vmem:[%s1747_s13 + $0x198] sm:$0xff] }
  0x22   : > { %1418 = vmatmul.mubr.msk.f32.gmra.mrb[4].mxu0 %vm480_vm0, %v412_v21  ;;  %1466 = vmatmul.mubr.msk.f32.gmra.mrb[4].mxu1 %vm480_vm0, %v444_v22  ;;  %v416_v49 = vmax.f32 %v352_v35, 0.0  ;;  %v448_v50 = vmax.f32 %v384_v36, 0.0  ;;  %v285_v51 = vmul.f32 %v1734_v9, %v214_v41  ;;  %v317_v52 = vmul.f32 %v1734_v9, %v246_v42  ;;  %v253_v36 = vld [vmem:[%s1747_s13 + $0x1a0] sm:$0xff] }
  0x23   : > { %1420 = vmatprep.mubr.msk.f32.mxu0 %vm480_vm0, %v413_v25  ;;  %1468 = vmatprep.mubr.msk.f32.mxu1 %vm480_vm0, %v445_v26  ;;  %v417_v53 = vmax.f32 %v353_v38, 0.0  ;;  %v354_v54 = vadd.f32 %v1752_v12, %v283_v39  ;;  %v386_v55 = vadd.f32 %v1752_v12, %v315_v40  ;;  %v286_v56 = vmul.f32 %v1734_v9, %v215_v47  ;;  %v222_v39 = vld [vmem:[%s1747_s13 + $0xa8] sm:$0xff] }
  0x24   : > { %v449_v59 = vmax.f32 %v385_v44, 0.0  ;;  %v355_v60 = vadd.f32 %v1752_v12, %v284_v45  ;;  %v387_v61 = vadd.f32 %v1752_v12, %v316_v46  ;;  %v318_v62 = vmul.f32 %v1734_v9, %v247_v48  ;;  %v254_v44 = vld [vmem:[%s1747_s13 + $0x1a8] sm:$0xff]  ;;  %v223_v45 = vld [vmem:[%s1747_s13 + $0xb0] sm:$0xff] }
  0x25   : > { %v356_v1 = vadd.f32 %v1752_v12, %v285_v51  ;;  %v388_v2 = vadd.f32 %v1752_v12, %v317_v52  ;;  %v287_v3 = vmul.f32 %v1734_v9, %v216_v57  ;;  %v319_v4 = vmul.f32 %v1734_v9, %v248_v58 }
  0x26   : > { %1421 = vmatmul.mubr.msk.f32.gmra.mrb[6].mxu0 %vm480_vm0, %v414_v33  ;;  %1469 = vmatmul.mubr.msk.f32.gmra.mrb[6].mxu1 %vm480_vm0, %v446_v34  ;;  %v418_v5 = vmax.f32 %v354_v54, 0.0  ;;  %v450_v6 = vmax.f32 %v386_v55, 0.0  ;;  %v357_v7 = vadd.f32 %v1752_v12, %v286_v56  ;;  %v288_v8 = vmul.f32 %v1734_v9, %v217_v63  ;;  %v221_v33 = vld [vmem:[%s1747_s13 + $0xa0] sm:$0xff]  ;;  %v224_v56 = vld [vmem:[%s1747_s13 + $0xb8] sm:$0xff] }
  0x27   : > { %1423 = vmatprep.mubr.msk.f32.mxu0 %vm480_vm0, %v415_v37  ;;  %1471 = vmatprep.mubr.msk.f32.mxu1 %vm480_vm0, %v447_v43  ;;  %v419_v10 = vmax.f32 %v355_v60, 0.0  ;;  %v451_v11 = vmax.f32 %v387_v61, 0.0  ;;  %v389_v13 = vadd.f32 %v1752_v12, %v318_v62  ;;  %v320_v14 = vmul.f32 %v1734_v9, %v249_v0  ;;  %v256_v61 = vld [vmem:[%s1747_s13 + $0x1b8] sm:$0xff]  ;;  %v231_v62 = vld [vmem:[%s1747_s13 + $0xf0] sm:$0xff] }
  0x28   : > { %v420_v19 = vmax.f32 %v356_v1, 0.0  ;;  %v452_v20 = vmax.f32 %v388_v2, 0.0  ;;  %v358_v21 = vadd.f32 %v1752_v12, %v287_v3  ;;  %v390_v22 = vadd.f32 %v1752_v12, %v319_v4  ;;  %v225_v2 = vld [vmem:[%s1747_s13 + $0xc0] sm:$0xff]  ;;  %v263_v3 = vld [vmem:[%s1747_s13 + $0x1f0] sm:$0xff] }
  0x29   : > { %v421_v25 = vmax.f32 %v357_v7, 0.0  ;;  %v359_v26 = vadd.f32 %v1752_v12, %v288_v8  ;;  %v289_v27 = vmul.f32 %v1734_v9, %v218_v15  ;;  %v321_v28 = vmul.f32 %v1734_v9, %v250_v16  ;;  %v257_v8 = vld [vmem:[%s1747_s13 + $0x1c0] sm:$0xff]  ;;  %v264_v16 = vld [vmem:[%s1747_s13 + $0x1f8] sm:$0xff] }
  0x2a   : > { %1424 = vmatmul.mubr.msk.f32.gmra.mrb[8].mxu0 %vm480_vm0, %v416_v49  ;;  %1472 = vmatmul.mubr.msk.f32.gmra.mrb[8].mxu1 %vm480_vm0, %v448_v50  ;;  %v453_v29 = vmax.f32 %v389_v13, 0.0  ;;  %v391_v30 = vadd.f32 %v1752_v12, %v320_v14  ;;  %v290_v31 = vmul.f32 %v1734_v9, %v219_v17  ;;  %v322_v32 = vmul.f32 %v1734_v9, %v251_v18  ;;  %v255_v50 = vld [vmem:[%s1747_s13 + $0x1b0] sm:$0xff] }
  0x2b   : > { %1426 = vmatprep.mubr.msk.f32.mxu0 %vm480_vm0, %v417_v53  ;;  %1474 = vmatprep.mubr.msk.f32.mxu1 %vm480_vm0, %v449_v59  ;;  %v291_v34 = vmul.f32 %v1734_v9, %v220_v23  ;;  %v323_v35 = vmul.f32 %v1734_v9, %v252_v24  ;;  %v422_v37 = vmax.f32 %v358_v21, 0.0  ;;  %v454_v38 = vmax.f32 %v390_v22, 0.0  ;;  %v258_v21 = vld [vmem:[%s1747_s13 + $0x1c8] sm:$0xff] }
  0x2c   : > { %v423_v40 = vmax.f32 %v359_v26, 0.0  ;;  %v360_v41 = vadd.f32 %v1752_v12, %v289_v27  ;;  %v392_v42 = vadd.f32 %v1752_v12, %v321_v28  ;;  %v292_v43 = vmul.f32 %v1734_v9, %v221_v33 }
  0x2d   : > { %v455_v46 = vmax.f32 %v391_v30, 0.0  ;;  %v361_v47 = vadd.f32 %v1752_v12, %v290_v31  ;;  %v393_v48 = vadd.f32 %v1752_v12, %v322_v32  ;;  %v324_v49 = vmul.f32 %v1734_v9, %v253_v36  ;;  %v259_v30 = vld [vmem:[%s1747_s13 + $0x1d0] sm:$0xff] }
  0x2e   : > { %1427 = vmatmul.mubr.msk.f32.gmra.mrb[10].mxu0 %vm480_vm0, %v418_v5  ;;  %1475 = vmatmul.mubr.msk.f32.gmra.mrb[10].mxu1 %vm480_vm0, %v450_v6  ;;  %v362_v51 = vadd.f32 %v1752_v12, %v291_v34  ;;  %v394_v52 = vadd.f32 %v1752_v12, %v323_v35  ;;  %v293_v53 = vmul.f32 %v1734_v9, %v222_v39  ;;  %v424_v57 = vmax.f32 %v360_v41, 0.0 }
  0x2f   : > { %1429 = vmatprep.mubr.msk.f32.mxu0 %vm480_vm0, %v419_v10  ;;  %1477 = vmatprep.mubr.msk.f32.mxu1 %vm480_vm0, %v451_v11  ;;  %v325_v54 = vmul.f32 %v1734_v9, %v254_v44  ;;  %v294_v55 = vmul.f32 %v1734_v9, %v223_v45  ;;  %v456_v58 = vmax.f32 %v392_v42, 0.0  ;;  %v363_v59 = vadd.f32 %v1752_v12, %v292_v43  ;;  %v232_v10 = vld [vmem:[%s1747_s13 + $0xf8] sm:$0xff] }
  0x30   : > { %v326_v60 = vmul.f32 %v1734_v9, %v255_v50  ;;  %v425_v63 = vmax.f32 %v361_v47, 0.0  ;;  %v457_v0 = vmax.f32 %v393_v48, 0.0  ;;  %v395_v1 = vadd.f32 %v1752_v12, %v324_v49  ;;  %v229_v47 = vld [vmem:[%s1747_s13 + $0xe0] sm:$0xff] }
  0x31   : > { %v426_v4 = vmax.f32 %v362_v51, 0.0  ;;  %v458_v5 = vmax.f32 %v394_v52, 0.0  ;;  %v364_v6 = vadd.f32 %v1752_v12, %v293_v53  ;;  %v295_v7 = vmul.f32 %v1734_v9, %v224_v56  ;;  %v261_v48 = vld [vmem:[%s1747_s13 + $0x1e0] sm:$0xff] }
  0x32   : > { %1430 = vmatmul.mubr.msk.f32.gmra.mrb[12].mxu0 %vm480_vm0, %v420_v19  ;;  %1478 = vmatmul.mubr.msk.f32.gmra.mrb[12].mxu1 %vm480_vm0, %v452_v20  ;;  %v396_v11 = vadd.f32 %v1752_v12, %v325_v54  ;;  %v365_v13 = vadd.f32 %v1752_v12, %v294_v55  ;;  %v327_v14 = vmul.f32 %v1734_v9, %v256_v61  ;;  %v427_v17 = vmax.f32 %v363_v59, 0.0  ;;  %v226_v20 = vld [vmem:[%s1747_s13 + $0xc8] sm:$0xff] }
  0x33   : > { %1432 = vmatprep.mubr.msk.f32.mxu0 %vm480_vm0, %v421_v25  ;;  %1480 = vmatprep.mubr.msk.f32.mxu1 %vm480_vm0, %v453_v29  ;;  %v302_v15 = vmul.f32 %v1734_v9, %v231_v62  ;;  %v397_v18 = vadd.f32 %v1752_v12, %v326_v60  ;;  %v296_v19 = vmul.f32 %v1734_v9, %v225_v2  ;;  %v459_v23 = vmax.f32 %v395_v1, 0.0  ;;  %v227_v25 = vld [vmem:[%s1747_s13 + $0xd0] sm:$0xff]  ;;  %v230_v61 = vld [vmem:[%s1747_s13 + $0xe8] sm:$0xff] }
  0x34   : > { %v334_v22 = vmul.f32 %v1734_v9, %v263_v3  ;;  %v328_v24 = vmul.f32 %v1734_v9, %v257_v8  ;;  %v303_v27 = vmul.f32 %v1734_v9, %v232_v10  ;;  %v428_v28 = vmax.f32 %v364_v6, 0.0  ;;  %v262_v62 = vld [vmem:[%s1747_s13 + $0x1e8] sm:$0xff] }
  0x35   : > { %v1951_v26 = vadd.f32 %v1752_v12, %v302_v15  ;;  %v366_v29 = vadd.f32 %v1752_v12, %v295_v7  ;;  %v335_v32 = vmul.f32 %v1734_v9, %v264_v16  ;;  %v398_v33 = vadd.f32 %v1752_v12, %v327_v14 }
  0x36   : > { %1433 = vmatmul.mubr.msk.f32.gmra.mrb[14].mxu0 %vm480_vm0, %v422_v37  ;;  %1481 = vmatmul.mubr.msk.f32.gmra.mrb[14].mxu1 %vm480_vm0, %v454_v38  ;;  %v1957_v31 = vadd.f32 %v1752_v12, %v334_v22  ;;  %v297_v34 = vmul.f32 %v1734_v9, %v226_v20  ;;  %v329_v35 = vmul.f32 %v1734_v9, %v258_v21  ;;  %v460_v37 = vmax.f32 %v396_v11, 0.0 }
  0x37   : > { %1435 = vmatprep.mubr.msk.f32.mxu0 %vm480_vm0, %v423_v40  ;;  %1483 = vmatprep.mubr.msk.f32.mxu1 %vm480_vm0, %v455_v46  ;;  %v1964_v36 = vadd.f32 %v1752_v12, %v303_v27  ;;  %v367_v38 = vadd.f32 %v1752_v12, %v296_v19  ;;  %v298_v39 = vmul.f32 %v1734_v9, %v227_v25  ;;  %v228_v40 = vld [vmem:[%s1747_s13 + $0xd8] sm:$0xff]  ;;  %v429_v42 = vmax.f32 %v365_v13, 0.0 }
  0x38   : > { %v1972_v41 = vadd.f32 %v1752_v12, %v335_v32  ;;  %v461_v43 = vmax.f32 %v397_v18, 0.0  ;;  %v399_v44 = vadd.f32 %v1752_v12, %v328_v24  ;;  %v330_v45 = vmul.f32 %v1734_v9, %v259_v30  ;;  %v260_v46 = vld [vmem:[%s1747_s13 + $0x1d8] sm:$0xff] }
  0x39   : > { %v430_v49 = vmax.f32 %v366_v29, 0.0  ;;  %v462_v50 = vmax.f32 %v398_v33, 0.0  ;;  %v368_v51 = vadd.f32 %v1752_v12, %v297_v34  ;;  %v299_v52 = vmul.f32 %v1734_v9, %v228_v40 }
  0x3a   : > { %1436 = vmatmul.mubr.msk.f32.gmra.mrb[16].mxu0 %vm480_vm0, %v424_v57  ;;  %1484 = vmatmul.mubr.msk.f32.gmra.mrb[16].mxu1 %vm480_vm0, %v456_v58  ;;  %v431_v53 = vmax.f32 %v367_v38, 0.0  ;;  %v400_v54 = vadd.f32 %v1752_v12, %v329_v35  ;;  %v369_v55 = vadd.f32 %v1752_v12, %v298_v39  ;;  %v331_v56 = vmul.f32 %v1734_v9, %v260_v46 }
  0x3b   : > { %1438 = vmatprep.mubr.msk.f32.mxu0 %vm480_vm0, %v425_v63  ;;  %1486 = vmatprep.mubr.msk.f32.mxu1 %vm480_vm0, %v457_v0  ;;  %v463_v57 = vmax.f32 %v399_v44, 0.0  ;;  %v401_v58 = vadd.f32 %v1752_v12, %v330_v45  ;;  %v300_v59 = vmul.f32 %v1734_v9, %v229_v47  ;;  %v332_v60 = vmul.f32 %v1734_v9, %v261_v48 }
  0x3c   : > { %v432_v63 = vmax.f32 %v368_v51, 0.0  ;;  %v370_v0 = vadd.f32 %v1752_v12, %v299_v52  ;;  %v464_v1 = vmax.f32 %v400_v54, 0.0  ;;  %v402_v2 = vadd.f32 %v1752_v12, %v331_v56 }
  0x3d   : > { %v301_v3 = vmul.f32 %v1734_v9, %v230_v61  ;;  %v465_v6 = vmax.f32 %v401_v58, 0.0  ;;  %v371_v7 = vadd.f32 %v1752_v12, %v300_v59  ;;  %v403_v8 = vadd.f32 %v1752_v12, %v332_v60 }
  0x3e   : > { %1439 = vmatmul.mubr.msk.f32.gmra.mrb[18].mxu0 %vm480_vm0, %v426_v4  ;;  %1487 = vmatmul.mubr.msk.f32.gmra.mrb[18].mxu1 %vm480_vm0, %v458_v5  ;;  %v333_v4 = vmul.f32 %v1734_v9, %v262_v62  ;;  %v433_v5 = vmax.f32 %v369_v55, 0.0  ;;  %v434_v10 = vmax.f32 %v370_v0, 0.0  ;;  %v466_v11 = vmax.f32 %v402_v2, 0.0 }
  0x3f   : > { %1441 = vmatprep.mubr.msk.f32.mxu0 %vm480_vm0, %v427_v17  ;;  %1489 = vmatprep.mubr.msk.f32.mxu1 %vm480_vm0, %v459_v23  ;;  %v372_v13 = vadd.f32 %v1752_v12, %v301_v3  ;;  %v435_v14 = vmax.f32 %v371_v7, 0.0  ;;  %v467_v15 = vmax.f32 %v403_v8, 0.0  ;;  %v437_v18 = vmax.f32 %v1951_v26, 0.0 }
  0x40   : > { %v404_v9 = vadd.f32 %v1752_v12, %v333_v4  ;;  %v469_v12 = vmax.f32 %v1957_v31, 0.0  ;;  %v438_v19 = vmax.f32 %v1964_v36, 0.0  ;;  %v470_v20 = vmax.f32 %v1972_v41, 0.0 }
  0x41   : > { %v436_v16 = vmax.f32 %v372_v13, 0.0 }
  0x42   : > { %1442 = vmatmul.mubr.msk.f32.gmra.mrb[20].mxu0 %vm480_vm0, %v428_v28  ;;  %1490 = vmatmul.mubr.msk.f32.gmra.mrb[20].mxu1 %vm480_vm0, %v460_v37  ;;  %v468_v17 = vmax.f32 %v404_v9, 0.0 }
  0x43   : > { %1444 = vmatprep.mubr.msk.f32.mxu0 %vm480_vm0, %v429_v42  ;;  %1492 = vmatprep.mubr.msk.f32.mxu1 %vm480_vm0, %v461_v43 }
  0x46   : > { %1445 = vmatmul.mubr.msk.f32.gmra.mrb[22].mxu0 %vm480_vm0, %v430_v49  ;;  %1493 = vmatmul.mubr.msk.f32.gmra.mrb[22].mxu1 %vm480_vm0, %v462_v50 }
  0x47   : > { %1447 = vmatprep.mubr.msk.f32.mxu0 %vm480_vm0, %v431_v53  ;;  %1495 = vmatprep.mubr.msk.f32.mxu1 %vm480_vm0, %v463_v57 }
  0x4a   : > { %1448 = vmatmul.mubr.msk.f32.gmra.mrb[24].mxu0 %vm480_vm0, %v432_v63  ;;  %1496 = vmatmul.mubr.msk.f32.gmra.mrb[24].mxu1 %vm480_vm0, %v464_v1 }
  0x4b   : > { %1450 = vmatprep.mubr.msk.f32.mxu0 %vm480_vm0, %v433_v5  ;;  %1498 = vmatprep.mubr.msk.f32.mxu1 %vm480_vm0, %v465_v6 }
  0x4e   : > { %1451 = vmatmul.mubr.msk.f32.gmra.mrb[26].mxu0 %vm480_vm0, %v434_v10  ;;  %1499 = vmatmul.mubr.msk.f32.gmra.mrb[26].mxu1 %vm480_vm0, %v466_v11 }
  0x4f   : > { %1453 = vmatprep.mubr.msk.f32.mxu0 %vm480_vm0, %v435_v14  ;;  %1501 = vmatprep.mubr.msk.f32.mxu1 %vm480_vm0, %v467_v15 }
  0x52   : > { %1454 = vmatmul.mubr.msk.f32.gmra.mrb[28].mxu0 %vm480_vm0, %v436_v16  ;;  %1502 = vmatmul.mubr.msk.f32.gmra.mrb[28].mxu1 %vm480_vm0, %v468_v17 }
  0x53   : > { %1456 = vmatprep.mubr.msk.f32.mxu0 %vm480_vm0, %v437_v18  ;;  %1504 = vmatprep.mubr.msk.f32.mxu1 %vm480_vm0, %v469_v12 }
  0x56   : > { %1457 = vmatmul.mubr.msk.f32.gmra.mrb[30].mxu0 %vm480_vm0, %v438_v19  ;;  %1505 = vmatmul.mubr.msk.f32.gmra.mrb[30].mxu1 %vm480_vm0, %v470_v20 }
  0xed   : > { %v1413_v21 = vpop.f32.mrb[0].mxu0  ;;  %v1461_v22 = vpop.f32.mrb[0].mxu1 }
  0xee   : > { %1541 = vtanh.f32 %v1413_v21  ;;  %v739_v23 = vpop.f32.mrb[1].mxu0  ;;  %v899_v24 = vpop.f32.mrb[1].mxu1 }
  0xef   : > { %1543 = vtanh.f32 %v1461_v22 }
  0xf0   : > { %1545 = vtanh.f32 %v739_v23 }
  0xf1   : > { %1547 = vtanh.f32 %v899_v24  ;;  %v1416_v25 = vpop.f32.mrb[2].mxu0  ;;  %v1464_v26 = vpop.f32.mrb[2].mxu1 }
  0xf2   : > { %1549 = vtanh.f32 %v1416_v25  ;;  %v749_v27 = vpop.f32.mrb[3].mxu0  ;;  %v909_v28 = vpop.f32.mrb[3].mxu1 }
  0xf3   : > { %1551 = vtanh.f32 %v1464_v26 }
  0xf4   : > { %1553 = vtanh.f32 %v749_v27 }
  0xf5   : > { %1555 = vtanh.f32 %v909_v28  ;;  %v1419_v29 = vpop.f32.mrb[4].mxu0  ;;  %v1467_v30 = vpop.f32.mrb[4].mxu1 }
  0xf6   : > { %1557 = vtanh.f32 %v1419_v29  ;;  %v759_v31 = vpop.f32.mrb[5].mxu0  ;;  %v919_v32 = vpop.f32.mrb[5].mxu1 }
  0xf7   : > { %1559 = vtanh.f32 %v1467_v30 }
  0xf8   : > { %v1542_v33 = vpop.eup %1541  ;;  %1561 = vtanh.f32 %v759_v31 }
  0xf9   : > { %v1544_v34 = vpop.eup %1543  ;;  %1124 = vst.msk [vmem:[%s2030_s21 + $0x8] sm:$0xff] %vm1122_vm1, %v1542_v33  ;;  %1563 = vtanh.f32 %v919_v32  ;;  %v1422_v35 = vpop.f32.mrb[6].mxu0 }
  0xfa   : > { %v1470_v36 = vpop.f32.mrb[6].mxu1  ;;  %v1546_v37 = vpop.eup %1545  ;;  %1156 = vst.msk [vmem:[%s2030_s21 + $0x108] sm:$0xff] %vm1122_vm1, %v1544_v34  ;;  %1565 = vtanh.f32 %v1422_v35 }
  0xfb   : > { %v769_v38 = vpop.f32.mrb[7].mxu0  ;;  %v929_v39 = vpop.f32.mrb[7].mxu1  ;;  %1123 = vst.msk [vmem:[%s2030_s21] sm:$0xff] %vm1122_vm1, %v1546_v37  ;;  %1567 = vtanh.f32 %v1470_v36 }
  0xfc   : > { %v1548_v40 = vpop.eup %1547  ;;  %1569 = vtanh.f32 %v769_v38 }
  0xfd   : > { %v1550_v41 = vpop.eup %1549  ;;  %1155 = vst.msk [vmem:[%s2030_s21 + $0x100] sm:$0xff] %vm1122_vm1, %v1548_v40  ;;  %1571 = vtanh.f32 %v929_v39  ;;  %v1425_v43 = vpop.f32.mrb[8].mxu0 }
  0xfe   : > { %v1552_v42 = vpop.eup %1551  ;;  %1126 = vst.msk [vmem:[%s2030_s21 + $0x18] sm:$0xff] %vm1122_vm1, %v1550_v41  ;;  %v1473_v44 = vpop.f32.mrb[8].mxu1  ;;  %1573 = vtanh.f32 %v1425_v43 }
  0xff   : > { %v1554_v45 = vpop.eup %1553  ;;  %1158 = vst.msk [vmem:[%s2030_s21 + $0x118] sm:$0xff] %vm1122_vm1, %v1552_v42  ;;  %v779_v46 = vpop.f32.mrb[9].mxu0  ;;  %1575 = vtanh.f32 %v1473_v44 }
 0x100   : > { %v939_v47 = vpop.f32.mrb[9].mxu1  ;;  %v1556_v48 = vpop.eup %1555  ;;  %1125 = vst.msk [vmem:[%s2030_s21 + $0x10] sm:$0xff] %vm1122_vm1, %v1554_v45  ;;  %1577 = vtanh.f32 %v779_v46 }
 0x101   : > { %v1558_v49 = vpop.eup %1557  ;;  %1157 = vst.msk [vmem:[%s2030_s21 + $0x110] sm:$0xff] %vm1122_vm1, %v1556_v48  ;;  %1579 = vtanh.f32 %v939_v47  ;;  %v1428_v51 = vpop.f32.mrb[10].mxu0 }
 0x102   : > { %v1560_v50 = vpop.eup %1559  ;;  %1128 = vst.msk [vmem:[%s2030_s21 + $0x28] sm:$0xff] %vm1122_vm1, %v1558_v49  ;;  %v1476_v52 = vpop.f32.mrb[10].mxu1  ;;  %1581 = vtanh.f32 %v1428_v51 }
 0x103   : > { %v1562_v53 = vpop.eup %1561  ;;  %1160 = vst.msk [vmem:[%s2030_s21 + $0x128] sm:$0xff] %vm1122_vm1, %v1560_v50  ;;  %v789_v54 = vpop.f32.mrb[11].mxu0  ;;  %1583 = vtanh.f32 %v1476_v52 }
 0x104   : > { %v949_v55 = vpop.f32.mrb[11].mxu1  ;;  %v1564_v56 = vpop.eup %1563  ;;  %1127 = vst.msk [vmem:[%s2030_s21 + $0x20] sm:$0xff] %vm1122_vm1, %v1562_v53  ;;  %1585 = vtanh.f32 %v789_v54 }
 0x105   : > { %v1566_v57 = vpop.eup %1565  ;;  %1159 = vst.msk [vmem:[%s2030_s21 + $0x120] sm:$0xff] %vm1122_vm1, %v1564_v56  ;;  %1587 = vtanh.f32 %v949_v55  ;;  %v1431_v59 = vpop.f32.mrb[12].mxu0 }
 0x106   : > { %v1568_v58 = vpop.eup %1567  ;;  %1130 = vst.msk [vmem:[%s2030_s21 + $0x38] sm:$0xff] %vm1122_vm1, %v1566_v57  ;;  %v1479_v60 = vpop.f32.mrb[12].mxu1  ;;  %1589 = vtanh.f32 %v1431_v59 }
 0x107   : > { %v1570_v61 = vpop.eup %1569  ;;  %1162 = vst.msk [vmem:[%s2030_s21 + $0x138] sm:$0xff] %vm1122_vm1, %v1568_v58  ;;  %v799_v62 = vpop.f32.mrb[13].mxu0  ;;  %1591 = vtanh.f32 %v1479_v60 }
 0x108   : > { %v959_v63 = vpop.f32.mrb[13].mxu1  ;;  %v1572_v0 = vpop.eup %1571  ;;  %1129 = vst.msk [vmem:[%s2030_s21 + $0x30] sm:$0xff] %vm1122_vm1, %v1570_v61  ;;  %1593 = vtanh.f32 %v799_v62 }
 0x109   : > { %v1574_v1 = vpop.eup %1573  ;;  %1161 = vst.msk [vmem:[%s2030_s21 + $0x130] sm:$0xff] %vm1122_vm1, %v1572_v0  ;;  %1595 = vtanh.f32 %v959_v63  ;;  %v1434_v3 = vpop.f32.mrb[14].mxu0 }
 0x10a   : > { %v1576_v2 = vpop.eup %1575  ;;  %1132 = vst.msk [vmem:[%s2030_s21 + $0x48] sm:$0xff] %vm1122_vm1, %v1574_v1  ;;  %v1482_v4 = vpop.f32.mrb[14].mxu1  ;;  %1597 = vtanh.f32 %v1434_v3 }
 0x10b   : > { %v1578_v5 = vpop.eup %1577  ;;  %1164 = vst.msk [vmem:[%s2030_s21 + $0x148] sm:$0xff] %vm1122_vm1, %v1576_v2  ;;  %v809_v6 = vpop.f32.mrb[15].mxu0  ;;  %1599 = vtanh.f32 %v1482_v4 }
 0x10c   : > { %v969_v7 = vpop.f32.mrb[15].mxu1  ;;  %v1580_v8 = vpop.eup %1579  ;;  %1131 = vst.msk [vmem:[%s2030_s21 + $0x40] sm:$0xff] %vm1122_vm1, %v1578_v5  ;;  %1601 = vtanh.f32 %v809_v6 }
 0x10d   : > { %v1582_v10 = vpop.eup %1581  ;;  %1163 = vst.msk [vmem:[%s2030_s21 + $0x140] sm:$0xff] %vm1122_vm1, %v1580_v8  ;;  %1603 = vtanh.f32 %v969_v7  ;;  %v1437_v13 = vpop.f32.mrb[16].mxu0 }
 0x10e   : > { %v1584_v11 = vpop.eup %1583  ;;  %1134 = vst.msk [vmem:[%s2030_s21 + $0x58] sm:$0xff] %vm1122_vm1, %v1582_v10  ;;  %v1485_v9 = vpop.f32.mrb[16].mxu1  ;;  %1605 = vtanh.f32 %v1437_v13 }
 0x10f   : > { %v1586_v14 = vpop.eup %1585  ;;  %1166 = vst.msk [vmem:[%s2030_s21 + $0x158] sm:$0xff] %vm1122_vm1, %v1584_v11  ;;  %v819_v15 = vpop.f32.mrb[17].mxu0  ;;  %1607 = vtanh.f32 %v1485_v9 }
 0x110   : > { %v979_v16 = vpop.f32.mrb[17].mxu1  ;;  %v1588_v17 = vpop.eup %1587  ;;  %1133 = vst.msk [vmem:[%s2030_s21 + $0x50] sm:$0xff] %vm1122_vm1, %v1586_v14  ;;  %1609 = vtanh.f32 %v819_v15 }
 0x111   : > { %v1590_v18 = vpop.eup %1589  ;;  %1165 = vst.msk [vmem:[%s2030_s21 + $0x150] sm:$0xff] %vm1122_vm1, %v1588_v17  ;;  %1611 = vtanh.f32 %v979_v16  ;;  %v1440_v19 = vpop.f32.mrb[18].mxu0 }
 0x112   : > { %v1592_v12 = vpop.eup %1591  ;;  %1136 = vst.msk [vmem:[%s2030_s21 + $0x68] sm:$0xff] %vm1122_vm1, %v1590_v18  ;;  %v1488_v20 = vpop.f32.mrb[18].mxu1  ;;  %1613 = vtanh.f32 %v1440_v19 }
 0x113   : > { %v1594_v21 = vpop.eup %1593  ;;  %1168 = vst.msk [vmem:[%s2030_s21 + $0x168] sm:$0xff] %vm1122_vm1, %v1592_v12  ;;  %v829_v22 = vpop.f32.mrb[19].mxu0  ;;  %1615 = vtanh.f32 %v1488_v20 }
 0x114   : > { %v989_v23 = vpop.f32.mrb[19].mxu1  ;;  %v1596_v24 = vpop.eup %1595  ;;  %1135 = vst.msk [vmem:[%s2030_s21 + $0x60] sm:$0xff] %vm1122_vm1, %v1594_v21  ;;  %1617 = vtanh.f32 %v829_v22 }
 0x115   : > { %v1598_v25 = vpop.eup %1597  ;;  %1167 = vst.msk [vmem:[%s2030_s21 + $0x160] sm:$0xff] %vm1122_vm1, %v1596_v24  ;;  %1619 = vtanh.f32 %v989_v23  ;;  %v1443_v27 = vpop.f32.mrb[20].mxu0 }
 0x116   : > { %v1600_v26 = vpop.eup %1599  ;;  %1138 = vst.msk [vmem:[%s2030_s21 + $0x78] sm:$0xff] %vm1122_vm1, %v1598_v25  ;;  %v1491_v28 = vpop.f32.mrb[20].mxu1  ;;  %1621 = vtanh.f32 %v1443_v27 }
 0x117   : > { %v1602_v29 = vpop.eup %1601  ;;  %1170 = vst.msk [vmem:[%s2030_s21 + $0x178] sm:$0xff] %vm1122_vm1, %v1600_v26  ;;  %v839_v30 = vpop.f32.mrb[21].mxu0  ;;  %1623 = vtanh.f32 %v1491_v28 }
 0x118   : > { %v999_v31 = vpop.f32.mrb[21].mxu1  ;;  %v1604_v32 = vpop.eup %1603  ;;  %1137 = vst.msk [vmem:[%s2030_s21 + $0x70] sm:$0xff] %vm1122_vm1, %v1602_v29  ;;  %1625 = vtanh.f32 %v839_v30 }
 0x119   : > { %v1606_v33 = vpop.eup %1605  ;;  %1169 = vst.msk [vmem:[%s2030_s21 + $0x170] sm:$0xff] %vm1122_vm1, %v1604_v32  ;;  %1627 = vtanh.f32 %v999_v31  ;;  %v1446_v35 = vpop.f32.mrb[22].mxu0 }
 0x11a   : > { %v1608_v34 = vpop.eup %1607  ;;  %1140 = vst.msk [vmem:[%s2030_s21 + $0x88] sm:$0xff] %vm1122_vm1, %v1606_v33  ;;  %v1494_v36 = vpop.f32.mrb[22].mxu1  ;;  %1629 = vtanh.f32 %v1446_v35 }
 0x11b   : > { %v1610_v37 = vpop.eup %1609  ;;  %1172 = vst.msk [vmem:[%s2030_s21 + $0x188] sm:$0xff] %vm1122_vm1, %v1608_v34  ;;  %v849_v38 = vpop.f32.mrb[23].mxu0  ;;  %1631 = vtanh.f32 %v1494_v36 }
 0x11c   : > { %v1009_v39 = vpop.f32.mrb[23].mxu1  ;;  %v1612_v40 = vpop.eup %1611  ;;  %1139 = vst.msk [vmem:[%s2030_s21 + $0x80] sm:$0xff] %vm1122_vm1, %v1610_v37  ;;  %1633 = vtanh.f32 %v849_v38 }
 0x11d   : > { %v1614_v41 = vpop.eup %1613  ;;  %1171 = vst.msk [vmem:[%s2030_s21 + $0x180] sm:$0xff] %vm1122_vm1, %v1612_v40  ;;  %1635 = vtanh.f32 %v1009_v39  ;;  %v1449_v43 = vpop.f32.mrb[24].mxu0 }
 0x11e   : > { %v1616_v42 = vpop.eup %1615  ;;  %1142 = vst.msk [vmem:[%s2030_s21 + $0x98] sm:$0xff] %vm1122_vm1, %v1614_v41  ;;  %v1497_v44 = vpop.f32.mrb[24].mxu1  ;;  %1637 = vtanh.f32 %v1449_v43 }
 0x11f   : > { %v1618_v45 = vpop.eup %1617  ;;  %1174 = vst.msk [vmem:[%s2030_s21 + $0x198] sm:$0xff] %vm1122_vm1, %v1616_v42  ;;  %v859_v46 = vpop.f32.mrb[25].mxu0  ;;  %1639 = vtanh.f32 %v1497_v44 }
 0x120   : > { %v1019_v47 = vpop.f32.mrb[25].mxu1  ;;  %v1620_v48 = vpop.eup %1619  ;;  %1141 = vst.msk [vmem:[%s2030_s21 + $0x90] sm:$0xff] %vm1122_vm1, %v1618_v45  ;;  %1641 = vtanh.f32 %v859_v46 }
 0x121   : > { %v1622_v49 = vpop.eup %1621  ;;  %1173 = vst.msk [vmem:[%s2030_s21 + $0x190] sm:$0xff] %vm1122_vm1, %v1620_v48  ;;  %1643 = vtanh.f32 %v1019_v47  ;;  %v1452_v51 = vpop.f32.mrb[26].mxu0 }
 0x122   : > { %v1624_v50 = vpop.eup %1623  ;;  %1144 = vst.msk [vmem:[%s2030_s21 + $0xa8] sm:$0xff] %vm1122_vm1, %v1622_v49  ;;  %v1500_v52 = vpop.f32.mrb[26].mxu1  ;;  %1645 = vtanh.f32 %v1452_v51 }
 0x123   : > { %v1626_v53 = vpop.eup %1625  ;;  %1176 = vst.msk [vmem:[%s2030_s21 + $0x1a8] sm:$0xff] %vm1122_vm1, %v1624_v50  ;;  %v869_v54 = vpop.f32.mrb[27].mxu0  ;;  %1647 = vtanh.f32 %v1500_v52 }
 0x124   : > { %v1029_v55 = vpop.f32.mrb[27].mxu1  ;;  %v1628_v56 = vpop.eup %1627  ;;  %1143 = vst.msk [vmem:[%s2030_s21 + $0xa0] sm:$0xff] %vm1122_vm1, %v1626_v53  ;;  %1649 = vtanh.f32 %v869_v54 }
 0x125   : > { %v1630_v57 = vpop.eup %1629  ;;  %1175 = vst.msk [vmem:[%s2030_s21 + $0x1a0] sm:$0xff] %vm1122_vm1, %v1628_v56  ;;  %1651 = vtanh.f32 %v1029_v55  ;;  %v1455_v59 = vpop.f32.mrb[28].mxu0 }
 0x126   : > { %v1632_v58 = vpop.eup %1631  ;;  %1146 = vst.msk [vmem:[%s2030_s21 + $0xb8] sm:$0xff] %vm1122_vm1, %v1630_v57  ;;  %v1503_v60 = vpop.f32.mrb[28].mxu1  ;;  %1653 = vtanh.f32 %v1455_v59 }
 0x127   : > { %v1634_v61 = vpop.eup %1633  ;;  %1178 = vst.msk [vmem:[%s2030_s21 + $0x1b8] sm:$0xff] %vm1122_vm1, %v1632_v58  ;;  %v879_v62 = vpop.f32.mrb[29].mxu0  ;;  %1655 = vtanh.f32 %v1503_v60 }
 0x128   : > { %v1039_v63 = vpop.f32.mrb[29].mxu1  ;;  %v1636_v0 = vpop.eup %1635  ;;  %1145 = vst.msk [vmem:[%s2030_s21 + $0xb0] sm:$0xff] %vm1122_vm1, %v1634_v61  ;;  %1657 = vtanh.f32 %v879_v62 }
 0x129   : > { %v1638_v1 = vpop.eup %1637  ;;  %1177 = vst.msk [vmem:[%s2030_s21 + $0x1b0] sm:$0xff] %vm1122_vm1, %v1636_v0  ;;  %1659 = vtanh.f32 %v1039_v63  ;;  %v1458_v3 = vpop.f32.mrb[30].mxu0 }
 0x12a   : > { %v1640_v2 = vpop.eup %1639  ;;  %1148 = vst.msk [vmem:[%s2030_s21 + $0xc8] sm:$0xff] %vm1122_vm1, %v1638_v1  ;;  %v1506_v4 = vpop.f32.mrb[30].mxu1  ;;  %1661 = vtanh.f32 %v1458_v3 }
 0x12b   : > { %v1642_v5 = vpop.eup %1641  ;;  %1180 = vst.msk [vmem:[%s2030_s21 + $0x1c8] sm:$0xff] %vm1122_vm1, %v1640_v2  ;;  %v889_v6 = vpop.f32.mrb[31].mxu0  ;;  %1663 = vtanh.f32 %v1506_v4 }
 0x12c   : > { %v1049_v7 = vpop.f32.mrb[31].mxu1  ;;  %v1644_v8 = vpop.eup %1643  ;;  %1147 = vst.msk [vmem:[%s2030_s21 + $0xc0] sm:$0xff] %vm1122_vm1, %v1642_v5  ;;  %1665 = vtanh.f32 %v889_v6 }
 0x12d   : > { %v1646_v10 = vpop.eup %1645  ;;  %1179 = vst.msk [vmem:[%s2030_s21 + $0x1c0] sm:$0xff] %vm1122_vm1, %v1644_v8  ;;  %1667 = vtanh.f32 %v1049_v7 }
 0x12e   : > { %v1648_v11 = vpop.eup %1647  ;;  %1150 = vst.msk [vmem:[%s2030_s21 + $0xd8] sm:$0xff] %vm1122_vm1, %v1646_v10 }
 0x12f   : > { %v1650_v13 = vpop.eup %1649  ;;  %1182 = vst.msk [vmem:[%s2030_s21 + $0x1d8] sm:$0xff] %vm1122_vm1, %v1648_v11 }
 0x130   : > { %v1652_v9 = vpop.eup %1651  ;;  %1149 = vst.msk [vmem:[%s2030_s21 + $0xd0] sm:$0xff] %vm1122_vm1, %v1650_v13 }
 0x131   : > { %v1654_v14 = vpop.eup %1653  ;;  %1181 = vst.msk [vmem:[%s2030_s21 + $0x1d0] sm:$0xff] %vm1122_vm1, %v1652_v9 }
 0x132   : > { %v1656_v15 = vpop.eup %1655  ;;  %1152 = vst.msk [vmem:[%s2030_s21 + $0xe8] sm:$0xff] %vm1122_vm1, %v1654_v14 }
 0x133   : > { %v1658_v16 = vpop.eup %1657  ;;  %1184 = vst.msk [vmem:[%s2030_s21 + $0x1e8] sm:$0xff] %vm1122_vm1, %v1656_v15 }
 0x134   : > { %v1660_v17 = vpop.eup %1659  ;;  %1151 = vst.msk [vmem:[%s2030_s21 + $0xe0] sm:$0xff] %vm1122_vm1, %v1658_v16 }
 0x135   : > { %v1662_v18 = vpop.eup %1661  ;;  %1183 = vst.msk [vmem:[%s2030_s21 + $0x1e0] sm:$0xff] %vm1122_vm1, %v1660_v17 }
 0x136   : > { %v1664_v12 = vpop.eup %1663  ;;  %1154 = vst.msk [vmem:[%s2030_s21 + $0xf8] sm:$0xff] %vm1122_vm1, %v1662_v18 }
 0x137   : > { %v1666_v19 = vpop.eup %1665  ;;  %1186 = vst.msk [vmem:[%s2030_s21 + $0x1f8] sm:$0xff] %vm1122_vm1, %v1664_v12 }
 0x138   : > { %v1668_v20 = vpop.eup %1667  ;;  %1153 = vst.msk [vmem:[%s2030_s21 + $0xf0] sm:$0xff] %vm1122_vm1, %v1666_v19 }
 0x139   : > { %1185 = vst.msk [vmem:[%s2030_s21 + $0x1f0] sm:$0xff] %vm1122_vm1, %v1668_v20 }
 0x13a PF: > { %s14_s15 = sadd.s32 1, %s1675_s15  }
 0x13b   : > { %p11_p4 = scmp.ge.s32.totalorder %s14_s15, 6  }
 0x13d   :  { %13 = sbr.rel (!%p11_p4) target bundleno = 1 (0x1), region = 66 }

</bundles_post_ra>
